<compile_context>
chip_gen: v6e
topology: v6e:2x2x1
jax: 0.10.0
libtpu: 0.0.40
codegen_flags: <defaults>
</compile_context>

<pallas_src>
import numpy as np
import jax
import jax.numpy as jnp
from jax import lax
from jax.experimental import pallas as pl
from jax.experimental.pallas import tpu as pltpu

DEFAULT_KERNEL_H = [11, 9, 7, 5]
DEFAULT_NB_CHANNELS = 2
DEFAULT_NB_FILTERS = [64, 32, 16, 2]
BN_EPS = 1e-5


def _round_up(x, m):
    return ((x + m - 1) // m) * m


def _pick_bblk(B, H, rows_target=512):
    """Largest divisor of B with bblk*H <= rows_target, but keep >=2 grid blocks
    when possible so both TensorCores on a v7x chip get work."""
    best = 1
    for d in range(1, B + 1):
        if B % d == 0 and d * H <= rows_target:
            best = d
    if B // best < 2 and B > 1:
        for d in range(best, 0, -1):
            if B % d == 0 and B // d >= 2:
                best = d
                break
    return best


# ---------------------------------------------------------------------------
# Pallas kernel (built as a closure over the static layer configuration)
# ---------------------------------------------------------------------------
def _make_cnn4anc_kernel(layer_cfg, *, H, bblk, pad_off, hp, cin_max,
                         use_bf16_matmul):
    """layer_cfg: list of (K, Cin_flat, Cout) per layer."""
    n_layers = len(layer_cfg)
    rows = bblk * H

    def kernel(x_ref, *refs):
        # refs = (w0, s0, b0, ..., w3, s3, b3, out_ref, xp_scratch)
        xp_ref = refs[-1]
        out_ref = refs[-2]
        params = refs[:-2]

        # Zero only the top/bottom halo rows of the resident padded-activation
        # scratch.  Re-zeroed every grid step (cheap) so correctness does not
        # depend on program_id==0 running on every TensorCore under the
        # "parallel" grid axis.  The center rows are overwritten each layer.
        if pad_off > 0:
            xp_ref[:, :pad_off, :] = jnp.zeros((bblk, pad_off, cin_max),
                                               jnp.float32)
        tail = hp - pad_off - H
        if tail > 0:
            xp_ref[:, pad_off + H:, :] = jnp.zeros((bblk, tail, cin_max),
                                                   jnp.float32)

        h = x_ref[...].astype(jnp.float32)                 # (bblk, H, c0)

        for i, (K, cin, cout) in enumerate(layer_cfg):
            w_ref, s_ref, b_ref = params[3 * i: 3 * i + 3]
            pad = K // 2

            # Write this layer's activation into the center of the 8-aligned
            # padded scratch (per-batch-element zero halo preserved, so the
            # conv never leaks across batch boundaries).
            xp_ref[:, pad_off:pad_off + H, :cin] = h

            # im2col along the lane axis: (rows, K*cin).
            base = pad_off - pad
            cols = [
                xp_ref[:, base + k: base + k + H, :cin].reshape(rows, cin)
                for k in range(K)
            ]
            im = jnp.concatenate(cols, axis=1)

            w = w_ref[...]                                  # (K*cin, cout)
            if use_bf16_matmul:
                im = im.astype(jnp.bfloat16)
                w = w.astype(jnp.bfloat16)

            # One MXU matmul per layer, f32 accumulation.
            y = jnp.dot(im, w, preferred_element_type=jnp.float32)
            # Folded BatchNorm (eval mode) + conv bias, f32 epilogue.
            y = y * s_ref[...] + b_ref[...]
            if i != n_layers - 1:
                y = jnp.tanh(y)

            h = y.reshape(bblk, H, cout)

        out_ref[...] = h.astype(out_ref.dtype)              # (bblk, H, c_last)

    return kernel


# ---------------------------------------------------------------------------
# Wrapper
# ---------------------------------------------------------------------------
def cnn4anc_forward(x_nchw, kernel_params, layer_cfg, *,
                    use_bf16_matmul=False, rows_target=512):
    """x_nchw: (B, 2, H, nb_channels).  Returns (B, nb_filters[-1], H, 1)."""
    B, two, H, W = x_nchw.shape
    c0 = two * W
    assert layer_cfg[0][1] == c0, (layer_cfg[0], c0)

    # flatten (channel, width) -> lane axis; time -> sublane axis
    x_flat = jnp.transpose(x_nchw, (0, 2, 1, 3)).reshape(B, H, c0)

    bblk = _pick_bblk(B, H, rows_target)
    assert B % bblk == 0
    grid = (B // bblk,)

    pad_max = max(k for k, _, _ in layer_cfg) // 2
    hp = _round_up(H + 2 * pad_max, 8)
    cin_max = max(c for _, c, _ in layer_cfg)
    c_last = layer_cfg[-1][2]

    flat_args = []
    in_specs = [pl.BlockSpec((bblk, H, c0), lambda g: (g, 0, 0))]
    for (w, s, b) in kernel_params:
        flat_args += [w, s, b]
        # Constant index maps: Pallas fetches these once and keeps them
        # resident in VMEM (copy-in skipped when the block index repeats).
        in_specs.append(pl.BlockSpec(w.shape, lambda g: (0, 0)))
        in_specs.append(pl.BlockSpec(s.shape, lambda g: (0, 0)))
        in_specs.append(pl.BlockSpec(b.shape, lambda g: (0, 0)))

    kernel = _make_cnn4anc_kernel(
        layer_cfg, H=H, bblk=bblk, pad_off=pad_max, hp=hp, cin_max=cin_max,
        use_bf16_matmul=use_bf16_matmul)

    # Advisory cost estimate for the XLA scheduler.
    flops = 2 * B * H * sum(k * ci * co for k, ci, co in layer_cfg)
    transcendentals = B * H * sum(co for _, _, co in layer_cfg[:-1])
    bytes_accessed = (x_flat.size * 4 + B * H * c_last * 4 +
                      sum(w.size * 4 + s.size * 4 + b.size * 4
                          for w, s, b in kernel_params))

    out = pl.pallas_call(
        kernel,
        out_shape=jax.ShapeDtypeStruct((B, H, c_last), jnp.float32),
        grid_spec=pltpu.PrefetchScalarGridSpec(
            num_scalar_prefetch=0,
            grid=grid,
            in_specs=in_specs,
            out_specs=pl.BlockSpec((bblk, H, c_last), lambda g: (g, 0, 0)),
            scratch_shapes=[pltpu.VMEM((bblk, hp, cin_max), jnp.float32)],
        ),
        compiler_params=pltpu.CompilerParams(
            dimension_semantics=("parallel",),
            vmem_limit_bytes=32 * 1024 * 1024),
        cost_estimate=pl.CostEstimate(flops=flops,
                                      transcendentals=transcendentals,
                                      bytes_accessed=bytes_accessed),
    )(x_flat, *flat_args)

    # back to NCHW: (B, H, C) -> (B, C, H, 1)
    return jnp.transpose(out, (0, 2, 1))[..., None]


# ---------------------------------------------------------------------------
# Deterministic synthetic parameters (PyTorch-layout) + folding for the kernel
# ---------------------------------------------------------------------------
def build_params(key, nb_channels, kernel_h, nb_filters):
    torch_params = []   # per layer: (W(Cout,Cin,kH,kW), conv_b, gamma, beta, mean, var)
    kernel_params = []  # per layer: (w(K*Cin_flat, Cout), scale(1,Cout), bias(1,Cout))
    layer_cfg = []      # per layer: (K, Cin_flat, Cout)
    for i, (kh, cout) in enumerate(zip(kernel_h, nb_filters)):
        if i == 0:
            cin, kw = 2, nb_channels
        else:
            cin, kw = nb_filters[i - 1], 1
        key, k1, k2, k3, k4, k5, k6 = jax.random.split(key, 7)
        W = jax.random.normal(k1, (cout, cin, kh, kw), jnp.float32) * 0.1
        conv_b = jax.random.normal(k2, (cout,), jnp.float32) * 0.05
        gamma = 1.0 + 0.1 * jax.random.normal(k3, (cout,), jnp.float32)
        beta = 0.05 * jax.random.normal(k4, (cout,), jnp.float32)
        mean = 0.05 * jax.random.normal(k5, (cout,), jnp.float32)
        var = 1.0 + 0.1 * jnp.abs(jax.random.normal(k6, (cout,), jnp.float32))
        torch_params.append((W, conv_b, gamma, beta, mean, var))

        cin_flat = cin * kw
        # im2col weight: (kH, Cin, kW, Cout) -> (kH*Cin*kW, Cout);
        # row index = k*Cin_flat + ci*kW + j  (matches the kernel's im2col order)
        w_flat = jnp.transpose(W, (2, 1, 3, 0)).reshape(kh * cin_flat, cout)
        scale = gamma / jnp.sqrt(var + BN_EPS)
        bias = beta - mean * scale + conv_b * scale
        kernel_params.append((w_flat, scale.reshape(1, cout),
                              bias.reshape(1, cout)))
        layer_cfg.append((kh, cin_flat, cout))
    return torch_params, kernel_params, layer_cfg


def ref_forward(x, torch_params, kernel_h):
    """Pure-JAX NCHW reference mirroring the PyTorch forward (eval-mode BN)."""
    h = x
    n = len(torch_params)
    for i, (W, cb, gamma, beta, mean, var) in enumerate(torch_params):
        pad = kernel_h[i] // 2
        h = lax.conv_general_dilated(
            h, W, window_strides=(1, 1), padding=[(pad, pad), (0, 0)],
            dimension_numbers=("NCHW", "OIHW", "NCHW"))
        h = h + cb[None, :, None, None]
        h = ((h - mean[None, :, None, None])
             / jnp.sqrt(var[None, :, None, None] + BN_EPS)
             * gamma[None, :, None, None] + beta[None, :, None, None])
        if i != n - 1:
            h = jnp.tanh(h)
    return h


# ---------------------------------------------------------------------------
if __name__ == "__main__":
    key = jax.random.PRNGKey(0)
    B, H = 4, 64
    nb_channels = DEFAULT_NB_CHANNELS

    key, kx, kp = jax.random.split(key, 3)
    x = jax.random.normal(kx, (B, 2, H, nb_channels), jnp.float32)

    torch_params, kernel_params, layer_cfg = build_params(
        kp, nb_channels, DEFAULT_KERNEL_H, DEFAULT_NB_FILTERS)

    out = cnn4anc_forward(x, kernel_params, layer_cfg)
    out = jax.block_until_ready(out)

    ref = jax.block_until_ready(ref_forward(x, torch_params, DEFAULT_KERNEL_H))

    assert out.shape == (B, DEFAULT_NB_FILTERS[-1], H, 1), out.shape
    np.testing.assert_allclose(np.asarray(out), np.asarray(ref),
                               rtol=1e-4, atol=1e-4)
    print("KERNEL_OK")
</pallas_src>

<mosaic_0001>
module attributes {stable_mosaic.version = 11 : i64} {
  func.func @kernel(%arg0: i32, %arg1: memref<2x64x4xf32, #tpu.memory_space<vmem>>, %arg2: memref<44x64xf32, #tpu.memory_space<vmem>>, %arg3: memref<1x64xf32, #tpu.memory_space<vmem>>, %arg4: memref<1x64xf32, #tpu.memory_space<vmem>>, %arg5: memref<576x32xf32, #tpu.memory_space<vmem>>, %arg6: memref<1x32xf32, #tpu.memory_space<vmem>>, %arg7: memref<1x32xf32, #tpu.memory_space<vmem>>, %arg8: memref<224x16xf32, #tpu.memory_space<vmem>>, %arg9: memref<1x16xf32, #tpu.memory_space<vmem>>, %arg10: memref<1x16xf32, #tpu.memory_space<vmem>>, %arg11: memref<80x2xf32, #tpu.memory_space<vmem>>, %arg12: memref<1x2xf32, #tpu.memory_space<vmem>>, %arg13: memref<1x2xf32, #tpu.memory_space<vmem>>, %arg14: memref<2x64x2xf32, #tpu.memory_space<vmem>>, %arg15: memref<2x80x64xf32, #tpu.memory_space<vmem>>) attributes {dimension_semantics = [#tpu.dimension_semantics<parallel>], iteration_bounds = array<i64: 2>, scalar_prefetch = 0 : i64, scratch_operands = 1 : i64, tpu.core_type = #tpu.core_type<tc>, window_params = [{transform_indices = @transform_0, window_bounds = array<i64: 2, 64, 4>}, {pipeline_mode = #tpu.pipeline_mode<synchronous>, transform_indices = @transform_1, window_bounds = array<i64: 44, 64>}, {pipeline_mode = #tpu.pipeline_mode<synchronous>, transform_indices = @transform_2, window_bounds = array<i64: 1, 64>}, {pipeline_mode = #tpu.pipeline_mode<synchronous>, transform_indices = @transform_3, window_bounds = array<i64: 1, 64>}, {pipeline_mode = #tpu.pipeline_mode<synchronous>, transform_indices = @transform_4, window_bounds = array<i64: 576, 32>}, {pipeline_mode = #tpu.pipeline_mode<synchronous>, transform_indices = @transform_5, window_bounds = array<i64: 1, 32>}, {pipeline_mode = #tpu.pipeline_mode<synchronous>, transform_indices = @transform_6, window_bounds = array<i64: 1, 32>}, {pipeline_mode = #tpu.pipeline_mode<synchronous>, transform_indices = @transform_7, window_bounds = array<i64: 224, 16>}, {pipeline_mode = #tpu.pipeline_mode<synchronous>, transform_indices = @transform_8, window_bounds = array<i64: 1, 16>}, {pipeline_mode = #tpu.pipeline_mode<synchronous>, transform_indices = @transform_9, window_bounds = array<i64: 1, 16>}, {pipeline_mode = #tpu.pipeline_mode<synchronous>, transform_indices = @transform_10, window_bounds = array<i64: 80, 2>}, {pipeline_mode = #tpu.pipeline_mode<synchronous>, transform_indices = @transform_11, window_bounds = array<i64: 1, 2>}, {pipeline_mode = #tpu.pipeline_mode<synchronous>, transform_indices = @transform_12, window_bounds = array<i64: 1, 2>}, {transform_indices = @transform_13, window_bounds = array<i64: 2, 64, 2>}]} {
    %cst = arith.constant 0.000000e+00 : f32
    %0 = vector.broadcast %cst : f32 to vector<2x5x64xf32>
    %c0 = arith.constant 0 : index
    %c0_0 = arith.constant 0 : index
    %c0_1 = arith.constant 0 : index
    %1 = vector.load %arg15[%c0, %c0_0, %c0_1] : memref<2x80x64xf32, #tpu.memory_space<vmem>>, vector<2x5x64xf32>
    tpu.vector_store %arg15[%c0, %c0_0, %c0_1], %0 {strides = array<i32>} : memref<2x80x64xf32, #tpu.memory_space<vmem>>, vector<2x5x64xf32>,
    %cst_2 = arith.constant 0.000000e+00 : f32
    %2 = vector.broadcast %cst_2 : f32 to vector<2x11x64xf32>
    %c0_3 = arith.constant 0 : index
    %c69 = arith.constant 69 : index
    %c0_4 = arith.constant 0 : index
    %3 = vector.load %arg15[%c0_3, %c69, %c0_4] : memref<2x80x64xf32, #tpu.memory_space<vmem>>, vector<2x11x64xf32>
    tpu.vector_store %arg15[%c0_3, %c69, %c0_4], %2 {strides = array<i32>} : memref<2x80x64xf32, #tpu.memory_space<vmem>>, vector<2x11x64xf32>,
    %c0_5 = arith.constant 0 : index
    %c0_6 = arith.constant 0 : index
    %c0_7 = arith.constant 0 : index
    %4 = vector.load %arg1[%c0_5, %c0_6, %c0_7] : memref<2x64x4xf32, #tpu.memory_space<vmem>>, vector<2x64x4xf32>
    %c0_8 = arith.constant 0 : index
    %c5 = arith.constant 5 : index
    %c0_9 = arith.constant 0 : index
    %5 = vector.load %arg15[%c0_8, %c5, %c0_9] : memref<2x80x64xf32, #tpu.memory_space<vmem>>, vector<2x64x4xf32>
    tpu.vector_store %arg15[%c0_8, %c5, %c0_9], %4 {strides = array<i32>} : memref<2x80x64xf32, #tpu.memory_space<vmem>>, vector<2x64x4xf32>,
    %c0_10 = arith.constant 0 : index
    %c0_11 = arith.constant 0 : index
    %c0_12 = arith.constant 0 : index
    %6 = vector.load %arg15[%c0_10, %c0_11, %c0_12] : memref<2x80x64xf32, #tpu.memory_space<vmem>>, vector<2x64x4xf32>
    %7 = vector.shape_cast %6 : vector<2x64x4xf32> to vector<128x4xf32>
    %c0_13 = arith.constant 0 : index
    %c1 = arith.constant 1 : index
    %c0_14 = arith.constant 0 : index
    %8 = vector.load %arg15[%c0_13, %c1, %c0_14] : memref<2x80x64xf32, #tpu.memory_space<vmem>>, vector<2x64x4xf32>
    %9 = vector.shape_cast %8 : vector<2x64x4xf32> to vector<128x4xf32>
    %c0_15 = arith.constant 0 : index
    %c2 = arith.constant 2 : index
    %c0_16 = arith.constant 0 : index
    %10 = vector.load %arg15[%c0_15, %c2, %c0_16] : memref<2x80x64xf32, #tpu.memory_space<vmem>>, vector<2x64x4xf32>
    %11 = vector.shape_cast %10 : vector<2x64x4xf32> to vector<128x4xf32>
    %c0_17 = arith.constant 0 : index
    %c3 = arith.constant 3 : index
    %c0_18 = arith.constant 0 : index
    %12 = vector.load %arg15[%c0_17, %c3, %c0_18] : memref<2x80x64xf32, #tpu.memory_space<vmem>>, vector<2x64x4xf32>
    %13 = vector.shape_cast %12 : vector<2x64x4xf32> to vector<128x4xf32>
    %c0_19 = arith.constant 0 : index
    %c4 = arith.constant 4 : index
    %c0_20 = arith.constant 0 : index
    %14 = vector.load %arg15[%c0_19, %c4, %c0_20] : memref<2x80x64xf32, #tpu.memory_space<vmem>>, vector<2x64x4xf32>
    %15 = vector.shape_cast %14 : vector<2x64x4xf32> to vector<128x4xf32>
    %c0_21 = arith.constant 0 : index
    %c5_22 = arith.constant 5 : index
    %c0_23 = arith.constant 0 : index
    %16 = vector.load %arg15[%c0_21, %c5_22, %c0_23] : memref<2x80x64xf32, #tpu.memory_space<vmem>>, vector<2x64x4xf32>
    %17 = vector.shape_cast %16 : vector<2x64x4xf32> to vector<128x4xf32>
    %c0_24 = arith.constant 0 : index
    %c6 = arith.constant 6 : index
    %c0_25 = arith.constant 0 : index
    %18 = vector.load %arg15[%c0_24, %c6, %c0_25] : memref<2x80x64xf32, #tpu.memory_space<vmem>>, vector<2x64x4xf32>
    %19 = vector.shape_cast %18 : vector<2x64x4xf32> to vector<128x4xf32>
    %c0_26 = arith.constant 0 : index
    %c7 = arith.constant 7 : index
    %c0_27 = arith.constant 0 : index
    %20 = vector.load %arg15[%c0_26, %c7, %c0_27] : memref<2x80x64xf32, #tpu.memory_space<vmem>>, vector<2x64x4xf32>
    %21 = vector.shape_cast %20 : vector<2x64x4xf32> to vector<128x4xf32>
    %c0_28 = arith.constant 0 : index
    %c8 = arith.constant 8 : index
    %c0_29 = arith.constant 0 : index
    %22 = vector.load %arg15[%c0_28, %c8, %c0_29] : memref<2x80x64xf32, #tpu.memory_space<vmem>>, vector<2x64x4xf32>
    %23 = vector.shape_cast %22 : vector<2x64x4xf32> to vector<128x4xf32>
    %c0_30 = arith.constant 0 : index
    %c9 = arith.constant 9 : index
    %c0_31 = arith.constant 0 : index
    %24 = vector.load %arg15[%c0_30, %c9, %c0_31] : memref<2x80x64xf32, #tpu.memory_space<vmem>>, vector<2x64x4xf32>
    %25 = vector.shape_cast %24 : vector<2x64x4xf32> to vector<128x4xf32>
    %c0_32 = arith.constant 0 : index
    %c10 = arith.constant 10 : index
    %c0_33 = arith.constant 0 : index
    %26 = vector.load %arg15[%c0_32, %c10, %c0_33] : memref<2x80x64xf32, #tpu.memory_space<vmem>>, vector<2x64x4xf32>
    %27 = vector.shape_cast %26 : vector<2x64x4xf32> to vector<128x4xf32>
    %28 = tpu.concatenate %7, %9, %11, %13, %15, %17, %19, %21, %23, %25, %27 in 1 : vector<128x4xf32>, vector<128x4xf32>, vector<128x4xf32>, vector<128x4xf32>, vector<128x4xf32>, vector<128x4xf32>, vector<128x4xf32>, vector<128x4xf32>, vector<128x4xf32>, vector<128x4xf32>, vector<128x4xf32> -> vector<128x44xf32>
    %c0_34 = arith.constant 0 : index
    %c0_35 = arith.constant 0 : index
    %29 = vector.load %arg2[%c0_34, %c0_35] : memref<44x64xf32, #tpu.memory_space<vmem>>, vector<44x64xf32>
    %cst_36 = arith.constant dense<0.000000e+00> : vector<128x64xf32>
    %30 = tpu.matmul %28, %29, %cst_36 {dimension_numbers = #tpu.dot_dimension_numbers<[1], [0], [0], [1], [0, 0, 1, 1], [], []>} : vector<128x44xf32>, vector<44x64xf32>, vector<128x64xf32> -> vector<128x64xf32>
    %c0_37 = arith.constant 0 : index
    %c0_38 = arith.constant 0 : index
    %31 = vector.load %arg3[%c0_37, %c0_38] : memref<1x64xf32, #tpu.memory_space<vmem>>, vector<1x64xf32>
    %32 = vector.broadcast %31 : vector<1x64xf32> to vector<128x64xf32>
    %33 = arith.mulf %30, %32 : vector<128x64xf32>
    %c0_39 = arith.constant 0 : index
    %c0_40 = arith.constant 0 : index
    %34 = vector.load %arg4[%c0_39, %c0_40] : memref<1x64xf32, #tpu.memory_space<vmem>>, vector<1x64xf32>
    %35 = vector.broadcast %34 : vector<1x64xf32> to vector<128x64xf32>
    %36 = arith.addf %33, %35 : vector<128x64xf32>
    %37 = math.tanh %36 : vector<128x64xf32>
    %38 = vector.shape_cast %37 : vector<128x64xf32> to vector<2x64x64xf32>
    %c0_41 = arith.constant 0 : index
    %c5_42 = arith.constant 5 : index
    %c0_43 = arith.constant 0 : index
    %39 = vector.load %arg15[%c0_41, %c5_42, %c0_43] : memref<2x80x64xf32, #tpu.memory_space<vmem>>, vector<2x64x64xf32>
    tpu.vector_store %arg15[%c0_41, %c5_42, %c0_43], %38 {strides = array<i32>} : memref<2x80x64xf32, #tpu.memory_space<vmem>>, vector<2x64x64xf32>,
    %c0_44 = arith.constant 0 : index
    %c1_45 = arith.constant 1 : index
    %c0_46 = arith.constant 0 : index
    %40 = vector.load %arg15[%c0_44, %c1_45, %c0_46] : memref<2x80x64xf32, #tpu.memory_space<vmem>>, vector<2x64x64xf32>
    %41 = vector.shape_cast %40 : vector<2x64x64xf32> to vector<128x64xf32>
    %c0_47 = arith.constant 0 : index
    %c2_48 = arith.constant 2 : index
    %c0_49 = arith.constant 0 : index
    %42 = vector.load %arg15[%c0_47, %c2_48, %c0_49] : memref<2x80x64xf32, #tpu.memory_space<vmem>>, vector<2x64x64xf32>
    %43 = vector.shape_cast %42 : vector<2x64x64xf32> to vector<128x64xf32>
    %c0_50 = arith.constant 0 : index
    %c3_51 = arith.constant 3 : index
    %c0_52 = arith.constant 0 : index
    %44 = vector.load %arg15[%c0_50, %c3_51, %c0_52] : memref<2x80x64xf32, #tpu.memory_space<vmem>>, vector<2x64x64xf32>
    %45 = vector.shape_cast %44 : vector<2x64x64xf32> to vector<128x64xf32>
    %c0_53 = arith.constant 0 : index
    %c4_54 = arith.constant 4 : index
    %c0_55 = arith.constant 0 : index
    %46 = vector.load %arg15[%c0_53, %c4_54, %c0_55] : memref<2x80x64xf32, #tpu.memory_space<vmem>>, vector<2x64x64xf32>
    %47 = vector.shape_cast %46 : vector<2x64x64xf32> to vector<128x64xf32>
    %c0_56 = arith.constant 0 : index
    %c5_57 = arith.constant 5 : index
    %c0_58 = arith.constant 0 : index
    %48 = vector.load %arg15[%c0_56, %c5_57, %c0_58] : memref<2x80x64xf32, #tpu.memory_space<vmem>>, vector<2x64x64xf32>
    %49 = vector.shape_cast %48 : vector<2x64x64xf32> to vector<128x64xf32>
    %c0_59 = arith.constant 0 : index
    %c6_60 = arith.constant 6 : index
    %c0_61 = arith.constant 0 : index
    %50 = vector.load %arg15[%c0_59, %c6_60, %c0_61] : memref<2x80x64xf32, #tpu.memory_space<vmem>>, vector<2x64x64xf32>
    %51 = vector.shape_cast %50 : vector<2x64x64xf32> to vector<128x64xf32>
    %c0_62 = arith.constant 0 : index
    %c7_63 = arith.constant 7 : index
    %c0_64 = arith.constant 0 : index
    %52 = vector.load %arg15[%c0_62, %c7_63, %c0_64] : memref<2x80x64xf32, #tpu.memory_space<vmem>>, vector<2x64x64xf32>
    %53 = vector.shape_cast %52 : vector<2x64x64xf32> to vector<128x64xf32>
    %c0_65 = arith.constant 0 : index
    %c8_66 = arith.constant 8 : index
    %c0_67 = arith.constant 0 : index
    %54 = vector.load %arg15[%c0_65, %c8_66, %c0_67] : memref<2x80x64xf32, #tpu.memory_space<vmem>>, vector<2x64x64xf32>
    %55 = vector.shape_cast %54 : vector<2x64x64xf32> to vector<128x64xf32>
    %c0_68 = arith.constant 0 : index
    %c9_69 = arith.constant 9 : index
    %c0_70 = arith.constant 0 : index
    %56 = vector.load %arg15[%c0_68, %c9_69, %c0_70] : memref<2x80x64xf32, #tpu.memory_space<vmem>>, vector<2x64x64xf32>
    %57 = vector.shape_cast %56 : vector<2x64x64xf32> to vector<128x64xf32>
    %58 = tpu.concatenate %41, %43, %45, %47, %49, %51, %53, %55, %57 in 1 : vector<128x64xf32>, vector<128x64xf32>, vector<128x64xf32>, vector<128x64xf32>, vector<128x64xf32>, vector<128x64xf32>, vector<128x64xf32>, vector<128x64xf32>, vector<128x64xf32> -> vector<128x576xf32>
    %c0_71 = arith.constant 0 : index
    %c0_72 = arith.constant 0 : index
    %59 = vector.load %arg5[%c0_71, %c0_72] : memref<576x32xf32, #tpu.memory_space<vmem>>, vector<576x32xf32>
    %cst_73 = arith.constant dense<0.000000e+00> : vector<128x32xf32>
    %60 = tpu.matmul %58, %59, %cst_73 {dimension_numbers = #tpu.dot_dimension_numbers<[1], [0], [0], [1], [0, 0, 1, 1], [], []>} : vector<128x576xf32>, vector<576x32xf32>, vector<128x32xf32> -> vector<128x32xf32>
    %c0_74 = arith.constant 0 : index
    %c0_75 = arith.constant 0 : index
    %61 = vector.load %arg6[%c0_74, %c0_75] : memref<1x32xf32, #tpu.memory_space<vmem>>, vector<1x32xf32>
    %62 = vector.broadcast %61 : vector<1x32xf32> to vector<128x32xf32>
    %63 = arith.mulf %60, %62 : vector<128x32xf32>
    %c0_76 = arith.constant 0 : index
    %c0_77 = arith.constant 0 : index
    %64 = vector.load %arg7[%c0_76, %c0_77] : memref<1x32xf32, #tpu.memory_space<vmem>>, vector<1x32xf32>
    %65 = vector.broadcast %64 : vector<1x32xf32> to vector<128x32xf32>
    %66 = arith.addf %63, %65 : vector<128x32xf32>
    %67 = math.tanh %66 : vector<128x32xf32>
    %68 = vector.shape_cast %67 : vector<128x32xf32> to vector<2x64x32xf32>
    %c0_78 = arith.constant 0 : index
    %c5_79 = arith.constant 5 : index
    %c0_80 = arith.constant 0 : index
    %69 = vector.load %arg15[%c0_78, %c5_79, %c0_80] : memref<2x80x64xf32, #tpu.memory_space<vmem>>, vector<2x64x32xf32>
    tpu.vector_store %arg15[%c0_78, %c5_79, %c0_80], %68 {strides = array<i32>} : memref<2x80x64xf32, #tpu.memory_space<vmem>>, vector<2x64x32xf32>,
    %c0_81 = arith.constant 0 : index
    %c2_82 = arith.constant 2 : index
    %c0_83 = arith.constant 0 : index
    %70 = vector.load %arg15[%c0_81, %c2_82, %c0_83] : memref<2x80x64xf32, #tpu.memory_space<vmem>>, vector<2x64x32xf32>
    %71 = vector.shape_cast %70 : vector<2x64x32xf32> to vector<128x32xf32>
    %c0_84 = arith.constant 0 : index
    %c3_85 = arith.constant 3 : index
    %c0_86 = arith.constant 0 : index
    %72 = vector.load %arg15[%c0_84, %c3_85, %c0_86] : memref<2x80x64xf32, #tpu.memory_space<vmem>>, vector<2x64x32xf32>
    %73 = vector.shape_cast %72 : vector<2x64x32xf32> to vector<128x32xf32>
    %c0_87 = arith.constant 0 : index
    %c4_88 = arith.constant 4 : index
    %c0_89 = arith.constant 0 : index
    %74 = vector.load %arg15[%c0_87, %c4_88, %c0_89] : memref<2x80x64xf32, #tpu.memory_space<vmem>>, vector<2x64x32xf32>
    %75 = vector.shape_cast %74 : vector<2x64x32xf32> to vector<128x32xf32>
    %c0_90 = arith.constant 0 : index
    %c5_91 = arith.constant 5 : index
    %c0_92 = arith.constant 0 : index
    %76 = vector.load %arg15[%c0_90, %c5_91, %c0_92] : memref<2x80x64xf32, #tpu.memory_space<vmem>>, vector<2x64x32xf32>
    %77 = vector.shape_cast %76 : vector<2x64x32xf32> to vector<128x32xf32>
    %c0_93 = arith.constant 0 : index
    %c6_94 = arith.constant 6 : index
    %c0_95 = arith.constant 0 : index
    %78 = vector.load %arg15[%c0_93, %c6_94, %c0_95] : memref<2x80x64xf32, #tpu.memory_space<vmem>>, vector<2x64x32xf32>
    %79 = vector.shape_cast %78 : vector<2x64x32xf32> to vector<128x32xf32>
    %c0_96 = arith.constant 0 : index
    %c7_97 = arith.constant 7 : index
    %c0_98 = arith.constant 0 : index
    %80 = vector.load %arg15[%c0_96, %c7_97, %c0_98] : memref<2x80x64xf32, #tpu.memory_space<vmem>>, vector<2x64x32xf32>
    %81 = vector.shape_cast %80 : vector<2x64x32xf32> to vector<128x32xf32>
    %c0_99 = arith.constant 0 : index
    %c8_100 = arith.constant 8 : index
    %c0_101 = arith.constant 0 : index
    %82 = vector.load %arg15[%c0_99, %c8_100, %c0_101] : memref<2x80x64xf32, #tpu.memory_space<vmem>>, vector<2x64x32xf32>
    %83 = vector.shape_cast %82 : vector<2x64x32xf32> to vector<128x32xf32>
    %84 = tpu.concatenate %71, %73, %75, %77, %79, %81, %83 in 1 : vector<128x32xf32>, vector<128x32xf32>, vector<128x32xf32>, vector<128x32xf32>, vector<128x32xf32>, vector<128x32xf32>, vector<128x32xf32> -> vector<128x224xf32>
    %c0_102 = arith.constant 0 : index
    %c0_103 = arith.constant 0 : index
    %85 = vector.load %arg8[%c0_102, %c0_103] : memref<224x16xf32, #tpu.memory_space<vmem>>, vector<224x16xf32>
    %cst_104 = arith.constant dense<0.000000e+00> : vector<128x16xf32>
    %86 = tpu.matmul %84, %85, %cst_104 {dimension_numbers = #tpu.dot_dimension_numbers<[1], [0], [0], [1], [0, 0, 1, 1], [], []>} : vector<128x224xf32>, vector<224x16xf32>, vector<128x16xf32> -> vector<128x16xf32>
    %c0_105 = arith.constant 0 : index
    %c0_106 = arith.constant 0 : index
    %87 = vector.load %arg9[%c0_105, %c0_106] : memref<1x16xf32, #tpu.memory_space<vmem>>, vector<1x16xf32>
    %88 = vector.broadcast %87 : vector<1x16xf32> to vector<128x16xf32>
    %89 = arith.mulf %86, %88 : vector<128x16xf32>
    %c0_107 = arith.constant 0 : index
    %c0_108 = arith.constant 0 : index
    %90 = vector.load %arg10[%c0_107, %c0_108] : memref<1x16xf32, #tpu.memory_space<vmem>>, vector<1x16xf32>
    %91 = vector.broadcast %90 : vector<1x16xf32> to vector<128x16xf32>
    %92 = arith.addf %89, %91 : vector<128x16xf32>
    %93 = math.tanh %92 : vector<128x16xf32>
    %94 = vector.shape_cast %93 : vector<128x16xf32> to vector<2x64x16xf32>
    %c0_109 = arith.constant 0 : index
    %c5_110 = arith.constant 5 : index
    %c0_111 = arith.constant 0 : index
    %95 = vector.load %arg15[%c0_109, %c5_110, %c0_111] : memref<2x80x64xf32, #tpu.memory_space<vmem>>, vector<2x64x16xf32>
    tpu.vector_store %arg15[%c0_109, %c5_110, %c0_111], %94 {strides = array<i32>} : memref<2x80x64xf32, #tpu.memory_space<vmem>>, vector<2x64x16xf32>,
    %c0_112 = arith.constant 0 : index
    %c3_113 = arith.constant 3 : index
    %c0_114 = arith.constant 0 : index
    %96 = vector.load %arg15[%c0_112, %c3_113, %c0_114] : memref<2x80x64xf32, #tpu.memory_space<vmem>>, vector<2x64x16xf32>
    %97 = vector.shape_cast %96 : vector<2x64x16xf32> to vector<128x16xf32>
    %c0_115 = arith.constant 0 : index
    %c4_116 = arith.constant 4 : index
    %c0_117 = arith.constant 0 : index
    %98 = vector.load %arg15[%c0_115, %c4_116, %c0_117] : memref<2x80x64xf32, #tpu.memory_space<vmem>>, vector<2x64x16xf32>
    %99 = vector.shape_cast %98 : vector<2x64x16xf32> to vector<128x16xf32>
    %c0_118 = arith.constant 0 : index
    %c5_119 = arith.constant 5 : index
    %c0_120 = arith.constant 0 : index
    %100 = vector.load %arg15[%c0_118, %c5_119, %c0_120] : memref<2x80x64xf32, #tpu.memory_space<vmem>>, vector<2x64x16xf32>
    %101 = vector.shape_cast %100 : vector<2x64x16xf32> to vector<128x16xf32>
    %c0_121 = arith.constant 0 : index
    %c6_122 = arith.constant 6 : index
    %c0_123 = arith.constant 0 : index
    %102 = vector.load %arg15[%c0_121, %c6_122, %c0_123] : memref<2x80x64xf32, #tpu.memory_space<vmem>>, vector<2x64x16xf32>
    %103 = vector.shape_cast %102 : vector<2x64x16xf32> to vector<128x16xf32>
    %c0_124 = arith.constant 0 : index
    %c7_125 = arith.constant 7 : index
    %c0_126 = arith.constant 0 : index
    %104 = vector.load %arg15[%c0_124, %c7_125, %c0_126] : memref<2x80x64xf32, #tpu.memory_space<vmem>>, vector<2x64x16xf32>
    %105 = vector.shape_cast %104 : vector<2x64x16xf32> to vector<128x16xf32>
    %106 = tpu.concatenate %97, %99, %101, %103, %105 in 1 : vector<128x16xf32>, vector<128x16xf32>, vector<128x16xf32>, vector<128x16xf32>, vector<128x16xf32> -> vector<128x80xf32>
    %c0_127 = arith.constant 0 : index
    %c0_128 = arith.constant 0 : index
    %107 = vector.load %arg11[%c0_127, %c0_128] : memref<80x2xf32, #tpu.memory_space<vmem>>, vector<80x2xf32>
    %cst_129 = arith.constant dense<0.000000e+00> : vector<128x2xf32>
    %108 = tpu.matmul %106, %107, %cst_129 {dimension_numbers = #tpu.dot_dimension_numbers<[1], [0], [0], [1], [0, 0, 1, 1], [], []>} : vector<128x80xf32>, vector<80x2xf32>, vector<128x2xf32> -> vector<128x2xf32>
    %c0_130 = arith.constant 0 : index
    %c0_131 = arith.constant 0 : index
    %109 = vector.load %arg12[%c0_130, %c0_131] : memref<1x2xf32, #tpu.memory_space<vmem>>, vector<1x2xf32>
    %110 = vector.broadcast %109 : vector<1x2xf32> to vector<128x2xf32>
    %111 = arith.mulf %108, %110 : vector<128x2xf32>
    %c0_132 = arith.constant 0 : index
    %c0_133 = arith.constant 0 : index
    %112 = vector.load %arg13[%c0_132, %c0_133] : memref<1x2xf32, #tpu.memory_space<vmem>>, vector<1x2xf32>
    %113 = vector.broadcast %112 : vector<1x2xf32> to vector<128x2xf32>
    %114 = arith.addf %111, %113 : vector<128x2xf32>
    %115 = vector.shape_cast %114 : vector<128x2xf32> to vector<2x64x2xf32>
    %c0_134 = arith.constant 0 : index
    %c0_135 = arith.constant 0 : index
    %c0_136 = arith.constant 0 : index
    %116 = vector.load %arg14[%c0_134, %c0_135, %c0_136] : memref<2x64x2xf32, #tpu.memory_space<vmem>>, vector<2x64x2xf32>
    tpu.vector_store %arg14[%c0_134, %c0_135, %c0_136], %115 {strides = array<i32>} : memref<2x64x2xf32, #tpu.memory_space<vmem>>, vector<2x64x2xf32>,
    return
  }
  func.func @transform_0(%arg0: i32) -> (i32, i32, i32) {
    %c0_i32 = arith.constant 0 : i32
    %c0_i32_0 = arith.constant 0 : i32
    %c0_i32_1 = arith.constant 0 : i32
    return %arg0, %c0_i32, %c0_i32_0 : i32, i32, i32
  }
  func.func @transform_1(%arg0: i32) -> (i32, i32) {
    %c0_i32 = arith.constant 0 : i32
    %c0_i32_0 = arith.constant 0 : i32
    %c0_i32_1 = arith.constant 0 : i32
    return %c0_i32, %c0_i32_0 : i32, i32
  }
  func.func @transform_2(%arg0: i32) -> (i32, i32) {
    %c0_i32 = arith.constant 0 : i32
    %c0_i32_0 = arith.constant 0 : i32
    %c0_i32_1 = arith.constant 0 : i32
    return %c0_i32, %c0_i32_0 : i32, i32
  }
  func.func @transform_3(%arg0: i32) -> (i32, i32) {
    %c0_i32 = arith.constant 0 : i32
    %c0_i32_0 = arith.constant 0 : i32
    %c0_i32_1 = arith.constant 0 : i32
    return %c0_i32, %c0_i32_0 : i32, i32
  }
  func.func @transform_4(%arg0: i32) -> (i32, i32) {
    %c0_i32 = arith.constant 0 : i32
    %c0_i32_0 = arith.constant 0 : i32
    %c0_i32_1 = arith.constant 0 : i32
    return %c0_i32, %c0_i32_0 : i32, i32
  }
  func.func @transform_5(%arg0: i32) -> (i32, i32) {
    %c0_i32 = arith.constant 0 : i32
    %c0_i32_0 = arith.constant 0 : i32
    %c0_i32_1 = arith.constant 0 : i32
    return %c0_i32, %c0_i32_0 : i32, i32
  }
  func.func @transform_6(%arg0: i32) -> (i32, i32) {
    %c0_i32 = arith.constant 0 : i32
    %c0_i32_0 = arith.constant 0 : i32
    %c0_i32_1 = arith.constant 0 : i32
    return %c0_i32, %c0_i32_0 : i32, i32
  }
  func.func @transform_7(%arg0: i32) -> (i32, i32) {
    %c0_i32 = arith.constant 0 : i32
    %c0_i32_0 = arith.constant 0 : i32
    %c0_i32_1 = arith.constant 0 : i32
    return %c0_i32, %c0_i32_0 : i32, i32
  }
  func.func @transform_8(%arg0: i32) -> (i32, i32) {
    %c0_i32 = arith.constant 0 : i32
    %c0_i32_0 = arith.constant 0 : i32
    %c0_i32_1 = arith.constant 0 : i32
    return %c0_i32, %c0_i32_0 : i32, i32
  }
  func.func @transform_9(%arg0: i32) -> (i32, i32) {
    %c0_i32 = arith.constant 0 : i32
    %c0_i32_0 = arith.constant 0 : i32
    %c0_i32_1 = arith.constant 0 : i32
    return %c0_i32, %c0_i32_0 : i32, i32
  }
  func.func @transform_10(%arg0: i32) -> (i32, i32) {
    %c0_i32 = arith.constant 0 : i32
    %c0_i32_0 = arith.constant 0 : i32
    %c0_i32_1 = arith.constant 0 : i32
    return %c0_i32, %c0_i32_0 : i32, i32
  }
  func.func @transform_11(%arg0: i32) -> (i32, i32) {
    %c0_i32 = arith.constant 0 : i32
    %c0_i32_0 = arith.constant 0 : i32
    %c0_i32_1 = arith.constant 0 : i32
    return %c0_i32, %c0_i32_0 : i32, i32
  }
  func.func @transform_12(%arg0: i32) -> (i32, i32) {
    %c0_i32 = arith.constant 0 : i32
    %c0_i32_0 = arith.constant 0 : i32
    %c0_i32_1 = arith.constant 0 : i32
    return %c0_i32, %c0_i32_0 : i32, i32
  }
  func.func @transform_13(%arg0: i32) -> (i32, i32, i32) {
    %c0_i32 = arith.constant 0 : i32
    %c0_i32_0 = arith.constant 0 : i32
    %c0_i32_1 = arith.constant 0 : i32
    return %arg0, %c0_i32, %c0_i32_0 : i32, i32, i32
  }
}

</mosaic_0001>

<bundles_post_ra>
// kernel: tpu_custom_call.1
= control target key start
LH: loop header
LB: loop body
LE: loop exit
PB: predicated region body
PF: predicated region fallthrough
CT: control target
= control target key end

     0   :  { %s5234_s25 = smov 0   ;;  %s7029_s0 = inlined_call_operand.vmem [shape: f32[4,64,4], index: 0, kind: input, shape index: {}]   ;;  %s7030_s1 = inlined_call_operand.vmem [shape: f32[44,64], index: 1, kind: input, shape index: {}]   ;;  %s7031_s2 = inlined_call_operand.vmem [shape: f32[1,64], index: 2, kind: input, shape index: {}]   ;;  %s7032_s3 = inlined_call_operand.vmem [shape: f32[1,64], index: 3, kind: input, shape index: {}]   ;;  %s7033_s4 = inlined_call_operand.vmem [shape: f32[576,32], index: 4, kind: input, shape index: {}]   ;;  %s7034_s5 = inlined_call_operand.vmem [shape: f32[1,32], index: 5, kind: input, shape index: {}]   ;;  %s7035_s6 = inlined_call_operand.vmem [shape: f32[1,32], index: 6, kind: input, shape index: {}]   ;;  %s7036_s7 = inlined_call_operand.vmem [shape: f32[224,16], index: 7, kind: input, shape index: {}]   ;;  %s7037_s8 = inlined_call_operand.vmem [shape: f32[1,16], index: 8, kind: input, shape index: {}]   ;;  %s7038_s9 = inlined_call_operand.vmem [shape: f32[1,16], index: 9, kind: input, shape index: {}]   ;;  %s7039_s10 = inlined_call_operand.vmem [shape: f32[80,2], index: 10, kind: input, shape index: {}]   ;;  %s7040_s11 = inlined_call_operand.vmem [shape: f32[1,2], index: 11, kind: input, shape index: {}]   ;;  %s7041_s12 = inlined_call_operand.vmem [shape: f32[1,2], index: 12, kind: input, shape index: {}]   ;;  %s7042_s13 = inlined_call_operand.vmem [shape: f32[4,64,2], index: 13, kind: output, shape index: {}]  }
   0x1 LB: > { %s4309_s26 = sadd.s32 4294967295, %s5148_s25   ;;  %p4313_p0 = scmp.ge.s32.totalorder %s5148_s25, 1  ;;  %s5148_s25 = sphi %s5234_s25, %s23_s25  }
   0x2   : > { %p389_p1 = scmp.lt.s32.totalorder %s5148_s25, 3 }
   0x4   : > { %p390_p2 = pnand %p4313_p0, %p389_p1 }
   0x5   : > { %s4314_s27 = sshll.u32 (!%p390_p2), %s4309_s26, 1  ;;  %s5151_s15 = smov (!%p390_p2), 8  }
   0x6   : > { %393 = sbr.rel (%p390_p2) target bundleno = 1823 (0x71f), region = 72  ;;  %p436_p3 = scmp.lt.s32.totalorder (!%p390_p2), %s4314_s27, 3 }
   0x7   : > { %s5152_s16 = smov (!%p390_p2), 4   ;;  %s5153_s17 = smov (!%p390_p2), 12  }
   0x8   : > { %s5154_s18 = smov (!%p390_p2), 16   ;;  %s5155_s19 = smov (!%p390_p2), 20  }
   0x9   : > { %s5156_s20 = smov (!%p390_p2), 24   ;;  %s5157_s23 = smov (!%p390_p2), 28  }
   0xa   : > { %s5158_s21 = smov (!%p390_p2), 32   ;;  %s5159_s26 = smov (!%p390_p2), 36  }
   0xb   : > { %vm449_vm0 = vcmask 520192   ;;  %v5150_v0 = vmov 0.0   ;;  %s7046_s27 = smov (!%p436_p3, %s4314_s27), 3  ;;  %vm474_vm1 = vcmask 31744   ;;  %vm452_vm2 = vcmask 523264   ;;  %v1410_v26 = vld [vmem:[%s7030_s1 + $0x20] sm:$0xff] }
   0xc   : > { %450 = vst.msk [vmem:[#allocation2] sm:$0x1f] %vm449_vm0, %v5150_v0  ;;  %451 = vst.msk [vmem:[#allocation2 + $0x50] sm:$0x1f] %vm449_vm0, %v5150_v0  ;;  %s7043_s28 = sshll.u32 %s7046_s27, 6  ;;  %vm1461_vm3 = vcmask 1043456  }
   0xd   : > { %s5252_s14 = scalar_lea.vmem %s7029_s0, %s7043_s28  ;;  %453 = vst.msk [vmem:[#allocation2 + $0x45] sm:$0xff] %vm452_vm2, %v5150_v0  ;;  %456 = vst.msk [vmem:[#allocation2 + $0x95] sm:$0xff] %vm452_vm2, %v5150_v0  ;;  %v1411_v25 = vld [vmem:[%s7030_s1 + $0x28] sm:$0xf]  ;;  %v1409_v29 = vld [vmem:[%s7030_s1 + $0x18] sm:$0xff]  ;;  %s5160_s24 = smov 40  }
   0xe   : > { %v458_v1 = vld [vmem:[%s5252_s14] sm:$0xff]  ;;  %v459_v2 = vld [vmem:[%s5252_s14 + $0x8] sm:$0xff]  ;;  %v460_v3 = vld [vmem:[%s5252_s14 + $0x10] sm:$0xff]  ;;  %4629 = vmatprep.subr.msk.mxu0 %vm1461_vm3, %v1411_v25  ;;  %vm1253_vm4 = vcmask 64512   ;;  %vm1270_vm5 = vcmask 97280   ;;  %vm1287_vm6 = vcmask 130048  }
   0xf   : > { %475 = vst.msk [vmem:[#allocation2 + $0x5] sm:$0xff] %vm474_vm1, %v458_v1  ;;  %476 = vst.msk [vmem:[#allocation2 + $0xd] sm:$0xff] %vm474_vm1, %v459_v2  ;;  %v461_v4 = vld [vmem:[%s5252_s14 + $0x18] sm:$0xff]  ;;  %v462_v5 = vld [vmem:[%s5252_s14 + $0x20] sm:$0xff]  ;;  %4630 = vmatpush3.msk.msra.mxu0 %vm1461_vm3, %v1411_v25  ;;  %vm1304_vm7 = vcmask 162816   ;;  %vm1321_vm8 = vcmask 195584  }
  0x10   : > { %477 = vst.msk [vmem:[#allocation2 + $0x15] sm:$0xff] %vm474_vm1, %v460_v3  ;;  %v463_v6 = vld [vmem:[%s5252_s14 + $0x28] sm:$0xff]  ;;  %478 = vst.msk [vmem:[#allocation2 + $0x1d] sm:$0xff] %vm474_vm1, %v461_v4  ;;  %v464_v7 = vld [vmem:[%s5252_s14 + $0x30] sm:$0xff]  ;;  %4631 = vmatprep.subr.mxu0 %v1410_v26  ;;  %vm1338_vm9 = vcmask 228352   ;;  %vm1355_vm10 = vcmask 261120  }
  0x11   : > { %479 = vst.msk [vmem:[#allocation2 + $0x25] sm:$0xff] %vm474_vm1, %v462_v5  ;;  %480 = vst.msk [vmem:[#allocation2 + $0x2d] sm:$0xff] %vm474_vm1, %v463_v6  ;;  %v465_v8 = vld [vmem:[%s5252_s14 + $0x38] sm:$0xff]  ;;  %v466_v21 = vld [vmem:[%s5252_s14 + $0x40] sm:$0xff]  ;;  %4632 = vmatpush3.msra.mxu0 %v1410_v26  ;;  %vm1372_vm11 = vcmask 293888   ;;  %vm1389_vm12 = vcmask 326656  }
  0x12   : > { %481 = vst.msk [vmem:[#allocation2 + $0x35] sm:$0xff] %vm474_vm1, %v464_v7  ;;  %482 = vst.msk [vmem:[#allocation2 + $0x3d] sm:$0xff] %vm474_vm1, %v465_v8  ;;  %v467_v22 = vld [vmem:[%s5252_s14 + $0x48] sm:$0xff]  ;;  %4633 = vmatprep.subr.mxu0 %v1409_v29  ;;  %v1408_v31 = vld [vmem:[%s7030_s1 + $0x10] sm:$0xff]  ;;  %vm1412_vm13 = vcmask 359424   ;;  %vm3235_vm14 = vcmask 785408  }
  0x13   : > { %483 = vst.msk [vmem:[#allocation2 + $0x55] sm:$0xff] %vm474_vm1, %v466_v21  ;;  %484 = vst.msk [vmem:[#allocation2 + $0x5d] sm:$0xff] %vm474_vm1, %v467_v22  ;;  %4634 = vmatpush3.msra.mxu0 %v1409_v29  ;;  %v1407_v32 = vld [vmem:[%s7030_s1 + $0x8] sm:$0xff]  ;;  %v1406_v35 = vld [vmem:[%s7030_s1] sm:$0xff]  ;;  %s5163_s28 = smov 48   ;;  %vm3951_vm15 = vcmask 392192  }
  0x14   : > { %4635 = vmatprep.subr.mxu0 %v1408_v31  ;;  %v468_v38 = vld [vmem:[%s5252_s14 + $0x50] sm:$0xff]  ;;  %v469_v46 = vld [vmem:[%s5252_s14 + $0x58] sm:$0xff]  ;;  %v470_v56 = vld [vmem:[%s5252_s14 + $0x60] sm:$0xff]  ;;  %vm3994_vm0 = vcmask 654336  }
  0x15   : > { %4636 = vmatpush3.msra.mxu0 %v1408_v31  ;;  %485 = vst.msk [vmem:[#allocation2 + $0x65] sm:$0xff] %vm474_vm1, %v468_v38  ;;  %486 = vst.msk [vmem:[#allocation2 + $0x6d] sm:$0xff] %vm474_vm1, %v469_v46  ;;  %v471_v1 = vld [vmem:[%s5252_s14 + $0x68] sm:$0xff] }
  0x16   : > { %v523_v9 = vld [vmem:[#allocation2 + $0x2] sm:$0xff]  ;;  %v5272_v11 = vld [vmem:[#allocation2 + $0xa] sm:$0xff]  ;;  %4637 = vmatprep.subr.mxu0 %v1407_v32  ;;  %487 = vst.msk [vmem:[#allocation2 + $0x75] sm:$0xff] %vm474_vm1, %v470_v56  ;;  %488 = vst.msk [vmem:[#allocation2 + $0x7d] sm:$0xff] %vm474_vm1, %v471_v1 }
  0x17   : > { %v507_v10 = vld [vmem:[#allocation2 + $0x1] sm:$0xff]  ;;  %705 = vrot.lane.b32.xlu1 %v523_v9, %s5151_s15  ;;  %v508_v12 = vld [vmem:[#allocation2 + $0x9] sm:$0xff]  ;;  %v509_v27 = vld [vmem:[#allocation2 + $0x11] sm:$0xff]  ;;  %4638 = vmatpush3.msra.mxu0 %v1407_v32 }
  0x18   : > { %641 = vrot.lane.b32.xlu0 %v507_v10, %s5152_s16  ;;  %v540_v13 = vld [vmem:[#allocation2 + $0xb] sm:$0xff]  ;;  %v539_v14 = vld [vmem:[#allocation2 + $0x3] sm:$0xff]  ;;  %v510_v34 = vld [vmem:[#allocation2 + $0x19] sm:$0xff]  ;;  %4639 = vmatprep.subr.mxu0 %v1406_v35 }
  0x19   : > { %v556_v15 = vld [vmem:[#allocation2 + $0xc] sm:$0xff]  ;;  %v555_v16 = vld [vmem:[#allocation2 + $0x4] sm:$0xff]  ;;  %4640 = vmatpush3.msra.mxu0 %v1406_v35  ;;  %v526_v37 = vld [vmem:[#allocation2 + $0x1a] sm:$0xff] }
  0x1a   : > { %v572_v17 = vld [vmem:[#allocation2 + $0xd] sm:$0xff]  ;;  %v571_v18 = vld [vmem:[#allocation2 + $0x5] sm:$0xff]  ;;  %v542_v39 = vld [vmem:[#allocation2 + $0x1b] sm:$0xff] }
  0x1b   : > { %707 = vrot.lane.b32.xlu1 %v5272_v11, %s5151_s15  ;;  %v588_v19 = vld [vmem:[#allocation2 + $0xe] sm:$0xff]  ;;  %v587_v20 = vld [vmem:[#allocation2 + $0x6] sm:$0xff]  ;;  %v558_v40 = vld [vmem:[#allocation2 + $0x1c] sm:$0xff] }
  0x1c   : > { %643 = vrot.lane.b32.xlu0 %v508_v12, %s5152_s16  ;;  %v604_v23 = vld [vmem:[#allocation2 + $0xf] sm:$0xff]  ;;  %v603_v24 = vld [vmem:[#allocation2 + $0x7] sm:$0xff]  ;;  %v574_v42 = vld [vmem:[#allocation2 + $0x1d] sm:$0xff] }
  0x1d   : > { %v5301_v28 = vld [vmem:[#allocation2 + $0x8] sm:$0xff]  ;;  %v5309_v30 = vld [vmem:[#allocation2 + $0x10] sm:$0xff]  ;;  %v590_v44 = vld [vmem:[#allocation2 + $0x1e] sm:$0xff] }
  0x1e   : > { %v525_v33 = vld [vmem:[#allocation2 + $0x12] sm:$0xff]  ;;  %v606_v47 = vld [vmem:[#allocation2 + $0x1f] sm:$0xff]  ;;  %v512_v53 = vld [vmem:[#allocation2 + $0x29] sm:$0xff] }
  0x1f   : > { %771 = vrot.lane.b32.xlu1 %v540_v13, %s5153_s17  ;;  %v541_v36 = vld [vmem:[#allocation2 + $0x13] sm:$0xff]  ;;  %v511_v49 = vld [vmem:[#allocation2 + $0x21] sm:$0xff]  ;;  %v528_v55 = vld [vmem:[#allocation2 + $0x2a] sm:$0xff] }
  0x20   : > { %769 = vrot.lane.b32.xlu0 %v539_v14, %s5153_s17  ;;  %v557_v41 = vld [vmem:[#allocation2 + $0x14] sm:$0xff]  ;;  %v5349_v51 = vld [vmem:[#allocation2 + $0x20] sm:$0xff]  ;;  %v544_v57 = vld [vmem:[#allocation2 + $0x2b] sm:$0xff] }
  0x21   : > { %v573_v43 = vld [vmem:[#allocation2 + $0x15] sm:$0xff]  ;;  %v527_v52 = vld [vmem:[#allocation2 + $0x22] sm:$0xff]  ;;  %v560_v58 = vld [vmem:[#allocation2 + $0x2c] sm:$0xff] }
  0x22   : > { %v589_v45 = vld [vmem:[#allocation2 + $0x16] sm:$0xff]  ;;  %v543_v54 = vld [vmem:[#allocation2 + $0x23] sm:$0xff]  ;;  %v576_v60 = vld [vmem:[#allocation2 + $0x2d] sm:$0xff] }
  0x23   : > { %835 = vrot.lane.b32.xlu1 %v556_v15, %s5154_s18  ;;  %v605_v48 = vld [vmem:[#allocation2 + $0x17] sm:$0xff]  ;;  %v559_v59 = vld [vmem:[#allocation2 + $0x24] sm:$0xff]  ;;  %v592_v62 = vld [vmem:[#allocation2 + $0x2e] sm:$0xff] }
  0x24   : > { %833 = vrot.lane.b32.xlu0 %v555_v16, %s5154_s18  ;;  %v5344_v50 = vld [vmem:[#allocation2 + $0x18] sm:$0xff]  ;;  %v575_v61 = vld [vmem:[#allocation2 + $0x25] sm:$0xff]  ;;  %v608_v2 = vld [vmem:[#allocation2 + $0x2f] sm:$0xff] }
  0x25   : > { %v591_v63 = vld [vmem:[#allocation2 + $0x26] sm:$0xff]  ;;  %v513_v4 = vld [vmem:[#allocation2 + $0x31] sm:$0xff]  ;;  %v5384_v8 = vld [vmem:[#allocation2 + $0x39] sm:$0xff] }
  0x26   : > { %v607_v3 = vld [vmem:[#allocation2 + $0x27] sm:$0xff]  ;;  %v5379_v6 = vld [vmem:[#allocation2 + $0x30] sm:$0xff]  ;;  %v5395_v14 = vld [vmem:[#allocation2 + $0x3a] sm:$0xff] }
  0x27   : > { %899 = vrot.lane.b32.xlu1 %v572_v17, %s5155_s19  ;;  %v5374_v5 = vld [vmem:[#allocation2 + $0x28] sm:$0xff]  ;;  %v529_v7 = vld [vmem:[#allocation2 + $0x32] sm:$0xff]  ;;  %v562_v21 = vld [vmem:[#allocation2 + $0x3c] sm:$0xff] }
  0x28   : > { %897 = vrot.lane.b32.xlu0 %v571_v18, %s5155_s19  ;;  %v545_v13 = vld [vmem:[#allocation2 + $0x33] sm:$0xff]  ;;  %v546_v18 = vld [vmem:[#allocation2 + $0x3b] sm:$0xff] }
  0x29   : > { %v472_v17 = vld [vmem:[%s5252_s14 + $0x70] sm:$0xff]  ;;  %v578_v25 = vld [vmem:[#allocation2 + $0x3d] sm:$0xff] }
  0x2a   : > { %489 = vst.msk [vmem:[#allocation2 + $0x85] sm:$0xff] %vm474_vm1, %v472_v17  ;;  %v561_v22 = vld [vmem:[#allocation2 + $0x34] sm:$0xff]  ;;  %v594_v31 = vld [vmem:[#allocation2 + $0x3e] sm:$0xff] }
  0x2b   : > { %963 = vrot.lane.b32.xlu1 %v588_v19, %s5156_s20  ;;  %v577_v26 = vld [vmem:[#allocation2 + $0x35] sm:$0xff] }
  0x2c   : > { %961 = vrot.lane.b32.xlu0 %v587_v20, %s5156_s20  ;;  %v593_v32 = vld [vmem:[#allocation2 + $0x36] sm:$0xff] }
  0x2d   : > { %v473_v35 = vld [vmem:[%s5252_s14 + $0x78] sm:$0xff] }
  0x2e   : > { %v609_v38 = vld [vmem:[#allocation2 + $0x37] sm:$0xff]  ;;  %490 = vst.msk [vmem:[#allocation2 + $0x8d] sm:$0xff] %vm474_vm1, %v473_v35 }
  0x2f   : > { %1027 = vrot.lane.b32.xlu1 %v604_v23, %s5157_s23 }
  0x30   : > { %1025 = vrot.lane.b32.xlu0 %v603_v24, %s5157_s23 }
  0x33   : > { %645 = vrot.lane.b32.xlu1 %v509_v27, %s5152_s16 }
  0x34   : > { %1089 = vrot.lane.b32.xlu0 %v5301_v28, %s5158_s21 }
  0x37   : > { %1139 = vrot.lane.b32.xlu1 %v508_v12, %s5159_s26 }
  0x38   : > { %1091 = vrot.lane.b32.xlu0 %v5309_v30, %s5158_s21 }
  0x3b   : > { %709 = vrot.lane.b32.xlu1 %v525_v33, %s5151_s15 }
  0x3c   : > { %647 = vrot.lane.b32.xlu0 %v510_v34, %s5152_s16 }
  0x3f   : > { %1189 = vrot.lane.b32.xlu1 %v5272_v11, %s5160_s24 }
  0x40   : > { %1141 = vrot.lane.b32.xlu0 %v509_v27, %s5159_s26 }
  0x43   : > { %773 = vrot.lane.b32.xlu1 %v541_v36, %s5153_s17  ;;  %v491_v36 = vld [vmem:[#allocation2] sm:$0xff] }
  0x44   : > { %711 = vrot.lane.b32.xlu0 %v526_v37, %s5151_s15 }
  0x47   : > { %775 = vrot.lane.b32.xlu1 %v542_v39, %s5153_s17 }
  0x48   : > { %1191 = vrot.lane.b32.xlu0 %v525_v33, %s5160_s24 }
  0x4b   : > { %839 = vrot.lane.b32.xlu1 %v558_v40, %s5154_s18 }
  0x4c   : > { %837 = vrot.lane.b32.xlu0 %v557_v41, %s5154_s18 }
  0x4f   : > { %903 = vrot.lane.b32.xlu1 %v574_v42, %s5155_s19  ;;  %v515_v42 = vld [vmem:[#allocation2 + $0x51] sm:$0xff] }
  0x50   : > { %901 = vrot.lane.b32.xlu0 %v573_v43, %s5155_s19  ;;  %v5425_v43 = vld [vmem:[#allocation2 + $0x38] sm:$0xff] }
  0x53   : > { %967 = vrot.lane.b32.xlu1 %v590_v44, %s5156_s20 }
  0x54   : > { %965 = vrot.lane.b32.xlu0 %v589_v45, %s5156_s20 }
  0x57   : > { %1031 = vrot.lane.b32.xlu1 %v606_v47, %s5157_s23 }
  0x58   : > { %1029 = vrot.lane.b32.xlu0 %v605_v48, %s5157_s23 }
  0x5b   : > { %649 = vrot.lane.b32.xlu1 %v511_v49, %s5152_s16 }
  0x5c   : > { %1093 = vrot.lane.b32.xlu0 %v5344_v50, %s5158_s21 }
  0x5f   : > { %1143 = vrot.lane.b32.xlu1 %v510_v34, %s5159_s26 }
  0x60   : > { %1095 = vrot.lane.b32.xlu0 %v5349_v51, %s5158_s21 }
  0x63   : > { %713 = vrot.lane.b32.xlu1 %v527_v52, %s5151_s15 }
  0x64   : > { %651 = vrot.lane.b32.xlu0 %v512_v53, %s5152_s16 }
  0x67   : > { %1193 = vrot.lane.b32.xlu1 %v526_v37, %s5160_s24  ;;  %v610_v37 = vld [vmem:[#allocation2 + $0x3f] sm:$0xff] }
  0x68   : > { %1145 = vrot.lane.b32.xlu0 %v511_v49, %s5159_s26  ;;  %v619_v49 = vld [vmem:[#allocation2 + $0x40] sm:$0xff] }
  0x6b   : > { %777 = vrot.lane.b32.xlu1 %v543_v54, %s5153_s17 }
  0x6c   : > { %715 = vrot.lane.b32.xlu0 %v528_v55, %s5151_s15 }
  0x6f   : > { %779 = vrot.lane.b32.xlu1 %v544_v57, %s5153_s17 }
  0x70   : > { %1195 = vrot.lane.b32.xlu0 %v527_v52, %s5160_s24 }
  0x73   : > { %843 = vrot.lane.b32.xlu1 %v560_v58, %s5154_s18 }
  0x74   : > { %841 = vrot.lane.b32.xlu0 %v559_v59, %s5154_s18  ;;  %v531_v59 = vld [vmem:[#allocation2 + $0x52] sm:$0xff] }
  0x77   : > { %907 = vrot.lane.b32.xlu1 %v576_v60, %s5155_s19  ;;  %v5447_v60 = vld [vmem:[#allocation2 + $0x59] sm:$0xff] }
  0x78   : > { %905 = vrot.lane.b32.xlu0 %v575_v61, %s5155_s19 }
  0x7b   : > { %971 = vrot.lane.b32.xlu1 %v592_v62, %s5156_s20 }
  0x7c   : > { %969 = vrot.lane.b32.xlu0 %v591_v63, %s5156_s20 }
  0x7f   : > { %1035 = vrot.lane.b32.xlu1 %v608_v2, %s5157_s23 }
  0x80   : > { %1033 = vrot.lane.b32.xlu0 %v607_v3, %s5157_s23 }
  0x83   : > { %653 = vrot.lane.b32.xlu1 %v513_v4, %s5152_s16 }
  0x84   : > { %1097 = vrot.lane.b32.xlu0 %v5374_v5, %s5158_s21 }
  0x87   : > { %1147 = vrot.lane.b32.xlu1 %v512_v53, %s5159_s26 }
  0x88   : > { %1099 = vrot.lane.b32.xlu0 %v5379_v6, %s5158_s21 }
  0x89   : > { %v706_v9 = vpop.permute.xlu1 %705 }
  0x8a   : > { %v642_v10 = vpop.permute.xlu0 %641 }
  0x8b   : > { %717 = vrot.lane.b32.xlu1 %v529_v7, %s5151_s15  ;;  %v1237_v41 = vsel %vm474_vm1, %v491_v36, %v642_v10 }
  0x8c   : > { %655 = vrot.lane.b32.xlu0 %v5384_v8, %s5152_s16  ;;  %v1254_v46 = vsel %vm1253_vm4, %v1237_v41, %v706_v9 }
  0x8d   : > { %v5389_v11 = vpop.permute.xlu1 %707 }
  0x8e   : > { %v5391_v12 = vpop.permute.xlu0 %643 }
  0x8f   : > { %1197 = vrot.lane.b32.xlu1 %v528_v55, %s5160_s24  ;;  %v1238_v56 = vsel %vm474_vm1, %v5301_v28, %v5391_v12 }
  0x90   : > { %1149 = vrot.lane.b32.xlu0 %v513_v4, %s5159_s26  ;;  %v1255_v28 = vsel %vm1253_vm4, %v1238_v56, %v5389_v11  ;;  %v621_v4 = vld [vmem:[#allocation2 + $0x41] sm:$0xff] }
  0x91   : > { %v5397_v15 = vpop.permute.xlu1 %771 }
  0x92   : > { %v770_v16 = vpop.permute.xlu0 %769  ;;  %v1272_v2 = vsel %vm1270_vm5, %v1255_v28, %v5397_v15  ;;  %v5472_v15 = vld [vmem:[#allocation2 + $0x5a] sm:$0xff] }
  0x93   : > { %781 = vrot.lane.b32.xlu1 %v545_v13, %s5153_s17  ;;  %v1271_v47 = vsel %vm1270_vm5, %v1254_v46, %v770_v16  ;;  %v547_v13 = vld [vmem:[#allocation2 + $0x53] sm:$0xff] }
  0x94   : > { %719 = vrot.lane.b32.xlu0 %v5395_v14, %s5151_s15 }
  0x95   : > { %v5404_v19 = vpop.permute.xlu1 %835 }
  0x96   : > { %v834_v20 = vpop.permute.xlu0 %833  ;;  %v1289_v3 = vsel %vm1287_vm6, %v1272_v2, %v5404_v19 }
  0x97   : > { %783 = vrot.lane.b32.xlu1 %v546_v18, %s5153_s17  ;;  %v1288_v48 = vsel %vm1287_vm6, %v1271_v47, %v834_v20  ;;  %v623_v20 = vld [vmem:[#allocation2 + $0x42] sm:$0xff] }
  0x98   : > { %1199 = vrot.lane.b32.xlu0 %v529_v7, %s5160_s24 }
  0x99   : > { %v5408_v23 = vpop.permute.xlu1 %899 }
  0x9a   : > { %v898_v24 = vpop.permute.xlu0 %897  ;;  %v1306_v7 = vsel %vm1304_vm7, %v1289_v3, %v5408_v23  ;;  %v564_v23 = vld [vmem:[#allocation2 + $0x5c] sm:$0xff] }
  0x9b   : > { %847 = vrot.lane.b32.xlu1 %v562_v21, %s5154_s18  ;;  %v1305_v52 = vsel %vm1304_vm7, %v1288_v48, %v898_v24  ;;  %v563_v24 = vld [vmem:[#allocation2 + $0x54] sm:$0xff] }
  0x9c   : > { %845 = vrot.lane.b32.xlu0 %v561_v22, %s5154_s18 }
  0x9d   : > { %v5412_v27 = vpop.permute.xlu1 %963 }
  0x9e   : > { %v962_v29 = vpop.permute.xlu0 %961  ;;  %v1323_v10 = vsel %vm1321_vm8, %v1306_v7, %v5412_v27  ;;  %v580_v27 = vld [vmem:[#allocation2 + $0x5d] sm:$0xff] }
  0x9f   : > { %911 = vrot.lane.b32.xlu1 %v578_v25, %s5155_s19  ;;  %v1322_v55 = vsel %vm1321_vm8, %v1305_v52, %v962_v29  ;;  %v579_v29 = vld [vmem:[#allocation2 + $0x55] sm:$0xff] }
  0xa0   : > { %909 = vrot.lane.b32.xlu0 %v577_v26, %s5155_s19 }
  0xa1   : > { %v1028_v33 = vpop.permute.xlu1 %1027 }
  0xa2   : > { %v1026_v34 = vpop.permute.xlu0 %1025  ;;  %v1340_v11 = vsel %vm1338_vm9, %v1323_v10, %v1028_v33  ;;  %v596_v33 = vld [vmem:[#allocation2 + $0x5e] sm:$0xff] }
  0xa3   : > { %975 = vrot.lane.b32.xlu1 %v594_v31, %s5156_s20  ;;  %v1339_v57 = vsel %vm1338_vm9, %v1322_v55, %v1026_v34  ;;  %v595_v34 = vld [vmem:[#allocation2 + $0x56] sm:$0xff]  ;;  %v5506_v55 = vld [vmem:[#allocation2 + $0x60] sm:$0xff] }
  0xa4   : > { %973 = vrot.lane.b32.xlu0 %v593_v32, %s5156_s20 }
  0xa5   : > { %v5420_v39 = vpop.permute.xlu1 %645 }
  0xa6   : > { %v1090_v40 = vpop.permute.xlu0 %1089 }
  0xa7   : > { %1039 = vrot.lane.b32.xlu1 %v610_v37, %s5157_s23  ;;  %v1356_v58 = vsel %vm1355_vm10, %v1339_v57, %v1090_v40  ;;  %v612_v37 = vld [vmem:[#allocation2 + $0x5f] sm:$0xff] }
  0xa8   : > { %1037 = vrot.lane.b32.xlu0 %v609_v38, %s5157_s23  ;;  %v611_v38 = vld [vmem:[#allocation2 + $0x57] sm:$0xff] }
  0xa9   : > { %v1140_v44 = vpop.permute.xlu1 %1139 }
  0xaa   : > { %v1092_v45 = vpop.permute.xlu0 %1091  ;;  %v1373_v61 = vsel %vm1372_vm11, %v1356_v58, %v1140_v44  ;;  %v5494_v44 = vld [vmem:[#allocation2 + $0x58] sm:$0xff] }
  0xab   : > { %657 = vrot.lane.b32.xlu1 %v515_v42, %s5152_s16  ;;  %v1357_v12 = vsel %vm1355_vm10, %v1340_v11, %v1092_v45  ;;  %v517_v42 = vld [vmem:[#allocation2 + $0x61] sm:$0xff]  ;;  %v1239_v45 = vsel %vm474_vm1, %v5309_v30, %v5420_v39 }
  0xac   : > { %1101 = vrot.lane.b32.xlu0 %v5425_v43, %s5158_s21  ;;  %v549_v11 = vld [vmem:[#allocation2 + $0x63] sm:$0xff] }
  0xad   : > { %v5434_v53 = vpop.permute.xlu1 %709 }
  0xae   : > { %v5436_v54 = vpop.permute.xlu0 %647  ;;  %v1256_v48 = vsel %vm1253_vm4, %v1239_v45, %v5434_v53 }
  0xaf   : > { %1151 = vrot.lane.b32.xlu1 %v5384_v8, %s5159_s26 }
  0xb0   : > { %1103 = vrot.lane.b32.xlu0 %v619_v49, %s5158_s21 }
  0xb1   : > { %v1190_v62 = vpop.permute.xlu1 %1189 }
  0xb2   : > { %v1142_v63 = vpop.permute.xlu0 %1141  ;;  %v1390_v1 = vsel %vm1389_vm12, %v1373_v61, %v1190_v62  ;;  %v5520_v61 = vld [vmem:[#allocation2 + $0x69] sm:$0xff]  ;;  %v1240_v62 = vsel %vm474_vm1, %v5344_v50, %v5436_v54 }
  0xb3   : > { %721 = vrot.lane.b32.xlu1 %v531_v59, %s5151_s15  ;;  %4641 = vmatprep.mubr.msk.f32.mxu0 %vm1412_vm13, %v1390_v1  ;;  %v1374_v16 = vsel %vm1372_vm11, %v1357_v12, %v1142_v63  ;;  %v533_v59 = vld [vmem:[#allocation2 + $0x62] sm:$0xff]  ;;  %v5545_v12 = vld [vmem:[#allocation2 + $0x6a] sm:$0xff] }
  0xb4   : > { %659 = vrot.lane.b32.xlu0 %v5447_v60, %s5152_s16 }
  0xb5   : > { %v774_v8 = vpop.permute.xlu1 %773 }
  0xb6   : > { %v5463_v9 = vpop.permute.xlu0 %711  ;;  %v1273_v49 = vsel %vm1270_vm5, %v1256_v48, %v774_v8 }
  0xb7   : > { %1201 = vrot.lane.b32.xlu1 %v5395_v14, %s5160_s24  ;;  %v548_v14 = vld [vmem:[#allocation2 + $0x5b] sm:$0xff]  ;;  %v1257_v2 = vsel %vm1253_vm4, %v1240_v62, %v5463_v9 }
  0xb8   : > { %1153 = vrot.lane.b32.xlu0 %v621_v4, %s5159_s26 }
  0xb9   : > { %v5475_v17 = vpop.permute.xlu1 %775 }
  0xba   : > { %v1192_v18 = vpop.permute.xlu0 %1191  ;;  %v1274_v3 = vsel %vm1270_vm5, %v1257_v2, %v5475_v17 }
  0xbb   : > { %v1391_v19 = vsel %vm1389_vm12, %v1374_v16, %v1192_v18  ;;  %785 = vrot.lane.b32.xlu1 %v547_v13, %s5153_s17 }
  0xbc   : > { %723 = vrot.lane.b32.xlu0 %v5472_v15, %s5151_s15  ;;  %4642 = vmatmul.mubr.msk.f32.vlgmr.msra.gmra.mxu0 %vm1412_vm13, %v1391_v19 }
  0xbd   : > { %v840_v21 = vpop.permute.xlu1 %839 }
  0xbe   : > { %v838_v22 = vpop.permute.xlu0 %837  ;;  %v1291_v4 = vsel %vm1287_vm6, %v1274_v3, %v840_v21  ;;  %v565_v21 = vld [vmem:[#allocation2 + $0x64] sm:$0xff] }
  0xbf   : > { %787 = vrot.lane.b32.xlu1 %v548_v14, %s5153_s17  ;;  %v1290_v52 = vsel %vm1287_vm6, %v1273_v49, %v838_v22 }
  0xc0   : > { %1203 = vrot.lane.b32.xlu0 %v623_v20, %s5160_s24  ;;  %v566_v20 = vld [vmem:[#allocation2 + $0x6c] sm:$0xff] }
  0xc1   : > { %v904_v25 = vpop.permute.xlu1 %903 }
  0xc2   : > { %v902_v26 = vpop.permute.xlu0 %901  ;;  %v1308_v50 = vsel %vm1304_vm7, %v1291_v4, %v904_v25  ;;  %v581_v25 = vld [vmem:[#allocation2 + $0x65] sm:$0xff] }
  0xc3   : > { %851 = vrot.lane.b32.xlu1 %v564_v23, %s5154_s18  ;;  %v1307_v56 = vsel %vm1304_vm7, %v1290_v52, %v902_v26  ;;  %v5579_v52 = vld [vmem:[#allocation2 + $0x70] sm:$0xff] }
  0xc4   : > { %849 = vrot.lane.b32.xlu0 %v563_v24, %s5154_s18  ;;  %v582_v24 = vld [vmem:[#allocation2 + $0x6d] sm:$0xff] }
  0xc5   : > { %v968_v31 = vpop.permute.xlu1 %967 }
  0xc6   : > { %v966_v32 = vpop.permute.xlu0 %965  ;;  %v1325_v8 = vsel %vm1321_vm8, %v1308_v50, %v968_v31  ;;  %v597_v31 = vld [vmem:[#allocation2 + $0x66] sm:$0xff] }
  0xc7   : > { %915 = vrot.lane.b32.xlu1 %v580_v27, %s5155_s19  ;;  %v1324_v39 = vsel %vm1321_vm8, %v1307_v56, %v966_v32 }
  0xc8   : > { %913 = vrot.lane.b32.xlu0 %v579_v29, %s5155_s19  ;;  %v598_v29 = vld [vmem:[#allocation2 + $0x6e] sm:$0xff] }
  0xc9   : > { %v1032_v35 = vpop.permute.xlu1 %1031 }
  0xca   : > { %v1030_v36 = vpop.permute.xlu0 %1029  ;;  %v1342_v9 = vsel %vm1338_vm9, %v1325_v8, %v1032_v35  ;;  %v613_v35 = vld [vmem:[#allocation2 + $0x67] sm:$0xff]  ;;  %v551_v8 = vld [vmem:[#allocation2 + $0x73] sm:$0xff] }
  0xcb   : > { %979 = vrot.lane.b32.xlu1 %v596_v33, %s5156_s20  ;;  %v1341_v53 = vsel %vm1338_vm9, %v1324_v39, %v1030_v36 }
  0xcc   : > { %977 = vrot.lane.b32.xlu0 %v595_v34, %s5156_s20  ;;  %v614_v34 = vld [vmem:[#allocation2 + $0x6f] sm:$0xff] }
  0xcd   : > { %v5490_v40 = vpop.permute.xlu1 %649 }
  0xce   : > { %v1094_v41 = vpop.permute.xlu0 %1093 }
  0xcf   : > { %1043 = vrot.lane.b32.xlu1 %v612_v37, %s5157_s23  ;;  %v1358_v58 = vsel %vm1355_vm10, %v1341_v53, %v1094_v41  ;;  %v5567_v41 = vld [vmem:[#allocation2 + $0x68] sm:$0xff] }
  0xd0   : > { %1041 = vrot.lane.b32.xlu0 %v611_v38, %s5157_s23  ;;  %v519_v38 = vld [vmem:[#allocation2 + $0x71] sm:$0xff] }
  0xd1   : > { %v1144_v46 = vpop.permute.xlu1 %1143 }
  0xd2   : > { %v1096_v47 = vpop.permute.xlu0 %1095  ;;  %v1375_v63 = vsel %vm1372_vm11, %v1358_v58, %v1144_v46  ;;  %v535_v58 = vld [vmem:[#allocation2 + $0x72] sm:$0xff] }
  0xd3   : > { %661 = vrot.lane.b32.xlu1 %v517_v42, %s5152_s16  ;;  %v1359_v10 = vsel %vm1355_vm10, %v1342_v9, %v1096_v47  ;;  %v5618_v9 = vld [vmem:[#allocation2 + $0x7a] sm:$0xff] }
  0xd4   : > { %1105 = vrot.lane.b32.xlu0 %v5494_v44, %s5158_s21 }
  0xd5   : > { %v5509_v57 = vpop.permute.xlu1 %713 }
  0xd6   : > { %v5511_v30 = vpop.permute.xlu0 %651 }
  0xd7   : > { %1155 = vrot.lane.b32.xlu1 %v5447_v60, %s5159_s26  ;;  %v1242_v62 = vsel %vm474_vm1, %v5374_v5, %v5511_v30 }
  0xd8   : > { %1107 = vrot.lane.b32.xlu0 %v5506_v55, %s5158_s21 }
  0xd9   : > { %v1194_v28 = vpop.permute.xlu1 %1193 }
  0xda   : > { %v1146_v1 = vpop.permute.xlu0 %1145  ;;  %v1392_v60 = vsel %vm1389_vm12, %v1375_v63, %v1194_v28 }
  0xdb   : > { %725 = vrot.lane.b32.xlu1 %v533_v59, %s5151_s15  ;;  %4644 = vmatprep.mubr.msk.f32.mxu0 %vm1412_vm13, %v1392_v60  ;;  %v1376_v13 = vsel %vm1372_vm11, %v1359_v10, %v1146_v1 }
  0xdc   : > { %663 = vrot.lane.b32.xlu0 %v5520_v61, %s5152_s16 }
  0xdd   : > { %v778_v54 = vpop.permute.xlu1 %777 }
  0xde   : > { %v5537_v7 = vpop.permute.xlu0 %715 }
  0xdf   : > { %1205 = vrot.lane.b32.xlu1 %v5472_v15, %s5160_s24  ;;  %v550_v15 = vld [vmem:[#allocation2 + $0x6b] sm:$0xff]  ;;  %v1259_v2 = vsel %vm1253_vm4, %v1242_v62, %v5537_v7 }
  0xe0   : > { %1157 = vrot.lane.b32.xlu0 %v517_v42, %s5159_s26  ;;  %v1241_v42 = vsel %vm474_vm1, %v5349_v51, %v5490_v40 }
  0xe1   : > { %v5548_v16 = vpop.permute.xlu1 %779  ;;  %v1258_v47 = vsel %vm1253_vm4, %v1241_v42, %v5509_v57 }
  0xe2   : > { %v1196_v17 = vpop.permute.xlu0 %1195  ;;  %v1275_v48 = vsel %vm1270_vm5, %v1258_v47, %v778_v54  ;;  %v1276_v60 = vsel %vm1270_vm5, %v1259_v2, %v5548_v16 }
  0xe3   : > { %v1393_v18 = vsel %vm1389_vm12, %v1376_v13, %v1196_v17  ;;  %789 = vrot.lane.b32.xlu1 %v549_v11, %s5153_s17 }
  0xe4   : > { %727 = vrot.lane.b32.xlu0 %v5545_v12, %s5151_s15  ;;  %4645 = vmatmul.mubr.msk.f32.gmra.mxu0 %vm1412_vm13, %v1393_v18 }
  0xe5   : > { %v844_v19 = vpop.permute.xlu1 %843 }
  0xe6   : > { %v842_v14 = vpop.permute.xlu0 %841  ;;  %v1293_v3 = vsel %vm1287_vm6, %v1276_v60, %v844_v19  ;;  %v567_v19 = vld [vmem:[#allocation2 + $0x74] sm:$0xff] }
  0xe7   : > { %791 = vrot.lane.b32.xlu1 %v550_v15, %s5153_s17  ;;  %v1292_v49 = vsel %vm1287_vm6, %v1275_v48, %v842_v14  ;;  %v568_v15 = vld [vmem:[#allocation2 + $0x7c] sm:$0xff] }
  0xe8   : > { %1207 = vrot.lane.b32.xlu0 %v533_v59, %s5160_s24  ;;  %v5593_v59 = vld [vmem:[#allocation2 + $0x79] sm:$0xff] }
  0xe9   : > { %v908_v22 = vpop.permute.xlu1 %907 }
  0xea   : > { %v906_v23 = vpop.permute.xlu0 %905  ;;  %v1310_v5 = vsel %vm1304_vm7, %v1293_v3, %v908_v22  ;;  %v583_v22 = vld [vmem:[#allocation2 + $0x75] sm:$0xff] }
  0xeb   : > { %855 = vrot.lane.b32.xlu1 %v566_v20, %s5154_s18  ;;  %v1309_v56 = vsel %vm1304_vm7, %v1292_v49, %v906_v23  ;;  %v5652_v49 = vld [vmem:[#allocation2 + $0x80] sm:$0xff] }
  0xec   : > { %853 = vrot.lane.b32.xlu0 %v565_v21, %s5154_s18  ;;  %v584_v21 = vld [vmem:[#allocation2 + $0x7d] sm:$0xff] }
  0xed   : > { %v972_v26 = vpop.permute.xlu1 %971 }
  0xee   : > { %v970_v27 = vpop.permute.xlu0 %969  ;;  %v1327_v50 = vsel %vm1321_vm8, %v1310_v5, %v972_v26  ;;  %v599_v26 = vld [vmem:[#allocation2 + $0x76] sm:$0xff] }
  0xef   : > { %919 = vrot.lane.b32.xlu1 %v582_v24, %s5155_s19  ;;  %v1326_v40 = vsel %vm1321_vm8, %v1309_v56, %v970_v27 }
  0xf0   : > { %917 = vrot.lane.b32.xlu0 %v581_v25, %s5155_s19  ;;  %v600_v25 = vld [vmem:[#allocation2 + $0x7e] sm:$0xff] }
  0xf1   : > { %v1036_v32 = vpop.permute.xlu1 %1035 }
  0xf2   : > { %v1034_v33 = vpop.permute.xlu0 %1033  ;;  %v1344_v54 = vsel %vm1338_vm9, %v1327_v50, %v1036_v32  ;;  %v615_v32 = vld [vmem:[#allocation2 + $0x77] sm:$0xff]  ;;  %v553_v50 = vld [vmem:[#allocation2 + $0x83] sm:$0xff] }
  0xf3   : > { %983 = vrot.lane.b32.xlu1 %v598_v29, %s5156_s20  ;;  %v1343_v57 = vsel %vm1338_vm9, %v1326_v40, %v1034_v33 }
  0xf4   : > { %981 = vrot.lane.b32.xlu0 %v597_v31, %s5156_s20  ;;  %v616_v31 = vld [vmem:[#allocation2 + $0x7f] sm:$0xff] }
  0xf5   : > { %v5563_v36 = vpop.permute.xlu1 %653 }
  0xf6   : > { %v1098_v37 = vpop.permute.xlu0 %1097 }
  0xf7   : > { %1047 = vrot.lane.b32.xlu1 %v614_v34, %s5157_s23  ;;  %v1360_v53 = vsel %vm1355_vm10, %v1343_v57, %v1098_v37  ;;  %v5640_v37 = vld [vmem:[#allocation2 + $0x78] sm:$0xff] }
  0xf8   : > { %1045 = vrot.lane.b32.xlu0 %v613_v35, %s5157_s23  ;;  %v521_v35 = vld [vmem:[#allocation2 + $0x81] sm:$0xff] }
  0xf9   : > { %v1148_v45 = vpop.permute.xlu1 %1147 }
  0xfa   : > { %v1100_v46 = vpop.permute.xlu0 %1099  ;;  %v1377_v63 = vsel %vm1372_vm11, %v1360_v53, %v1148_v45  ;;  %v537_v53 = vld [vmem:[#allocation2 + $0x82] sm:$0xff] }
  0xfb   : > { %665 = vrot.lane.b32.xlu1 %v519_v38, %s5152_s16  ;;  %v1361_v7 = vsel %vm1355_vm10, %v1344_v54, %v1100_v46  ;;  %v5691_v54 = vld [vmem:[#allocation2 + $0x8a] sm:$0xff] }
  0xfc   : > { %1109 = vrot.lane.b32.xlu0 %v5567_v41, %s5158_s21 }
  0xfd   : > { %v5582_v39 = vpop.permute.xlu1 %717 }
  0xfe   : > { %v5584_v51 = vpop.permute.xlu0 %655 }
  0xff   : > { %1159 = vrot.lane.b32.xlu1 %v5520_v61, %s5159_s26  ;;  %v1244_v62 = vsel %vm474_vm1, %v5425_v43, %v5584_v51 }
 0x100   : > { %1111 = vrot.lane.b32.xlu0 %v5579_v52, %s5158_s21 }
 0x101   : > { %v1198_v28 = vpop.permute.xlu1 %1197 }
 0x102   : > { %v1150_v1 = vpop.permute.xlu0 %1149  ;;  %v1394_v61 = vsel %vm1389_vm12, %v1377_v63, %v1198_v28 }
 0x103   : > { %729 = vrot.lane.b32.xlu1 %v535_v58, %s5151_s15  ;;  %4647 = vmatprep.mubr.msk.f32.mxu0 %vm1412_vm13, %v1394_v61  ;;  %v1378_v10 = vsel %vm1372_vm11, %v1361_v7, %v1150_v1 }
 0x104   : > { %667 = vrot.lane.b32.xlu0 %v5593_v59, %s5152_s16 }
 0x105   : > { %v782_v30 = vpop.permute.xlu1 %781 }
 0x106   : > { %v5610_v4 = vpop.permute.xlu0 %719 }
 0x107   : > { %1209 = vrot.lane.b32.xlu1 %v5545_v12, %s5160_s24  ;;  %v552_v12 = vld [vmem:[#allocation2 + $0x7b] sm:$0xff]  ;;  %v1261_v2 = vsel %vm1253_vm4, %v1244_v62, %v5610_v4  ;;  %v624_v62 = vld [vmem:[#allocation2 + $0x92] sm:$0xff] }
 0x108   : > { %1161 = vrot.lane.b32.xlu0 %v519_v38, %s5159_s26  ;;  %v1243_v38 = vsel %vm474_vm1, %v5379_v6, %v5563_v36 }
 0x109   : > { %v5621_v11 = vpop.permute.xlu1 %783  ;;  %v1260_v46 = vsel %vm1253_vm4, %v1243_v38, %v5582_v39 }
 0x10a   : > { %v1200_v13 = vpop.permute.xlu0 %1199  ;;  %v1277_v47 = vsel %vm1270_vm5, %v1260_v46, %v782_v30  ;;  %v1278_v61 = vsel %vm1270_vm5, %v1261_v2, %v5621_v11 }
 0x10b   : > { %v1395_v16 = vsel %vm1389_vm12, %v1378_v10, %v1200_v13  ;;  %793 = vrot.lane.b32.xlu1 %v551_v8, %s5153_s17 }
 0x10c   : > { %731 = vrot.lane.b32.xlu0 %v5618_v9, %s5151_s15  ;;  %4648 = vmatmul.mubr.msk.f32.gmra.mxu0 %vm1412_vm13, %v1395_v16 }
 0x10d   : > { %v848_v17 = vpop.permute.xlu1 %847 }
 0x10e   : > { %v846_v18 = vpop.permute.xlu0 %845  ;;  %v1295_v60 = vsel %vm1287_vm6, %v1278_v61, %v848_v17  ;;  %v569_v17 = vld [vmem:[#allocation2 + $0x84] sm:$0xff] }
 0x10f   : > { %795 = vrot.lane.b32.xlu1 %v552_v12, %s5153_s17  ;;  %v1294_v48 = vsel %vm1287_vm6, %v1277_v47, %v846_v18  ;;  %v570_v12 = vld [vmem:[#allocation2 + $0x8c] sm:$0xff] }
 0x110   : > { %1211 = vrot.lane.b32.xlu0 %v535_v58, %s5160_s24  ;;  %v5666_v58 = vld [vmem:[#allocation2 + $0x89] sm:$0xff] }
 0x111   : > { %v912_v14 = vpop.permute.xlu1 %911 }
 0x112   : > { %v910_v20 = vpop.permute.xlu0 %909  ;;  %v1312_v43 = vsel %vm1304_vm7, %v1295_v60, %v912_v14  ;;  %v585_v14 = vld [vmem:[#allocation2 + $0x85] sm:$0xff] }
 0x113   : > { %859 = vrot.lane.b32.xlu1 %v568_v15, %s5154_s18  ;;  %v1311_v56 = vsel %vm1304_vm7, %v1294_v48, %v910_v20 }
 0x114   : > { %857 = vrot.lane.b32.xlu0 %v567_v19, %s5154_s18  ;;  %v586_v19 = vld [vmem:[#allocation2 + $0x8d] sm:$0xff] }
 0x115   : > { %v976_v23 = vpop.permute.xlu1 %975 }
 0x116   : > { %v974_v24 = vpop.permute.xlu0 %973  ;;  %v1329_v5 = vsel %vm1321_vm8, %v1312_v43, %v976_v23  ;;  %v601_v23 = vld [vmem:[#allocation2 + $0x86] sm:$0xff] }
 0x117   : > { %923 = vrot.lane.b32.xlu1 %v584_v21, %s5155_s19  ;;  %v1328_v36 = vsel %vm1321_vm8, %v1311_v56, %v974_v24  ;;  %v622_v56 = vld [vmem:[#allocation2 + $0x91] sm:$0xff] }
 0x118   : > { %921 = vrot.lane.b32.xlu0 %v583_v22, %s5155_s19  ;;  %v602_v22 = vld [vmem:[#allocation2 + $0x8e] sm:$0xff] }
 0x119   : > { %v1040_v27 = vpop.permute.xlu1 %1039 }
 0x11a   : > { %v1038_v29 = vpop.permute.xlu0 %1037  ;;  %v1346_v30 = vsel %vm1338_vm9, %v1329_v5, %v1040_v27  ;;  %v617_v27 = vld [vmem:[#allocation2 + $0x87] sm:$0xff] }
 0x11b   : > { %987 = vrot.lane.b32.xlu1 %v600_v25, %s5156_s20  ;;  %v1345_v39 = vsel %vm1338_vm9, %v1328_v36, %v1038_v29 }
 0x11c   : > { %985 = vrot.lane.b32.xlu0 %v599_v26, %s5156_s20  ;;  %v618_v26 = vld [vmem:[#allocation2 + $0x8f] sm:$0xff] }
 0x11d   : > { %v5636_v33 = vpop.permute.xlu1 %657 }
 0x11e   : > { %v1102_v34 = vpop.permute.xlu0 %1101 }
 0x11f   : > { %1051 = vrot.lane.b32.xlu1 %v616_v31, %s5157_s23  ;;  %v1362_v57 = vsel %vm1355_vm10, %v1345_v39, %v1102_v34  ;;  %v620_v34 = vld [vmem:[#allocation2 + $0x90] sm:$0xff] }
 0x120   : > { %1049 = vrot.lane.b32.xlu0 %v615_v32, %s5157_s23  ;;  %v499_v32 = vld [vmem:[#allocation2 + $0x50] sm:$0xff] }
 0x121   : > { %v1152_v42 = vpop.permute.xlu1 %1151  ;;  %v1245_v38 = vsel %vm474_vm1, %v499_v32, %v5636_v33  ;;  %v2167_v32 = vld [vmem:[%s7033_s4 + $0xe8] sm:$0xff] }
 0x122   : > { %v1104_v45 = vpop.permute.xlu0 %1103  ;;  %v1379_v63 = vsel %vm1372_vm11, %v1362_v57, %v1152_v42 }
 0x123   : > { %669 = vrot.lane.b32.xlu1 %v521_v35, %s5152_s16  ;;  %v1363_v4 = vsel %vm1355_vm10, %v1346_v30, %v1104_v45 }
 0x124   : > { %1113 = vrot.lane.b32.xlu0 %v5640_v37, %s5158_s21 }
 0x125   : > { %v5655_v40 = vpop.permute.xlu1 %721 }
 0x126   : > { %v5657_v6 = vpop.permute.xlu0 %659  ;;  %v1262_v46 = vsel %vm1253_vm4, %v1245_v38, %v5655_v40  ;;  %v2151_v38 = vld [vmem:[%s7033_s4 + $0x68] sm:$0xff] }
 0x127   : > { %1163 = vrot.lane.b32.xlu1 %v5593_v59, %s5159_s26 }
 0x128   : > { %1115 = vrot.lane.b32.xlu0 %v5652_v49, %s5158_s21 }
 0x129   : > { %v1202_v28 = vpop.permute.xlu1 %1201 }
 0x12a   : > { %v1154_v1 = vpop.permute.xlu0 %1153  ;;  %v1396_v59 = vsel %vm1389_vm12, %v1379_v63, %v1202_v28  ;;  %v1246_v63 = vsel %vm474_vm1, %v5494_v44, %v5657_v6 }
 0x12b   : > { %733 = vrot.lane.b32.xlu1 %v537_v53, %s5151_s15  ;;  %4650 = vmatprep.mubr.msk.f32.mxu0 %vm1412_vm13, %v1396_v59  ;;  %v1380_v7 = vsel %vm1372_vm11, %v1363_v4, %v1154_v1 }
 0x12c   : > { %671 = vrot.lane.b32.xlu0 %v5666_v58, %s5152_s16  ;;  %s5161_s16 = smov 64  }
 0x12d   : > { %v786_v51 = vpop.permute.xlu1 %785 }
 0x12e   : > { %v5683_v3 = vpop.permute.xlu0 %723  ;;  %v1279_v47 = vsel %vm1270_vm5, %v1262_v46, %v786_v51 }
 0x12f   : > { %1213 = vrot.lane.b32.xlu1 %v5618_v9, %s5160_s24  ;;  %v554_v9 = vld [vmem:[#allocation2 + $0x8b] sm:$0xff]  ;;  %v1263_v59 = vsel %vm1253_vm4, %v1246_v63, %v5683_v3 }
 0x130   : > { %1165 = vrot.lane.b32.xlu0 %v521_v35, %s5159_s26  ;;  %v5711_v35 = vld [vmem:[#allocation2 + $0x88] sm:$0xff] }
 0x131   : > { %v5694_v8 = vpop.permute.xlu1 %787 }
 0x132   : > { %v1204_v10 = vpop.permute.xlu0 %1203  ;;  %v1280_v60 = vsel %vm1270_vm5, %v1263_v59, %v5694_v8 }
 0x133   : > { %v1397_v11 = vsel %vm1389_vm12, %v1380_v7, %v1204_v10  ;;  %797 = vrot.lane.b32.xlu1 %v553_v50, %s5153_s17 }
 0x134   : > { %735 = vrot.lane.b32.xlu0 %v5691_v54, %s5151_s15  ;;  %4651 = vmatmul.mubr.msk.f32.gmra.mxu0 %vm1412_vm13, %v1397_v11  ;;  %s7044_s15 = sshll.u32 %s7046_s27, 6 }
 0x135   : > { %v852_v13 = vpop.permute.xlu1 %851 }
 0x136   : > { %v850_v16 = vpop.permute.xlu0 %849 }
 0x137   : > { %799 = vrot.lane.b32.xlu1 %v554_v9, %s5153_s17  ;;  %v1296_v48 = vsel %vm1287_vm6, %v1279_v47, %v850_v16 }
 0x138   : > { %1215 = vrot.lane.b32.xlu0 %v537_v53, %s5160_s24 }
 0x139   : > { %v916_v18 = vpop.permute.xlu1 %915 }
 0x13a   : > { %v914_v15 = vpop.permute.xlu0 %913 }
 0x13b   : > { %863 = vrot.lane.b32.xlu1 %v570_v12, %s5154_s18  ;;  %v1313_v36 = vsel %vm1304_vm7, %v1296_v48, %v914_v15 }
 0x13c   : > { %861 = vrot.lane.b32.xlu0 %v569_v17, %s5154_s18  ;;  %v2169_v17 = vld [vmem:[%s7033_s4 + $0xf8] sm:$0xff] }
 0x13d   : > { %v980_v20 = vpop.permute.xlu1 %979  ;;  %4419 = vmatprep.subr.mxu1 %v2169_v17 }
 0x13e   : > { %v978_v21 = vpop.permute.xlu0 %977 }
 0x13f   : > { %927 = vrot.lane.b32.xlu1 %v586_v19, %s5155_s19  ;;  %v1330_v33 = vsel %vm1321_vm8, %v1313_v36, %v978_v21  ;;  %v2150_v36 = vld [vmem:[%s7033_s4 + $0x60] sm:$0xff] }
 0x140   : > { %925 = vrot.lane.b32.xlu0 %v585_v14, %s5155_s19 }
 0x141   : > { %v1044_v24 = vpop.permute.xlu1 %1043 }
 0x142   : > { %v1042_v25 = vpop.permute.xlu0 %1041 }
 0x143   : > { %991 = vrot.lane.b32.xlu1 %v602_v22, %s5156_s20  ;;  %v1347_v53 = vsel %vm1338_vm9, %v1330_v33, %v1042_v25  ;;  %v2168_v25 = vld [vmem:[%s7033_s4 + $0xf0] sm:$0xff] }
 0x144   : > { %989 = vrot.lane.b32.xlu0 %v601_v23, %s5156_s20  ;;  %s6961_s20 = scalar_lea.vmem %s7042_s13, %s7044_s15 }
 0x145   : > { %v662_v29 = vpop.permute.xlu1 %661 }
 0x146   : > { %v1106_v31 = vpop.permute.xlu0 %1105  ;;  %v1247_v14 = vsel %vm474_vm1, %v5506_v55, %v662_v29  ;;  %v2152_v55 = vld [vmem:[%s7033_s4 + $0x70] sm:$0xff] }
 0x147   : > { %1055 = vrot.lane.b32.xlu1 %v618_v26, %s5157_s23  ;;  %v1364_v40 = vsel %vm1355_vm10, %v1347_v53, %v1106_v31  ;;  %v5800_v53 = vld [vmem:[%s7031_s2] ss:$0 sm:$0xff] }
 0x148   : > { %1053 = vrot.lane.b32.xlu0 %v617_v27, %s5157_s23 }
 0x149   : > { %v1156_v42 = vpop.permute.xlu1 %1155 }
 0x14a   : > { %v1108_v45 = vpop.permute.xlu0 %1107  ;;  %v1381_v28 = vsel %vm1372_vm11, %v1364_v40, %v1156_v42  ;;  %v2149_v40 = vld [vmem:[%s7033_s4 + $0x58] sm:$0xff] }
 0x14b   : > { %1119 = vrot.lane.b32.xlu1 %v620_v34, %s5158_s21 }
 0x14c   : > { %1117 = vrot.lane.b32.xlu0 %v5711_v35, %s5158_s21 }
 0x14d   : > { %v726_v39 = vpop.permute.xlu1 %725 }
 0x14e   : > { %v5723_v57 = vpop.permute.xlu0 %663  ;;  %v1264_v22 = vsel %vm1253_vm4, %v1247_v14, %v726_v39  ;;  %v2159_v14 = vld [vmem:[%s7033_s4 + $0xa8] sm:$0xff] }
 0x14f   : > { %1169 = vrot.lane.b32.xlu1 %v622_v56, %s5159_s26  ;;  %v1248_v46 = vsel %vm474_vm1, %v5567_v41, %v5723_v57  ;;  %v2165_v41 = vld [vmem:[%s7033_s4 + $0xd8] sm:$0xff] }
 0x150   : > { %1167 = vrot.lane.b32.xlu0 %v5666_v58, %s5159_s26  ;;  %v1297_v58 = vsel %vm1287_vm6, %v1280_v60, %v852_v13 }
 0x151   : > { %v1206_v1 = vpop.permute.xlu1 %1205  ;;  %v1314_v44 = vsel %vm1304_vm7, %v1297_v58, %v916_v18  ;;  %v2153_v18 = vld [vmem:[%s7033_s4 + $0x78] sm:$0xff]  ;;  %v2148_v58 = vld [vmem:[%s7033_s4 + $0x50] sm:$0xff] }
 0x152   : > { %v1158_v2 = vpop.permute.xlu0 %1157  ;;  %v1398_v61 = vsel %vm1389_vm12, %v1381_v28, %v1206_v1  ;;  %v1331_v51 = vsel %vm1321_vm8, %v1314_v44, %v980_v20  ;;  %4420 = vmatpush3.msra.mxu1 %v2153_v18  ;;  %v5814_v28 = vld [vmem:[%s7032_s3] ss:$0 sm:$0xff]  ;;  %v2164_v1 = vld [vmem:[%s7033_s4 + $0xd0] sm:$0xff] }
 0x153   : > { %1219 = vrot.lane.b32.xlu1 %v624_v62, %s5160_s24  ;;  %4653 = vmatprep.mubr.msk.f32.mxu0 %vm1412_vm13, %v1398_v61  ;;  %v1348_v3 = vsel %vm1338_vm9, %v1331_v51, %v1044_v24 }
 0x154   : > { %1217 = vrot.lane.b32.xlu0 %v5691_v54, %s5160_s24  ;;  %v1365_v5 = vsel %vm1355_vm10, %v1348_v3, %v1108_v45  ;;  %4421 = vmatprep.subr.mxu1 %v2168_v25  ;;  %v2166_v45 = vld [vmem:[%s7033_s4 + $0xe0] sm:$0xff]  ;;  %v2157_v25 = vld [vmem:[%s7033_s4 + $0x98] sm:$0xff]  ;;  %s5162_s24 = smov 96  }
 0x155   : > { %v790_v6 = vpop.permute.xlu1 %789  ;;  %v1382_v30 = vsel %vm1372_vm11, %v1365_v5, %v1158_v2  ;;  %4422 = vmatpush3.msra.mxu1 %v2152_v55  ;;  %v2156_v55 = vld [vmem:[%s7033_s4 + $0x90] sm:$0xff] }
 0x156   : > { %v728_v43 = vpop.permute.xlu0 %727  ;;  %v1281_v23 = vsel %vm1270_vm5, %v1264_v22, %v790_v6  ;;  %4423 = vmatprep.subr.mxu1 %v2167_v32 }
 0x157   : > { %4424 = vmatpush3.msra.mxu1 %v2151_v38  ;;  %v1265_v39 = vsel %vm1253_vm4, %v1248_v46, %v728_v43  ;;  %v2163_v43 = vld [vmem:[%s7033_s4 + $0xc8] sm:$0xff]  ;;  %v2154_v46 = vld [vmem:[%s7033_s4 + $0x80] sm:$0xff] }
 0x158   : > { %4425 = vmatprep.subr.mxu1 %v2166_v45  ;;  %v2139_v45 = vld [vmem:[%s7033_s4 + $0x8] sm:$0xff] }
 0x159   : > { %v792_v4 = vpop.permute.xlu1 %791  ;;  %4426 = vmatpush3.msra.mxu1 %v2150_v36 }
 0x15a   : > { %v1208_v50 = vpop.permute.xlu0 %1207  ;;  %v1282_v57 = vsel %vm1270_vm5, %v1265_v39, %v792_v4  ;;  %4427 = vmatprep.subr.mxu1 %v2165_v41 }
 0x15b   : > { %v1399_v54 = vsel %vm1389_vm12, %v1382_v30, %v1208_v50  ;;  %4428 = vmatpush3.msra.mxu1 %v2149_v40  ;;  %v2147_v30 = vld [vmem:[%s7033_s4 + $0x48] sm:$0xff]  ;;  %v2162_v50 = vld [vmem:[%s7033_s4 + $0xc0] sm:$0xff] }
 0x15c   : > { %4654 = vmatmul.mubr.msk.f32.gmra.mxu0 %vm1412_vm13, %v1399_v54  ;;  %4429 = vmatprep.subr.mxu1 %v2164_v1 }
 0x15d   : > { %v856_v7 = vpop.permute.xlu1 %855  ;;  %4430 = vmatpush3.msra.mxu1 %v2148_v58 }
 0x15e   : > { %v854_v8 = vpop.permute.xlu0 %853  ;;  %v1299_v62 = vsel %vm1287_vm6, %v1282_v57, %v856_v7  ;;  %4431 = vmatprep.subr.mxu1 %v2163_v43 }
 0x15f   : > { %v1298_v24 = vsel %vm1287_vm6, %v1281_v23, %v854_v8  ;;  %4432 = vmatpush3.msra.mxu1 %v2147_v30 }
 0x160   : > { %4433 = vmatprep.subr.mxu1 %v2162_v50 }
 0x161   : > { %v920_v10 = vpop.permute.xlu1 %919 }
 0x162   : > { %v918_v11 = vpop.permute.xlu0 %917  ;;  %v1316_v2 = vsel %vm1304_vm7, %v1299_v62, %v920_v10 }
 0x163   : > { %v1315_v26 = vsel %vm1304_vm7, %v1298_v24, %v918_v11  ;;  %v2146_v11 = vld [vmem:[%s7033_s4 + $0x40] sm:$0xff] }
 0x164   : > { %4434 = vmatpush3.msra.mxu1 %v2146_v11  ;;  %v2142_v24 = vld [vmem:[%s7033_s4 + $0x20] sm:$0xff] }
 0x165   : > { %v984_v9 = vpop.permute.xlu1 %983 }
 0x166   : > { %v982_v13 = vpop.permute.xlu0 %981  ;;  %v1333_v44 = vsel %vm1321_vm8, %v1316_v2, %v984_v9 }
 0x167   : > { %v1332_v29 = vsel %vm1321_vm8, %v1315_v26, %v982_v13  ;;  %v2161_v13 = vld [vmem:[%s7033_s4 + $0xb8] sm:$0xff] }
 0x168   : > { %4435 = vmatprep.subr.mxu1 %v2161_v13  ;;  %v2141_v26 = vld [vmem:[%s7033_s4 + $0x18] sm:$0xff] }
 0x169   : > { %v1048_v16 = vpop.permute.xlu1 %1047 }
 0x16a   : > { %v1046_v12 = vpop.permute.xlu0 %1045  ;;  %v1350_v51 = vsel %vm1338_vm9, %v1333_v44, %v1048_v16  ;;  %v2145_v16 = vld [vmem:[%s7033_s4 + $0x38] sm:$0xff] }
 0x16b   : > { %v1349_v34 = vsel %vm1338_vm9, %v1332_v29, %v1046_v12  ;;  %4436 = vmatpush3.msra.mxu1 %v2145_v16  ;;  %v2160_v12 = vld [vmem:[%s7033_s4 + $0xb0] sm:$0xff] }
 0x16c   : > { %4437 = vmatprep.subr.mxu1 %v2160_v12  ;;  %v2140_v29 = vld [vmem:[%s7033_s4 + $0x10] sm:$0xff] }
 0x16d   : > { %v5758_v15 = vpop.permute.xlu1 %665 }
 0x16e   : > { %v1110_v19 = vpop.permute.xlu0 %1109  ;;  %v1249_v62 = vsel %vm474_vm1, %v5579_v52, %v5758_v15 }
 0x16f   : > { %v1366_v42 = vsel %vm1355_vm10, %v1349_v34, %v1110_v19  ;;  %v2144_v19 = vld [vmem:[%s7033_s4 + $0x30] sm:$0xff] }
 0x170   : > { %4438 = vmatpush3.msra.mxu1 %v2144_v19 }
 0x171   : > { %v1160_v20 = vpop.permute.xlu1 %1159  ;;  %4439 = vmatprep.subr.mxu1 %v2159_v14 }
 0x172   : > { %v1112_v21 = vpop.permute.xlu0 %1111  ;;  %v1383_v47 = vsel %vm1372_vm11, %v1366_v42, %v1160_v20  ;;  %v2143_v20 = vld [vmem:[%s7033_s4 + $0x28] sm:$0xff] }
 0x173   : > { %v1367_v4 = vsel %vm1355_vm10, %v1350_v51, %v1112_v21  ;;  %4440 = vmatpush3.msra.mxu1 %v2143_v20  ;;  %v2158_v21 = vld [vmem:[%s7033_s4 + $0xa0] sm:$0xff]  ;;  %v2155_v42 = vld [vmem:[%s7033_s4 + $0x88] sm:$0xff] }
 0x174   : > { %4441 = vmatprep.subr.mxu1 %v2158_v21 }
 0x175   : > { %v5769_v27 = vpop.permute.xlu1 %729  ;;  %4442 = vmatpush3.msra.mxu1 %v2142_v24 }
 0x176   : > { %v5771_v31 = vpop.permute.xlu0 %667  ;;  %4443 = vmatprep.subr.mxu1 %v2157_v25  ;;  %v1266_v58 = vsel %vm1253_vm4, %v1249_v62, %v5769_v27 }
 0x177   : > { %4444 = vmatpush3.msra.mxu1 %v2141_v26 }
 0x178   : > { %4445 = vmatprep.subr.mxu1 %v2156_v55 }
 0x179   : > { %v1210_v48 = vpop.permute.xlu1 %1209  ;;  %4446 = vmatpush3.msra.mxu1 %v2140_v29 }
 0x17a   : > { %v1162_v56 = vpop.permute.xlu0 %1161  ;;  %v1400_v33 = vsel %vm1389_vm12, %v1383_v47, %v1210_v48  ;;  %4447 = vmatprep.subr.mxu1 %v2155_v42  ;;  %v2138_v47 = vld [vmem:[%s7033_s4] sm:$0xff] }
 0x17b   : > { %4656 = vmatprep.mubr.msk.f32.mxu0 %vm1412_vm13, %v1400_v33  ;;  %v1384_v54 = vsel %vm1372_vm11, %v1367_v4, %v1162_v56  ;;  %4448 = vmatpush3.msra.mxu1 %v2139_v45 }
 0x17c   : > { %v4643_v63 = vpop.f32.mrf.mxu0  ;;  %4449 = vmatprep.subr.mxu1 %v2154_v46 }
 0x17d   : > { %v1618_v59 = vmul.f32 %v4643_v63, %v5800_v53  ;;  %v5821_v61 = vpop.permute.xlu1 %793  ;;  %4450 = vmatpush3.msra.mxu1 %v2138_v47 }
 0x17e   : > { %v5823_v60 = vpop.permute.xlu0 %731  ;;  %v1531_v6 = vpop.f32.mrf.mxu0 }
 0x17f   : > { %v1641_v3 = vadd.f32 %v5814_v28, %v1618_v59  ;;  %v1617_v5 = vmul.f32 %v5800_v53, %v1531_v6  ;;  %v1283_v6 = vsel %vm1270_vm5, %v1266_v58, %v5821_v61  ;;  %v1250_v61 = vsel %vm474_vm1, %v5640_v37, %v5771_v31 }
 0x181   : > { %5046 = vtanh.f32 %v1641_v3  ;;  %v1640_v7 = vadd.f32 %v5814_v28, %v1617_v5  ;;  %v5844_v8 = vpop.permute.xlu1 %795 }
 0x182   : > { %v1212_v10 = vpop.permute.xlu0 %1211 }
 0x183   : > { %v1401_v9 = vsel %vm1389_vm12, %v1384_v54, %v1212_v10  ;;  %5048 = vtanh.f32 %v1640_v7  ;;  %v1267_v54 = vsel %vm1253_vm4, %v1250_v61, %v5823_v60 }
 0x184   : > { %4657 = vmatmul.mubr.msk.f32.gmra.mxu0 %vm1412_vm13, %v1401_v9  ;;  %v1284_v10 = vsel %vm1270_vm5, %v1267_v54, %v5844_v8 }
 0x185   : > { %v5860_v17 = vpop.permute.xlu1 %859 }
 0x186   : > { %v858_v18 = vpop.permute.xlu0 %857  ;;  %v1301_v11 = vsel %vm1287_vm6, %v1284_v10, %v5860_v17 }
 0x187   : > { %v1300_v43 = vsel %vm1287_vm6, %v1283_v6, %v858_v18 }
 0x189   : > { %v5874_v22 = vpop.permute.xlu1 %923 }
 0x18a   : > { %v922_v23 = vpop.permute.xlu0 %921  ;;  %v1318_v37 = vsel %vm1304_vm7, %v1301_v11, %v5874_v22 }
 0x18b   : > { %v1317_v52 = vsel %vm1304_vm7, %v1300_v43, %v922_v23 }
 0x18d   : > { %v988_v32 = vpop.permute.xlu1 %987 }
 0x18e   : > { %v986_v34 = vpop.permute.xlu0 %985  ;;  %v5047_v38 = vpop.eup %5046  ;;  %v1335_v60 = vsel %vm1321_vm8, %v1318_v37, %v988_v32 }
 0x18f   : > { %1673 = vst.msk [vmem:[#allocation2 + $0xd] sm:$0xff] %vm452_vm2, %v5047_v38  ;;  %v1334_v3 = vsel %vm1321_vm8, %v1317_v52, %v986_v34 }
 0x190   : > { %v5049_v48 = vpop.eup %5048 }
 0x191   : > { %1672 = vst.msk [vmem:[#allocation2 + $0x5] sm:$0xff] %vm452_vm2, %v5049_v48  ;;  %v1052_v56 = vpop.permute.xlu1 %1051 }
 0x192   : > { %v1050_v36 = vpop.permute.xlu0 %1049  ;;  %v1352_v18 = vsel %vm1338_vm9, %v1335_v60, %v1052_v56 }
 0x193   : > { %v1351_v5 = vsel %vm1338_vm9, %v1334_v3, %v1050_v36 }
 0x195   : > { %v5905_v39 = vpop.permute.xlu1 %669 }
 0x196   : > { %v1114_v33 = vpop.permute.xlu0 %1113  ;;  %v1251_v46 = vsel %vm474_vm1, %v5652_v49, %v5905_v39 }
 0x197   : > { %v1368_v27 = vsel %vm1355_vm10, %v1351_v5, %v1114_v33 }
 0x198   : > { %v1705_v41 = vld [vmem:[#allocation2 + $0xa] sm:$0xff]  ;;  %v1704_v40 = vld [vmem:[#allocation2 + $0x2] sm:$0xff] }
 0x199   : > { %v1737_v57 = vld [vmem:[#allocation2 + $0xc] sm:$0xff]  ;;  %v1164_v63 = vpop.permute.xlu1 %1163  ;;  %v1736_v59 = vld [vmem:[#allocation2 + $0x4] sm:$0xff] }
 0x19a   : > { %v1116_v1 = vpop.permute.xlu0 %1115  ;;  %v4776_v2 = vpack.i.bf16 %v1705_v41, %v1737_v57  ;;  %v4771_v44 = vpack.i.bf16 %v1704_v40, %v1736_v59  ;;  %v1385_v30 = vsel %vm1372_vm11, %v1368_v27, %v1164_v63 }
 0x19b   : > { %v1369_v14 = vsel %vm1355_vm10, %v1352_v18, %v1116_v1 }
 0x19c   : > { %4777 = vrot.lane.b32.xlu1 %v4776_v2, %s5161_s16  ;;  %4772 = vrot.lane.b32.xlu0 %v4771_v44, %s5161_s16 }
 0x19d   : > { %v734_v15 = vpop.permute.xlu1 %733 }
 0x19e   : > { %v672_v51 = vpop.permute.xlu0 %671  ;;  %v1268_v36 = vsel %vm1253_vm4, %v1251_v46, %v734_v15 }
 0x19f   : > { %v1252_v47 = vsel %vm474_vm1, %v5711_v35, %v672_v51  ;;  %vm4234_vm1 = vcmask 15360  }
 0x1a1   : > { %v1214_v4 = vpop.permute.xlu1 %1213 }
 0x1a2   : > { %v1166_v50 = vpop.permute.xlu0 %1165  ;;  %v1402_v7 = vsel %vm1389_vm12, %v1385_v30, %v1214_v4 }
 0x1a3   : > { %4659 = vmatprep.mubr.msk.f32.mxu0 %vm1412_vm13, %v1402_v7  ;;  %v1386_v17 = vsel %vm1372_vm11, %v1369_v14, %v1166_v50 }
 0x1a4   : > { %v4646_v9 = vpop.f32.mrf.mxu0 }
 0x1a5   : > { %v1620_v31 = vmul.f32 %v4646_v9, %v5800_v53  ;;  %v798_v13 = vpop.permute.xlu1 %797 }
 0x1a6   : > { %v736_v16 = vpop.permute.xlu0 %735  ;;  %v1541_v12 = vpop.f32.mrf.mxu0  ;;  %v1285_v41 = vsel %vm1270_vm5, %v1268_v36, %v798_v13 }
 0x1a7   : > { %v1643_v8 = vadd.f32 %v5814_v28, %v1620_v31  ;;  %v1619_v19 = vmul.f32 %v5800_v53, %v1541_v12  ;;  %v1269_v33 = vsel %vm1253_vm4, %v1252_v47, %v736_v16 }
 0x1a9   : > { %5050 = vtanh.f32 %v1643_v8  ;;  %v1642_v20 = vadd.f32 %v5814_v28, %v1619_v19  ;;  %v800_v21 = vpop.permute.xlu1 %799 }
 0x1aa   : > { %v1216_v22 = vpop.permute.xlu0 %1215  ;;  %v1286_v57 = vsel %vm1270_vm5, %v1269_v33, %v800_v21 }
 0x1ab   : > { %v1403_v23 = vsel %vm1389_vm12, %v1386_v17, %v1216_v22  ;;  %5052 = vtanh.f32 %v1642_v20 }
 0x1ac   : > { %4660 = vmatmul.mubr.msk.f32.gmra.mxu0 %vm1412_vm13, %v1403_v23 }
 0x1ad   : > { %v864_v24 = vpop.permute.xlu1 %863 }
 0x1ae   : > { %v862_v25 = vpop.permute.xlu0 %861  ;;  %v1303_v40 = vsel %vm1287_vm6, %v1286_v57, %v864_v24 }
 0x1af   : > { %v1302_v62 = vsel %vm1287_vm6, %v1285_v41, %v862_v25 }
 0x1b1   : > { %v928_v26 = vpop.permute.xlu1 %927 }
 0x1b2   : > { %v926_v55 = vpop.permute.xlu0 %925  ;;  %v1320_v39 = vsel %vm1304_vm7, %v1303_v40, %v928_v26  ;;  %v1721_v40 = vld [vmem:[#allocation2 + $0xb] sm:$0xff] }
 0x1b3   : > { %v1319_v35 = vsel %vm1304_vm7, %v1302_v62, %v926_v55 }
 0x1b5   : > { %v992_v29 = vpop.permute.xlu1 %991 }
 0x1b6   : > { %v990_v32 = vpop.permute.xlu0 %989  ;;  %v5051_v34 = vpop.eup %5050  ;;  %v1337_v6 = vsel %vm1321_vm8, %v1320_v39, %v992_v29 }
 0x1b7   : > { %1675 = vst.msk [vmem:[#allocation2 + $0x1d] sm:$0xff] %vm452_vm2, %v5051_v34  ;;  %v1336_v43 = vsel %vm1321_vm8, %v1319_v35, %v990_v32 }
 0x1b8   : > { %v5053_v38 = vpop.eup %5052 }
 0x1b9   : > { %1674 = vst.msk [vmem:[#allocation2 + $0x15] sm:$0xff] %vm452_vm2, %v5053_v38  ;;  %v1056_v42 = vpop.permute.xlu1 %1055 }
 0x1ba   : > { %v1054_v45 = vpop.permute.xlu0 %1053  ;;  %v1354_v15 = vsel %vm1338_vm9, %v1337_v6, %v1056_v42  ;;  %v1720_v42 = vld [vmem:[#allocation2 + $0x3] sm:$0xff] }
 0x1bb   : > { %v1353_v51 = vsel %vm1338_vm9, %v1336_v43, %v1054_v45  ;;  %v1688_v45 = vld [vmem:[#allocation2 + $0x1] sm:$0xff] }
 0x1bd   : > { %v1120_v48 = vpop.permute.xlu1 %1119 }
 0x1be   : > { %v1118_v56 = vpop.permute.xlu0 %1117  ;;  %v1371_v3 = vsel %vm1355_vm10, %v1354_v15, %v1120_v48 }
 0x1bf   : > { %v1370_v5 = vsel %vm1355_vm10, %v1353_v51, %v1118_v56 }
 0x1c0   : > { %v1707_v63 = vld [vmem:[#allocation2 + $0x1a] sm:$0xff]  ;;  %v1706_v49 = vld [vmem:[#allocation2 + $0x12] sm:$0xff] }
 0x1c1   : > { %v1739_v1 = vld [vmem:[#allocation2 + $0x1c] sm:$0xff]  ;;  %v1170_v2 = vpop.permute.xlu1 %1169  ;;  %v1738_v44 = vld [vmem:[#allocation2 + $0x14] sm:$0xff] }
 0x1c2   : > { %v1168_v59 = vpop.permute.xlu0 %1167  ;;  %v4786_v58 = vpack.i.bf16 %v1707_v63, %v1739_v1  ;;  %v4781_v52 = vpack.i.bf16 %v1706_v49, %v1738_v44  ;;  %v1388_v27 = vsel %vm1372_vm11, %v1371_v3, %v1170_v2  ;;  %v5993_v1 = vld [vmem:[#allocation2 + $0x9] sm:$0xff] }
 0x1c3   : > { %v1387_v61 = vsel %vm1372_vm11, %v1370_v5, %v1168_v59 }
 0x1c4   : > { %4787 = vrot.lane.b32.xlu1 %v4786_v58, %s5161_s16  ;;  %4782 = vrot.lane.b32.xlu0 %v4781_v52, %s5161_s16 }
 0x1c5   : > { %v1220_v30 = vpop.permute.xlu1 %1219 }
 0x1c6   : > { %v1218_v4 = vpop.permute.xlu0 %1217  ;;  %v1405_v50 = vsel %vm1389_vm12, %v1388_v27, %v1220_v30 }
 0x1c7   : > { %v1404_v54 = vsel %vm1389_vm12, %v1387_v61, %v1218_v4  ;;  %v1722_v4 = vld [vmem:[#allocation2 + $0x13] sm:$0xff] }
 0x1c8   : > { %4662 = vmatprep.mubr.msk.f32.mxu0 %vm1412_vm13, %v1404_v54 }
 0x1c9   : > { %4663 = vmatmul.mubr.msk.f32.gmra.mxu0 %vm1412_vm13, %v1405_v50  ;;  %v6003_v50 = vld [vmem:[#allocation2 + $0x11] sm:$0xff] }
 0x1cc   : > { %v4649_v7 = vpop.f32.mrf.mxu0 }
 0x1cd   : > { %v1622_v10 = vmul.f32 %v4649_v7, %v5800_v53 }
 0x1ce   : > { %v1551_v11 = vpop.f32.mrf.mxu0 }
 0x1cf   : > { %v1645_v9 = vadd.f32 %v5814_v28, %v1622_v10  ;;  %v1621_v37 = vmul.f32 %v5800_v53, %v1551_v11 }
 0x1d1   : > { %5054 = vtanh.f32 %v1645_v9  ;;  %v1644_v31 = vadd.f32 %v5814_v28, %v1621_v37 }
 0x1d3   : > { %5056 = vtanh.f32 %v1644_v31  ;;  %v1723_v31 = vld [vmem:[#allocation2 + $0x1b] sm:$0xff] }
 0x1de   : > { %v5055_v13 = vpop.eup %5054 }
 0x1df   : > { %1677 = vst.msk [vmem:[#allocation2 + $0x2d] sm:$0xff] %vm452_vm2, %v5055_v13 }
 0x1e0   : > { %v5057_v16 = vpop.eup %5056 }
 0x1e1   : > { %1676 = vst.msk [vmem:[#allocation2 + $0x25] sm:$0xff] %vm452_vm2, %v5057_v16  ;;  %v6011_v16 = vld [vmem:[#allocation2 + $0x19] sm:$0xff] }
 0x1e8   : > { %v1709_v60 = vld [vmem:[#allocation2 + $0x2a] sm:$0xff]  ;;  %v1708_v18 = vld [vmem:[#allocation2 + $0x22] sm:$0xff] }
 0x1e9   : > { %v1741_v12 = vld [vmem:[#allocation2 + $0x2c] sm:$0xff]  ;;  %v1740_v19 = vld [vmem:[#allocation2 + $0x24] sm:$0xff] }
 0x1ea   : > { %v4796_v8 = vpack.i.bf16 %v1709_v60, %v1741_v12  ;;  %v4791_v14 = vpack.i.bf16 %v1708_v18, %v1740_v19 }
 0x1ec   : > { %4797 = vrot.lane.b32.xlu1 %v4796_v8, %s5161_s16  ;;  %4792 = vrot.lane.b32.xlu0 %v4791_v14, %s5161_s16 }
 0x1f4   : > { %v4652_v17 = vpop.f32.mrf.mxu0 }
 0x1f5   : > { %v1624_v20 = vmul.f32 %v4652_v17, %v5800_v53 }
 0x1f6   : > { %v1561_v21 = vpop.f32.mrf.mxu0 }
 0x1f7   : > { %v1647_v22 = vadd.f32 %v5814_v28, %v1624_v20  ;;  %v1623_v23 = vmul.f32 %v5800_v53, %v1561_v21 }
 0x1f9   : > { %5058 = vtanh.f32 %v1647_v22  ;;  %v1646_v24 = vadd.f32 %v5814_v28, %v1623_v23 }
 0x1fb   : > { %5060 = vtanh.f32 %v1646_v24  ;;  %v2209_v24 = vld [vmem:[%s7033_s4 + $0x238] sm:$0xff] }
 0x1fc   : > { %4665 = vmatprep.subr.mxu1 %v2209_v24 }
 0x206   : > { %v5059_v25 = vpop.eup %5058 }
 0x207   : > { %1679 = vst.msk [vmem:[#allocation2 + $0x3d] sm:$0xff] %vm452_vm2, %v5059_v25  ;;  %v2208_v25 = vld [vmem:[%s7033_s4 + $0x230] sm:$0xff] }
 0x208   : > { %v5061_v26 = vpop.eup %5060 }
 0x209   : > { %1678 = vst.msk [vmem:[#allocation2 + $0x35] sm:$0xff] %vm452_vm2, %v5061_v26 }
 0x20e   : > { %v4778_v55 = vpop.permute.xlu1 %4777  ;;  %v4773_v29 = vpop.permute.xlu0 %4772 }
 0x20f   : > { %v4779_v32 = vunpack.i.l.bf16 %v4778_v55  ;;  %v4775_v34 = vunpack.i.h.bf16 %v4773_v29  ;;  %v4774_v38 = vunpack.i.l.bf16 %v4773_v29  ;;  %v4780_v57 = vunpack.i.h.bf16 %v4778_v55 }
 0x210   : > { %v1711_v46 = vld [vmem:[#allocation2 + $0x3a] sm:$0xff]  ;;  %v1710_v48 = vld [vmem:[#allocation2 + $0x32] sm:$0xff] }
 0x211   : > { %v1743_v47 = vld [vmem:[#allocation2 + $0x3c] sm:$0xff]  ;;  %v2090_v56 = vsel %vm452_vm2, %v1720_v42, %v4774_v38  ;;  %v2074_v36 = vsel %vm452_vm2, %v1688_v45, %v4775_v34  ;;  %v1742_v41 = vld [vmem:[#allocation2 + $0x34] sm:$0xff]  ;;  %v2091_v63 = vsel %vm452_vm2, %v1721_v40, %v4779_v32  ;;  %v2075_v49 = vsel %vm452_vm2, %v5993_v1, %v4780_v57  ;;  %v2207_v57 = vld [vmem:[%s7033_s4 + $0x228] sm:$0xff] }
 0x212   : > { %v4806_v33 = vpack.i.bf16 %v1711_v46, %v1743_v47  ;;  %2322 = vmatprep.mubr.f32.mxu1 %v2090_v56  ;;  %v4801_v62 = vpack.i.bf16 %v1710_v48, %v1742_v41  ;;  %v1724_v42 = vld [vmem:[#allocation2 + $0x23] sm:$0xff]  ;;  %v1725_v41 = vld [vmem:[#allocation2 + $0x2b] sm:$0xff] }
 0x213   : > { %2323 = vmatmul.mubr.f32.vlgmr.msra.gmra.mxu1 %v2074_v36  ;;  %v6027_v45 = vld [vmem:[#allocation2 + $0x21] sm:$0xff] }
 0x214   : > { %4807 = vrot.lane.b32.xlu1 %v4806_v33, %s5161_s16  ;;  %2327 = vmatprep.mubr.f32.mxu1 %v2091_v63 }
 0x215   : > { %4802 = vrot.lane.b32.xlu0 %v4801_v62, %s5161_s16  ;;  %4666 = vmatpush3.msra.mxu1 %v2209_v24  ;;  %v6038_v62 = vld [vmem:[#allocation2 + $0x29] sm:$0xff] }
 0x216   : > { %4667 = vmatprep.subr.mxu1 %v2208_v25 }
 0x217   : > { %2328 = vmatmul.mubr.f32.gmra.mxu1 %v2075_v49 }
 0x218   : > { %4668 = vmatpush3.msra.mxu1 %v2208_v25  ;;  %v1727_v25 = vld [vmem:[#allocation2 + $0x3b] sm:$0xff] }
 0x219   : > { %4669 = vmatprep.subr.mxu1 %v2207_v57 }
 0x21a   : > { %4670 = vmatpush3.msra.mxu1 %v2207_v57  ;;  %v2177_v57 = vld [vmem:[%s7033_s4 + $0x138] sm:$0xff] }
 0x21c   : > { %v4655_v39 = vpop.f32.mrf.mxu0 }
 0x21d   : > { %v1626_v35 = vmul.f32 %v4655_v39, %v5800_v53 }
 0x21e   : > { %v1571_v2 = vpop.f32.mrf.mxu0 }
 0x21f   : > { %v1649_v59 = vadd.f32 %v5814_v28, %v1626_v35  ;;  %v1625_v58 = vmul.f32 %v5800_v53, %v1571_v2 }
 0x221   : > { %5062 = vtanh.f32 %v1649_v59  ;;  %v1648_v44 = vadd.f32 %v5814_v28, %v1625_v58 }
 0x223   : > { %5064 = vtanh.f32 %v1648_v44 }
 0x22e   : > { %v5063_v6 = vpop.eup %5062 }
 0x22f   : > { %1681 = vst.msk [vmem:[#allocation2 + $0x5d] sm:$0xff] %vm452_vm2, %v5063_v6 }
 0x230   : > { %v5065_v43 = vpop.eup %5064 }
 0x231   : > { %1680 = vst.msk [vmem:[#allocation2 + $0x55] sm:$0xff] %vm452_vm2, %v5065_v43  ;;  %v2201_v43 = vld [vmem:[%s7033_s4 + $0x1f8] sm:$0xff] }
 0x232   : > { %4499 = vmatprep.subr.mxu0 %v2201_v43  ;;  %v2172_v43 = vld [vmem:[%s7033_s4 + $0x110] sm:$0xff] }
 0x236   : > { %v4788_v52 = vpop.permute.xlu1 %4787  ;;  %v4783_v15 = vpop.permute.xlu0 %4782 }
 0x237   : > { %v4789_v51 = vunpack.i.l.bf16 %v4788_v52  ;;  %v4785_v3 = vunpack.i.h.bf16 %v4783_v15  ;;  %v4784_v5 = vunpack.i.l.bf16 %v4783_v15  ;;  %v4790_v37 = vunpack.i.h.bf16 %v4788_v52  ;;  %v2206_v52 = vld [vmem:[%s7033_s4 + $0x220] sm:$0xff]  ;;  %v2185_v15 = vld [vmem:[%s7033_s4 + $0x178] sm:$0xff] }
 0x238   : > { %v1713_v27 = vld [vmem:[#allocation2 + $0x5a] sm:$0xff]  ;;  %v1712_v30 = vld [vmem:[#allocation2 + $0x52] sm:$0xff]  ;;  %4671 = vmatprep.subr.mxu1 %v2206_v52  ;;  %4500 = vmatpush3.msra.mxu0 %v2185_v15 }
 0x239   : > { %v1745_v61 = vld [vmem:[#allocation2 + $0x5c] sm:$0xff]  ;;  %v1744_v7 = vld [vmem:[#allocation2 + $0x54] sm:$0xff]  ;;  %v2092_v10 = vsel %vm452_vm2, %v1722_v4, %v4784_v5  ;;  %v2076_v11 = vsel %vm452_vm2, %v6003_v50, %v4785_v3  ;;  %v2093_v13 = vsel %vm452_vm2, %v1723_v31, %v4789_v51  ;;  %v2077_v60 = vsel %vm452_vm2, %v6011_v16, %v4790_v37  ;;  %4672 = vmatpush3.msra.mxu1 %v2206_v52  ;;  %v2199_v5 = vld [vmem:[%s7033_s4 + $0x1e8] sm:$0xff] }
 0x23a   : > { %v4816_v54 = vpack.i.bf16 %v1713_v27, %v1745_v61  ;;  %v4811_v9 = vpack.i.bf16 %v1712_v30, %v1744_v7  ;;  %2332 = vmatprep.mubr.f32.mxu1 %v2092_v10  ;;  %v2200_v51 = vld [vmem:[%s7033_s4 + $0x1f0] sm:$0xff]  ;;  %v2183_v27 = vld [vmem:[%s7033_s4 + $0x168] sm:$0xff]  ;;  %v2198_v61 = vld [vmem:[%s7033_s4 + $0x1e0] sm:$0xff] }
 0x23b   : > { %2333 = vmatmul.mubr.f32.gmra.mxu1 %v2076_v11  ;;  %v2184_v3 = vld [vmem:[%s7033_s4 + $0x170] sm:$0xff]  ;;  %4501 = vmatprep.subr.mxu0 %v2200_v51  ;;  %v2182_v4 = vld [vmem:[%s7033_s4 + $0x160] sm:$0xff]  ;;  %v2197_v7 = vld [vmem:[%s7033_s4 + $0x1d8] sm:$0xff] }
 0x23c   : > { %4817 = vrot.lane.b32.xlu1 %v4816_v54, %s5161_s16  ;;  %4812 = vrot.lane.b32.xlu0 %v4811_v9, %s5161_s16  ;;  %v2205_v10 = vld [vmem:[%s7033_s4 + $0x218] sm:$0xff]  ;;  %v2202_v52 = vld [vmem:[%s7033_s4 + $0x200] sm:$0xff] }
 0x23d   : > { %2337 = vmatprep.mubr.f32.mxu1 %v2093_v13  ;;  %4502 = vmatpush3.msra.mxu0 %v2184_v3  ;;  %v2187_v51 = vld [vmem:[%s7033_s4 + $0x188] sm:$0xff] }
 0x23e   : > { %4503 = vmatprep.subr.mxu0 %v2199_v5  ;;  %4673 = vmatprep.subr.mxu1 %v2205_v10  ;;  %v2171_v3 = vld [vmem:[%s7033_s4 + $0x108] sm:$0xff]  ;;  %v2186_v5 = vld [vmem:[%s7033_s4 + $0x180] sm:$0xff] }
 0x23f   : > { %2338 = vmatmul.mubr.f32.gmra.mxu1 %v2077_v60  ;;  %4504 = vmatpush3.msra.mxu0 %v2183_v27  ;;  %v2170_v27 = vld [vmem:[%s7033_s4 + $0x100] sm:$0xff] }
 0x240   : > { %4505 = vmatprep.subr.mxu0 %v2198_v61  ;;  %4674 = vmatpush3.msra.mxu1 %v2205_v10  ;;  %v1800_v61 = vld [vmem:[#allocation2 + $0x8] sm:$0xff] }
 0x241   : > { %4506 = vmatpush3.msra.mxu0 %v2182_v4 }
 0x242   : > { %4507 = vmatprep.subr.mxu0 %v2197_v7 }
 0x244   : > { %v4658_v12 = vpop.f32.mrf.mxu0 }
 0x245   : > { %v1628_v18 = vmul.f32 %v4658_v12, %v5800_v53 }
 0x246   : > { %v1581_v8 = vpop.f32.mrf.mxu0 }
 0x247   : > { %v1651_v19 = vadd.f32 %v5814_v28, %v1628_v18  ;;  %v1627_v14 = vmul.f32 %v5800_v53, %v1581_v8  ;;  %v1726_v18 = vld [vmem:[#allocation2 + $0x33] sm:$0xff] }
 0x248   : > { %v6081_v8 = vld [vmem:[#allocation2 + $0x31] sm:$0xff] }
 0x249   : > { %5066 = vtanh.f32 %v1651_v19  ;;  %v1650_v17 = vadd.f32 %v5814_v28, %v1627_v14 }
 0x24b   : > { %5068 = vtanh.f32 %v1650_v17 }
 0x256   : > { %v5067_v20 = vpop.eup %5066 }
 0x257   : > { %1683 = vst.msk [vmem:[#allocation2 + $0x6d] sm:$0xff] %vm452_vm2, %v5067_v20 }
 0x258   : > { %v5069_v21 = vpop.eup %5068 }
 0x259   : > { %1682 = vst.msk [vmem:[#allocation2 + $0x65] sm:$0xff] %vm452_vm2, %v5069_v21 }
 0x25e   : > { %v4798_v22 = vpop.permute.xlu1 %4797  ;;  %v4793_v23 = vpop.permute.xlu0 %4792 }
 0x25f   : > { %v4799_v26 = vunpack.i.l.bf16 %v4798_v22  ;;  %v4795_v55 = vunpack.i.h.bf16 %v4793_v23  ;;  %v4794_v29 = vunpack.i.l.bf16 %v4793_v23  ;;  %v4800_v33 = vunpack.i.h.bf16 %v4798_v22  ;;  %v2181_v23 = vld [vmem:[%s7033_s4 + $0x158] sm:$0xff] }
 0x260   : > { %v1715_v32 = vld [vmem:[#allocation2 + $0x6a] sm:$0xff]  ;;  %v1714_v38 = vld [vmem:[#allocation2 + $0x62] sm:$0xff]  ;;  %4508 = vmatpush3.msra.mxu0 %v2181_v23 }
 0x261   : > { %v1747_v34 = vld [vmem:[#allocation2 + $0x6c] sm:$0xff]  ;;  %v1746_v47 = vld [vmem:[#allocation2 + $0x64] sm:$0xff]  ;;  %v2094_v48 = vsel %vm452_vm2, %v1724_v42, %v4794_v29  ;;  %v2078_v56 = vsel %vm452_vm2, %v6027_v45, %v4795_v55  ;;  %v2095_v40 = vsel %vm452_vm2, %v1725_v41, %v4799_v26  ;;  %v2079_v63 = vsel %vm452_vm2, %v6038_v62, %v4800_v33  ;;  %v2193_v33 = vld [vmem:[%s7033_s4 + $0x1b8] sm:$0xff] }
 0x262   : > { %v4826_v46 = vpack.i.bf16 %v1715_v32, %v1747_v34  ;;  %v4821_v36 = vpack.i.bf16 %v1714_v38, %v1746_v47  ;;  %2342 = vmatprep.mubr.f32.mxu1 %v2094_v48  ;;  %v2196_v34 = vld [vmem:[%s7033_s4 + $0x1d0] sm:$0xff]  ;;  %v2195_v42 = vld [vmem:[%s7033_s4 + $0x1c8] sm:$0xff]  ;;  %v6105_v47 = vld [vmem:[#allocation2 + $0x39] sm:$0xff] }
 0x263   : > { %2343 = vmatmul.mubr.f32.gmra.mxu1 %v2078_v56  ;;  %v2180_v38 = vld [vmem:[%s7033_s4 + $0x150] sm:$0xff]  ;;  %4509 = vmatprep.subr.mxu0 %v2196_v34  ;;  %v2203_v41 = vld [vmem:[%s7033_s4 + $0x208] sm:$0xff] }
 0x264   : > { %4827 = vrot.lane.b32.xlu1 %v4826_v46, %s5161_s16  ;;  %4822 = vrot.lane.b32.xlu0 %v4821_v36, %s5161_s16  ;;  %v2204_v48 = vld [vmem:[%s7033_s4 + $0x210] sm:$0xff]  ;;  %v2194_v36 = vld [vmem:[%s7033_s4 + $0x1c0] sm:$0xff] }
 0x265   : > { %2347 = vmatprep.mubr.f32.mxu1 %v2095_v40  ;;  %4510 = vmatpush3.msra.mxu0 %v2180_v38  ;;  %v2192_v40 = vld [vmem:[%s7033_s4 + $0x1b0] sm:$0xff] }
 0x266   : > { %4675 = vmatprep.subr.mxu1 %v2204_v48  ;;  %4511 = vmatprep.subr.mxu0 %v2195_v42  ;;  %v1696_v34 = vld [vmem:[#allocation2 + $0x51] sm:$0xff] }
 0x267   : > { %2348 = vmatmul.mubr.f32.gmra.mxu1 %v2079_v63  ;;  %v2176_v63 = vld [vmem:[%s7033_s4 + $0x130] sm:$0xff] }
 0x268   : > { %4676 = vmatpush3.msra.mxu1 %v2204_v48  ;;  %v1805_v38 = vld [vmem:[#allocation2 + $0x30] sm:$0xff]  ;;  %v1729_v48 = vld [vmem:[#allocation2 + $0x5b] sm:$0xff] }
 0x269   : > { %4677 = vmatprep.subr.mxu1 %v2203_v41 }
 0x26a   : > { %4678 = vmatpush3.msra.mxu1 %v2203_v41  ;;  %v1806_v41 = vld [vmem:[#allocation2 + $0x38] sm:$0xff] }
 0x26b   : > { %4679 = vmatprep.subr.mxu1 %v2202_v52 }
 0x26c   : > { %v4661_v49 = vpop.f32.mrf.mxu0  ;;  %4680 = vmatpush3.msra.mxu1 %v2202_v52  ;;  %v1778_v52 = vld [vmem:[#allocation2 + $0x66] sm:$0xff] }
 0x26d   : > { %v1630_v39 = vmul.f32 %v4661_v49, %v5800_v53  ;;  %v2191_v49 = vld [vmem:[%s7033_s4 + $0x1a8] sm:$0xff] }
 0x26e   : > { %v1591_v35 = vpop.f32.mrf.mxu0 }
 0x26f   : > { %v1653_v2 = vadd.f32 %v5814_v28, %v1630_v39  ;;  %v1629_v59 = vmul.f32 %v5800_v53, %v1591_v35  ;;  %v2175_v39 = vld [vmem:[%s7033_s4 + $0x128] sm:$0xff]  ;;  %v2190_v35 = vld [vmem:[%s7033_s4 + $0x1a0] sm:$0xff] }
 0x271   : > { %5070 = vtanh.f32 %v1653_v2  ;;  %v1652_v58 = vadd.f32 %v5814_v28, %v1629_v59  ;;  %v2174_v2 = vld [vmem:[%s7033_s4 + $0x120] sm:$0xff]  ;;  %v2189_v59 = vld [vmem:[%s7033_s4 + $0x198] sm:$0xff] }
 0x273   : > { %5072 = vtanh.f32 %v1652_v58  ;;  %v2173_v58 = vld [vmem:[%s7033_s4 + $0x118] sm:$0xff] }
 0x27e   : > { %v5071_v44 = vpop.eup %5070 }
 0x27f   : > { %1685 = vst.msk [vmem:[#allocation2 + $0x7d] sm:$0xff] %vm452_vm2, %v5071_v44 }
 0x280   : > { %v5073_v6 = vpop.eup %5072 }
 0x281   : > { %1684 = vst.msk [vmem:[#allocation2 + $0x75] sm:$0xff] %vm452_vm2, %v5073_v6  ;;  %v2188_v6 = vld [vmem:[%s7033_s4 + $0x190] sm:$0xff] }
 0x286   : > { %v4808_v30 = vpop.permute.xlu1 %4807 }
 0x287   : > { %v4803_v54 = vpop.permute.xlu0 %4802  ;;  %v4809_v11 = vunpack.i.l.bf16 %v4808_v30  ;;  %v4810_v24 = vunpack.i.h.bf16 %v4808_v30 }
 0x288   : > { %v4805_v9 = vunpack.i.h.bf16 %v4803_v54  ;;  %v4804_v37 = vunpack.i.l.bf16 %v4803_v54  ;;  %v1717_v31 = vld [vmem:[#allocation2 + $0x7a] sm:$0xff]  ;;  %v1716_v60 = vld [vmem:[#allocation2 + $0x72] sm:$0xff]  ;;  %v1768_v54 = vld [vmem:[#allocation2 + $0x6] sm:$0xff] }
 0x289   : > { %v1749_v13 = vld [vmem:[#allocation2 + $0x7c] sm:$0xff]  ;;  %v4664_v12 = vpop.f32.mrf.mxu0  ;;  %v1748_v14 = vld [vmem:[#allocation2 + $0x74] sm:$0xff]  ;;  %v2097_v29 = vsel %vm452_vm2, %v1727_v25, %v4809_v11  ;;  %v2081_v56 = vsel %vm452_vm2, %v6105_v47, %v4810_v24 }
 0x28a   : > { %v4836_v19 = vpack.i.bf16 %v1717_v31, %v1749_v13  ;;  %v1632_v17 = vmul.f32 %v4664_v12, %v5800_v53  ;;  %v2096_v20 = vsel %vm452_vm2, %v1726_v18, %v4804_v37  ;;  %v2080_v21 = vsel %vm452_vm2, %v6081_v8, %v4805_v9  ;;  %v1801_v37 = vld [vmem:[#allocation2 + $0x10] sm:$0xff]  ;;  %v1802_v18 = vld [vmem:[#allocation2 + $0x18] sm:$0xff] }
 0x28b   : > { %v4831_v22 = vpack.i.bf16 %v1716_v60, %v1748_v14  ;;  %2352 = vmatprep.mubr.f32.mxu1 %v2096_v20  ;;  %v1601_v26 = vpop.f32.mrf.mxu0  ;;  %v1769_v31 = vld [vmem:[#allocation2 + $0xe] sm:$0xff]  ;;  %v1770_v12 = vld [vmem:[#allocation2 + $0x16] sm:$0xff]  ;;  %v1803_v14 = vld [vmem:[#allocation2 + $0x20] sm:$0xff] }
 0x28c   : > { %4837 = vrot.lane.b32.xlu1 %v4836_v19, %s5161_s16  ;;  %v1655_v55 = vadd.f32 %v5814_v28, %v1632_v17  ;;  %2353 = vmatmul.mubr.f32.gmra.mxu1 %v2080_v21  ;;  %v1631_v32 = vmul.f32 %v5800_v53, %v1601_v26  ;;  %v2179_v53 = vld [vmem:[%s7033_s4 + $0x148] sm:$0xff]  ;;  %v1771_v19 = vld [vmem:[#allocation2 + $0x1e] sm:$0xff]  ;;  %v4861_v21 = vpack.i.bf16 %v1770_v12, %v1802_v18 }
 0x28d   : > { %4832 = vrot.lane.b32.xlu0 %v4831_v22, %s5161_s16  ;;  %2357 = vmatprep.mubr.f32.mxu1 %v2097_v29  ;;  %v4866_v22 = vpack.i.bf16 %v1771_v19, %v1803_v14  ;;  %v1772_v26 = vld [vmem:[#allocation2 + $0x26] sm:$0xff]  ;;  %v1773_v29 = vld [vmem:[#allocation2 + $0x2e] sm:$0xff] }
 0x28e   : > { %5074 = vtanh.f32 %v1655_v55  ;;  %v1654_v46 = vadd.f32 %v5814_v28, %v1631_v32  ;;  %v2178_v28 = vld [vmem:[%s7033_s4 + $0x140] sm:$0xff]  ;;  %4512 = vmatpush3.msra.mxu0 %v2179_v53  ;;  %v1804_v55 = vld [vmem:[#allocation2 + $0x28] sm:$0xff]  ;;  %v1728_v32 = vld [vmem:[#allocation2 + $0x53] sm:$0xff] }
 0x28f   : > { %4513 = vmatprep.subr.mxu0 %v2194_v36 }
 0x290   : > { %5076 = vtanh.f32 %v1654_v46  ;;  %2358 = vmatmul.mubr.f32.gmra.mxu1 %v2081_v56  ;;  %4514 = vmatpush3.msra.mxu0 %v2178_v28  ;;  %v4871_v56 = vpack.i.bf16 %v1772_v26, %v1804_v55  ;;  %v4876_v28 = vpack.i.bf16 %v1773_v29, %v1805_v38  ;;  %v6209_v55 = vld [vmem:[#allocation2 + $0x69] sm:$0xff] }
 0x291   : > { %4515 = vmatprep.subr.mxu0 %v2193_v33  ;;  %v1774_v33 = vld [vmem:[#allocation2 + $0x36] sm:$0xff] }
 0x292   : > { %4516 = vmatpush3.msra.mxu0 %v2177_v57  ;;  %v1775_v57 = vld [vmem:[#allocation2 + $0x3e] sm:$0xff] }
 0x293   : > { %4517 = vmatprep.subr.mxu0 %v2192_v40  ;;  %v1807_v40 = vld [vmem:[#allocation2 + $0x40] sm:$0xff] }
 0x294   : > { %4518 = vmatpush3.msra.mxu0 %v2176_v63  ;;  %v6189_v63 = vld [vmem:[#allocation2 + $0x59] sm:$0xff] }
 0x295   : > { %4519 = vmatprep.subr.mxu0 %v2191_v49 }
 0x296   : > { %4520 = vmatpush3.msra.mxu0 %v2175_v39  ;;  %v4881_v39 = vpack.i.bf16 %v1774_v33, %v1806_v41  ;;  %v1733_v33 = vld [vmem:[#allocation2 + $0x7b] sm:$0xff] }
 0x297   : > { %4521 = vmatprep.subr.mxu0 %v2190_v35  ;;  %v4886_v35 = vpack.i.bf16 %v1775_v57, %v1807_v40  ;;  %v6219_v57 = vld [vmem:[#allocation2 + $0x79] sm:$0xff] }
 0x298   : > { %4522 = vmatpush3.msra.mxu0 %v2174_v2  ;;  %v1776_v2 = vld [vmem:[#allocation2 + $0x56] sm:$0xff] }
 0x299   : > { %4523 = vmatprep.subr.mxu0 %v2189_v59  ;;  %v1808_v59 = vld [vmem:[#allocation2 + $0x58] sm:$0xff] }
 0x29a   : > { %4524 = vmatpush3.msra.mxu0 %v2173_v58  ;;  %v1777_v58 = vld [vmem:[#allocation2 + $0x5e] sm:$0xff] }
 0x29b   : > { %v5075_v44 = vpop.eup %5074  ;;  %4525 = vmatprep.subr.mxu0 %v2188_v6  ;;  %v4891_v6 = vpack.i.bf16 %v1776_v2, %v1808_v59 }
 0x29c   : > { %1687 = vst.msk [vmem:[#allocation2 + $0x8d] sm:$0xff] %vm452_vm2, %v5075_v44  ;;  %4526 = vmatpush3.msra.mxu0 %v2172_v43  ;;  %v1809_v44 = vld [vmem:[#allocation2 + $0x60] sm:$0xff] }
 0x29d   : > { %v5077_v15 = vpop.eup %5076  ;;  %4527 = vmatprep.subr.mxu0 %v2187_v51  ;;  %v4896_v43 = vpack.i.bf16 %v1777_v58, %v1809_v44  ;;  %v1779_v51 = vld [vmem:[#allocation2 + $0x6e] sm:$0xff] }
 0x29e   : > { %1686 = vst.msk [vmem:[#allocation2 + $0x85] sm:$0xff] %vm452_vm2, %v5077_v15  ;;  %4528 = vmatpush3.msra.mxu0 %v2171_v3  ;;  %v1810_v15 = vld [vmem:[#allocation2 + $0x68] sm:$0xff]  ;;  %v1811_v3 = vld [vmem:[#allocation2 + $0x70] sm:$0xff] }
 0x29f   : > { %4529 = vmatprep.subr.mxu0 %v2186_v5  ;;  %v4901_v5 = vpack.i.bf16 %v1778_v52, %v1810_v15  ;;  %v1784_v44 = vld [vmem:[#allocation2 + $0x7] sm:$0xff] }
 0x2a0   : > { %4530 = vmatpush3.msra.mxu0 %v2170_v27  ;;  %v4906_v27 = vpack.i.bf16 %v1779_v51, %v1811_v3  ;;  %v1752_v52 = vld [vmem:[#allocation2 + $0x5] sm:$0xff] }
 0x2a1   : > { %3360 = vmatprep.subr.mxu0 %v5150_v0 }
 0x2a5   : > { %v1750_v30 = vld [vmem:[#allocation2 + $0x84] sm:$0xff]  ;;  %v1751_v11 = vld [vmem:[#allocation2 + $0x8c] sm:$0xff] }
 0x2a6   : > { %v1718_v4 = vld [vmem:[#allocation2 + $0x82] sm:$0xff]  ;;  %v4841_v7 = vpack.i.bf16 %v1800_v61, %v1750_v30  ;;  %v1719_v9 = vld [vmem:[#allocation2 + $0x8a] sm:$0xff]  ;;  %v4851_v13 = vpack.i.bf16 %v1801_v37, %v1751_v11  ;;  %v1780_v61 = vld [vmem:[#allocation2 + $0x76] sm:$0xff] }
 0x2a7   : > { %v4846_v10 = vpack.i.bf16 %v1768_v54, %v1718_v4  ;;  %v4856_v60 = vpack.i.bf16 %v1769_v31, %v1719_v9  ;;  %v1812_v30 = vld [vmem:[#allocation2 + $0x78] sm:$0xff]  ;;  %v1813_v54 = vld [vmem:[#allocation2 + $0x80] sm:$0xff]  ;;  %v1814_v9 = vld [vmem:[#allocation2 + $0x88] sm:$0xff] }
 0x2a8   : > { %4842 = vrot.lane.b32.xlu0 %v4841_v7, %s5161_s16  ;;  %v1781_v4 = vld [vmem:[#allocation2 + $0x7e] sm:$0xff]  ;;  %v4911_v7 = vpack.i.bf16 %v1780_v61, %v1812_v30  ;;  %v1782_v11 = vld [vmem:[#allocation2 + $0x86] sm:$0xff]  ;;  %v1783_v37 = vld [vmem:[#allocation2 + $0x8e] sm:$0xff] }
 0x2a9   : > { %4847 = vrot.lane.b32.xlu1 %v4846_v10, %s5161_s16  ;;  %v4916_v10 = vpack.i.bf16 %v1781_v4, %v1813_v54  ;;  %v1815_v31 = vld [vmem:[#allocation2 + $0x90] sm:$0xff] }
 0x2ac   : > { %4852 = vrot.lane.b32.xlu0 %v4851_v13, %s5161_s16  ;;  %v4921_v13 = vpack.i.bf16 %v1782_v11, %v1814_v9  ;;  %v1735_v11 = vld [vmem:[#allocation2 + $0x8b] sm:$0xff] }
 0x2ad   : > { %4857 = vrot.lane.b32.xlu1 %v4856_v60, %s5161_s16  ;;  %v4926_v60 = vpack.i.bf16 %v1783_v37, %v1815_v31  ;;  %v1785_v9 = vld [vmem:[#allocation2 + $0xf] sm:$0xff] }
 0x2ae   : > { %v4818_v17 = vpop.permute.xlu1 %4817  ;;  %v4813_v20 = vpop.permute.xlu0 %4812  ;;  %v6230_v37 = vld [vmem:[#allocation2 + $0x89] sm:$0xff] }
 0x2af   : > { %v4819_v23 = vunpack.i.l.bf16 %v4818_v17  ;;  %v4815_v24 = vunpack.i.h.bf16 %v4813_v20  ;;  %v4814_v25 = vunpack.i.l.bf16 %v4813_v20  ;;  %v4820_v53 = vunpack.i.h.bf16 %v4818_v17  ;;  %v1730_v20 = vld [vmem:[#allocation2 + $0x63] sm:$0xff] }
 0x2b0   : > { %4862 = vrot.lane.b32.xlu0 %v4861_v21, %s5161_s16  ;;  %v6203_v21 = vld [vmem:[#allocation2 + $0x61] sm:$0xff] }
 0x2b1   : > { %4867 = vrot.lane.b32.xlu1 %v4866_v22, %s5161_s16  ;;  %v2098_v42 = vsel %vm452_vm2, %v1728_v32, %v4814_v25  ;;  %v2082_v46 = vsel %vm452_vm2, %v1696_v34, %v4815_v24  ;;  %v2099_v36 = vsel %vm452_vm2, %v1729_v48, %v4819_v23  ;;  %v2083_v49 = vsel %vm452_vm2, %v6189_v63, %v4820_v53  ;;  %v1731_v25 = vld [vmem:[#allocation2 + $0x6b] sm:$0xff]  ;;  %v1732_v53 = vld [vmem:[#allocation2 + $0x73] sm:$0xff] }
 0x2b2   : > { %2362 = vmatprep.mubr.f32.mxu1 %v2098_v42  ;;  %v6213_v48 = vld [vmem:[#allocation2 + $0x71] sm:$0xff] }
 0x2b3   : > { %2363 = vmatmul.mubr.f32.gmra.mxu1 %v2082_v46 }
 0x2b4   : > { %2367 = vmatprep.mubr.f32.mxu1 %v2099_v36  ;;  %4872 = vrot.lane.b32.xlu0 %v4871_v56, %s5161_s16 }
 0x2b5   : > { %4877 = vrot.lane.b32.xlu1 %v4876_v28, %s5161_s16 }
 0x2b7   : > { %2368 = vmatmul.mubr.f32.gmra.mxu1 %v2083_v49 }
 0x2b8   : > { %4882 = vrot.lane.b32.xlu0 %v4881_v39, %s5161_s16 }
 0x2b9   : > { %4887 = vrot.lane.b32.xlu1 %v4886_v35, %s5161_s16 }
 0x2bc   : > { %4892 = vrot.lane.b32.xlu0 %v4891_v6, %s5161_s16  ;;  %v1734_v6 = vld [vmem:[#allocation2 + $0x83] sm:$0xff] }
 0x2bd   : > { %4897 = vrot.lane.b32.xlu1 %v4896_v43, %s5161_s16  ;;  %v6223_v43 = vld [vmem:[#allocation2 + $0x81] sm:$0xff] }
 0x2c0   : > { %4902 = vrot.lane.b32.xlu0 %v4901_v5, %s5161_s16 }
 0x2c1   : > { %4907 = vrot.lane.b32.xlu1 %v4906_v27, %s5161_s16 }
 0x2c4   : > { %4912 = vrot.lane.b32.xlu0 %v4911_v7, %s5161_s16 }
 0x2c5   : > { %4917 = vrot.lane.b32.xlu1 %v4916_v10, %s5161_s16  ;;  %v1753_v10 = vld [vmem:[#allocation2 + $0xd] sm:$0xff] }
 0x2c8   : > { %4922 = vrot.lane.b32.xlu0 %v4921_v13, %s5161_s16 }
 0x2c9   : > { %4927 = vrot.lane.b32.xlu1 %v4926_v60, %s5161_s16 }
 0x2d6   : > { %v4828_v12 = vpop.permute.xlu1 %4827  ;;  %v4823_v18 = vpop.permute.xlu0 %4822 }
 0x2d7   : > { %v4829_v19 = vunpack.i.l.bf16 %v4828_v12  ;;  %v4825_v14 = vunpack.i.h.bf16 %v4823_v18  ;;  %v4824_v17 = vunpack.i.l.bf16 %v4823_v18  ;;  %v4830_v24 = vunpack.i.h.bf16 %v4828_v12 }
 0x2d9   : > { %v2100_v22 = vsel %vm452_vm2, %v1730_v20, %v4824_v17  ;;  %v2084_v23 = vsel %vm452_vm2, %v6203_v21, %v4825_v14  ;;  %v2101_v26 = vsel %vm452_vm2, %v1731_v25, %v4829_v19  ;;  %v2085_v29 = vsel %vm452_vm2, %v6209_v55, %v4830_v24 }
 0x2da   : > { %2372 = vmatprep.mubr.f32.mxu1 %v2100_v22  ;;  %v1786_v22 = vld [vmem:[#allocation2 + $0x17] sm:$0xff] }
 0x2db   : > { %2373 = vmatmul.mubr.f32.gmra.mxu1 %v2084_v23  ;;  %v1754_v23 = vld [vmem:[#allocation2 + $0x15] sm:$0xff] }
 0x2dc   : > { %2377 = vmatprep.mubr.f32.mxu1 %v2101_v26 }
 0x2df   : > { %2378 = vmatmul.mubr.f32.gmra.mxu1 %v2085_v29 }
 0x2fe   : > { %v4838_v32 = vpop.permute.xlu1 %4837 }
 0x2ff   : > { %v4833_v34 = vpop.permute.xlu0 %4832  ;;  %v4839_v38 = vunpack.i.l.bf16 %v4838_v32  ;;  %v4840_v28 = vunpack.i.h.bf16 %v4838_v32  ;;  %v1787_v32 = vld [vmem:[#allocation2 + $0x1f] sm:$0xff] }
 0x300   : > { %v4835_v42 = vunpack.i.h.bf16 %v4833_v34  ;;  %v4834_v46 = vunpack.i.l.bf16 %v4833_v34 }
 0x301   : > { %v2103_v41 = vsel %vm452_vm2, %v1733_v33, %v4839_v38  ;;  %v2087_v40 = vsel %vm452_vm2, %v6219_v57, %v4840_v28  ;;  %v1756_v33 = vld [vmem:[#allocation2 + $0x25] sm:$0xff] }
 0x302   : > { %v2102_v56 = vsel %vm452_vm2, %v1732_v53, %v4834_v46  ;;  %v2086_v36 = vsel %vm452_vm2, %v6213_v48, %v4835_v42 }
 0x303   : > { %2382 = vmatprep.mubr.f32.mxu1 %v2102_v56  ;;  %v1788_v56 = vld [vmem:[#allocation2 + $0x27] sm:$0xff] }
 0x304   : > { %2383 = vmatmul.mubr.f32.gmra.mxu1 %v2086_v36 }
 0x305   : > { %2387 = vmatprep.mubr.f32.mxu1 %v2103_v41 }
 0x308   : > { %2388 = vmatmul.mubr.f32.gmra.mxu1 %v2087_v40  ;;  %v1789_v40 = vld [vmem:[#allocation2 + $0x2f] sm:$0xff] }
 0x31a   : > { %v4843_v49 = vpop.permute.xlu0 %4842 }
 0x31b   : > { %v4848_v39 = vpop.permute.xlu1 %4847  ;;  %v4845_v35 = vunpack.i.h.bf16 %v4843_v49  ;;  %v4844_v2 = vunpack.i.l.bf16 %v4843_v49 }
 0x31c   : > { %v4850_v59 = vunpack.i.h.bf16 %v4848_v39  ;;  %v4849_v58 = vunpack.i.l.bf16 %v4848_v39 }
 0x31d   : > { %v2104_v15 = vsel %vm452_vm2, %v1734_v6, %v4844_v2  ;;  %v2122_v51 = vsel %vm452_vm2, %v1784_v44, %v4845_v35  ;;  %v1757_v35 = vld [vmem:[#allocation2 + $0x2d] sm:$0xff] }
 0x31e   : > { %v2088_v3 = vsel %vm452_vm2, %v6223_v43, %v4849_v58  ;;  %v2106_v5 = vsel %vm452_vm2, %v1752_v52, %v4850_v59  ;;  %v4853_v27 = vpop.permute.xlu0 %4852  ;;  %2392 = vmatprep.mubr.f32.mxu1 %v2104_v15  ;;  %2467 = vmatprep.mubr.f32.mxu0 %v2122_v51  ;;  %v1816_v59 = vld [vmem:[#allocation2 + $0x41] sm:$0xff]  ;;  %v1790_v58 = vld [vmem:[#allocation2 + $0x37] sm:$0xff] }
 0x31f   : > { %v4858_v61 = vpop.permute.xlu1 %4857  ;;  %v4855_v30 = vunpack.i.h.bf16 %v4853_v27  ;;  %v4854_v4 = vunpack.i.l.bf16 %v4853_v27  ;;  %2393 = vmatmul.mubr.f32.gmra.mxu1 %v2088_v3  ;;  %2468 = vmatmul.mubr.f32.vlgmr.msra.gmra.mxu0 %v2106_v5  ;;  %v1758_v52 = vld [vmem:[#allocation2 + $0x35] sm:$0xff]  ;;  %v1791_v51 = vld [vmem:[#allocation2 + $0x3f] sm:$0xff] }
 0x320   : > { %v4860_v54 = vunpack.i.h.bf16 %v4858_v61  ;;  %v4859_v7 = vunpack.i.l.bf16 %v4858_v61  ;;  %v1759_v61 = vld [vmem:[#allocation2 + $0x3d] sm:$0xff] }
 0x321   : > { %v2105_v31 = vsel %vm452_vm2, %v1735_v11, %v4854_v4  ;;  %v2123_v13 = vsel %vm452_vm2, %v1785_v9, %v4855_v30  ;;  %v1792_v4 = vld [vmem:[#allocation2 + $0x57] sm:$0xff]  ;;  %v1793_v9 = vld [vmem:[#allocation2 + $0x5f] sm:$0xff] }
 0x322   : > { %v2089_v60 = vsel %vm452_vm2, %v6230_v37, %v4859_v7  ;;  %v2107_v12 = vsel %vm452_vm2, %v1753_v10, %v4860_v54  ;;  %v4863_v18 = vpop.permute.xlu0 %4862  ;;  %2397 = vmatprep.mubr.f32.mxu1 %v2105_v31  ;;  %2472 = vmatprep.mubr.f32.mxu0 %v2123_v13  ;;  %v1760_v10 = vld [vmem:[#allocation2 + $0x55] sm:$0xff] }
 0x323   : > { %v4868_v19 = vpop.permute.xlu1 %4867  ;;  %v4865_v14 = vunpack.i.h.bf16 %v4863_v18  ;;  %v4864_v17 = vunpack.i.l.bf16 %v4863_v18  ;;  %2398 = vmatmul.mubr.f32.gmra.mxu1 %v2089_v60  ;;  %2473 = vmatmul.mubr.f32.gmra.mxu0 %v2107_v12  ;;  %v1761_v60 = vld [vmem:[#allocation2 + $0x5d] sm:$0xff]  ;;  %v1817_v18 = vld [vmem:[#allocation2 + $0x91] sm:$0xff] }
 0x324   : > { %v4869_v20 = vunpack.i.l.bf16 %v4868_v19  ;;  %4681 = vmatprep.mubr.msk.f32.mxu1 %vm452_vm2, %v5993_v1  ;;  %v4870_v26 = vunpack.i.h.bf16 %v4868_v19  ;;  %v1755_v1 = vld [vmem:[#allocation2 + $0x1d] sm:$0xff]  ;;  %v1794_v19 = vld [vmem:[#allocation2 + $0x67] sm:$0xff] }
 0x325   : > { %v2124_v24 = vsel %vm452_vm2, %v1786_v22, %v4864_v17  ;;  %v2108_v25 = vsel %vm452_vm2, %v1754_v23, %v4865_v14 }
 0x326   : > { %v4873_v29 = vpop.permute.xlu0 %4872  ;;  %2477 = vmatprep.mubr.f32.mxu0 %v2124_v24  ;;  %v2125_v38 = vsel %vm452_vm2, %v1787_v32, %v4869_v20  ;;  %v2109_v53 = vsel %vm452_vm2, %v1755_v1, %v4870_v26  ;;  %v1762_v20 = vld [vmem:[#allocation2 + $0x65] sm:$0xff]  ;;  %v1795_v24 = vld [vmem:[#allocation2 + $0x6f] sm:$0xff] }
 0x327   : > { %v4874_v34 = vunpack.i.l.bf16 %v4873_v29  ;;  %2478 = vmatmul.mubr.f32.gmra.mxu0 %v2108_v25  ;;  %4682 = vmatmul.mubr.msk.f32.vlgmr.msra.gmra.mxu1 %vm452_vm2, %v6003_v50  ;;  %v4878_v42 = vpop.permute.xlu1 %4877  ;;  %v4875_v46 = vunpack.i.h.bf16 %v4873_v29  ;;  %v1763_v29 = vld [vmem:[#allocation2 + $0x6d] sm:$0xff] }
 0x328   : > { %2482 = vmatprep.mubr.f32.mxu0 %v2125_v38  ;;  %4684 = vmatprep.mubr.msk.f32.mxu1 %vm452_vm2, %v6011_v16  ;;  %v4879_v36 = vunpack.i.l.bf16 %v4878_v42  ;;  %v4880_v41 = vunpack.i.h.bf16 %v4878_v42  ;;  %v1796_v38 = vld [vmem:[#allocation2 + $0x77] sm:$0xff] }
 0x329   : > { %v2126_v28 = vsel %vm452_vm2, %v1788_v56, %v4874_v34  ;;  %v2110_v16 = vsel %vm452_vm2, %v1756_v33, %v4875_v46 }
 0x32a   : > { %v4883_v50 = vpop.permute.xlu0 %4882  ;;  %v2127_v39 = vsel %vm452_vm2, %v1789_v40, %v4879_v36 }
 0x32b   : > { %2483 = vmatmul.mubr.f32.gmra.mxu0 %v2109_v53  ;;  %4685 = vmatmul.mubr.msk.f32.gmra.mxu1 %vm452_vm2, %v6027_v45  ;;  %v4884_v49 = vunpack.i.l.bf16 %v4883_v50  ;;  %v4888_v45 = vpop.permute.xlu1 %4887  ;;  %v4885_v2 = vunpack.i.h.bf16 %v4883_v50  ;;  %v1764_v53 = vld [vmem:[#allocation2 + $0x75] sm:$0xff] }
 0x32c   : > { %2487 = vmatprep.mubr.f32.mxu0 %v2126_v28  ;;  %4687 = vmatprep.mubr.msk.f32.mxu1 %vm452_vm2, %v6038_v62  ;;  %v2111_v62 = vsel %vm452_vm2, %v1757_v35, %v4880_v41  ;;  %v4889_v44 = vunpack.i.l.bf16 %v4888_v45  ;;  %v4890_v15 = vunpack.i.h.bf16 %v4888_v45  ;;  %v1797_v28 = vld [vmem:[#allocation2 + $0x7f] sm:$0xff] }
 0x32d   : > { %v2128_v6 = vsel %vm452_vm2, %v1790_v58, %v4884_v49  ;;  %v1799_v58 = vld [vmem:[#allocation2 + $0x8f] sm:$0xff] }
 0x32e   : > { %v2129_v5 = vsel %vm452_vm2, %v1791_v51, %v4889_v44 }
 0x32f   : > { %2488 = vmatmul.mubr.f32.gmra.mxu0 %v2110_v16  ;;  %4688 = vmatmul.mubr.msk.f32.gmra.mxu1 %vm452_vm2, %v6081_v8  ;;  %v4893_v8 = vpop.permute.xlu0 %4892  ;;  %v4898_v27 = vpop.permute.xlu1 %4897  ;;  %v1765_v16 = vld [vmem:[#allocation2 + $0x7d] sm:$0xff] }
 0x330   : > { %2492 = vmatprep.mubr.f32.mxu0 %v2127_v39  ;;  %4690 = vmatprep.mubr.msk.f32.mxu1 %vm452_vm2, %v6105_v47  ;;  %v2112_v47 = vsel %vm452_vm2, %v1758_v52, %v4885_v2  ;;  %v4894_v3 = vunpack.i.l.bf16 %v4893_v8  ;;  %v4895_v30 = vunpack.i.h.bf16 %v4893_v8  ;;  %v4899_v54 = vunpack.i.l.bf16 %v4898_v27  ;;  %v1798_v39 = vld [vmem:[#allocation2 + $0x87] sm:$0xff]  ;;  %v6295_v52 = vpop.f32.mrf.mxu1 }
 0x331   : > { %v4900_v11 = vunpack.i.h.bf16 %v4898_v27  ;;  %v1766_v2 = vld [vmem:[#allocation2 + $0x85] sm:$0xff] }
 0x332   : > { %v2130_v7 = vsel %vm452_vm2, %v1792_v4, %v4894_v3  ;;  %v2131_v13 = vsel %vm452_vm2, %v1793_v9, %v4899_v54 }
 0x333   : > { %2493 = vmatmul.mubr.f32.gmra.mxu0 %v2111_v62  ;;  %4691 = vmatmul.mubr.msk.f32.gmra.mxu1 %vm452_vm2, %v1816_v59 }
 0x334   : > { %2497 = vmatprep.mubr.f32.mxu0 %v2128_v6  ;;  %4693 = vmatprep.mubr.msk.f32.mxu1 %vm452_vm2, %v6189_v63  ;;  %v2113_v63 = vsel %vm452_vm2, %v1759_v61, %v4890_v15  ;;  %v1767_v6 = vld [vmem:[#allocation2 + $0x8d] sm:$0xff]  ;;  %v6297_v15 = vpop.f32.mrf.mxu1 }
 0x337   : > { %2498 = vmatmul.mubr.f32.gmra.mxu0 %v2112_v47  ;;  %4694 = vmatmul.mubr.msk.f32.gmra.mxu1 %vm452_vm2, %v6203_v21  ;;  %v4903_v21 = vpop.permute.xlu0 %4902  ;;  %v6299_v47 = vpop.f32.mrf.mxu1 }
 0x338   : > { %2502 = vmatprep.mubr.f32.mxu0 %v2129_v5  ;;  %4696 = vmatprep.mubr.msk.f32.mxu1 %vm452_vm2, %v6209_v55  ;;  %v2114_v55 = vsel %vm452_vm2, %v1760_v10, %v4895_v30  ;;  %v4904_v31 = vunpack.i.l.bf16 %v4903_v21  ;;  %v4905_v12 = vunpack.i.h.bf16 %v4903_v21 }
 0x339   : > { %v6301_v51 = vpop.f32.mrf.mxu1 }
 0x33a   : > { %v2132_v17 = vsel %vm452_vm2, %v1794_v19, %v4904_v31  ;;  %v2116_v23 = vsel %vm452_vm2, %v1762_v20, %v4905_v12  ;;  %v3297_v19 = vld [vmem:[%s7036_s7 + $0x68] sm:$0xff] }
 0x33b   : > { %2503 = vmatmul.mubr.f32.gmra.mxu0 %v2113_v63  ;;  %4697 = vmatmul.mubr.msk.f32.gmra.mxu1 %vm452_vm2, %v6213_v48  ;;  %v4908_v48 = vpop.permute.xlu1 %4907  ;;  %v6303_v3 = vpop.f32.mrf.mxu1 }
 0x33c   : > { %2507 = vmatprep.mubr.f32.mxu0 %v2130_v7  ;;  %4699 = vmatprep.mubr.msk.f32.mxu1 %vm452_vm2, %v6219_v57  ;;  %v2115_v57 = vsel %vm452_vm2, %v1761_v60, %v4900_v11  ;;  %v4909_v14 = vunpack.i.l.bf16 %v4908_v48  ;;  %v4910_v22 = vunpack.i.h.bf16 %v4908_v48  ;;  %v3299_v60 = vld [vmem:[%s7036_s7 + $0x78] sm:$0xff] }
 0x33d   : > { %v6305_v5 = vpop.f32.mrf.mxu1  ;;  %3361 = vmatpush1.msra.mxu0 %v3299_v60  ;;  %v6436_v60 = vld [vmem:[%s7035_s6] ss:$0 sm:$0xff] }
 0x33e   : > { %v2133_v25 = vsel %vm452_vm2, %v1795_v24, %v4909_v14  ;;  %v2117_v34 = vsel %vm452_vm2, %v1763_v29, %v4910_v22  ;;  %3362 = vmatprep.subr.mxu0 %v5150_v0  ;;  %v3296_v14 = vld [vmem:[%s7036_s7 + $0x60] sm:$0xff]  ;;  %v3294_v22 = vld [vmem:[%s7036_s7 + $0x50] sm:$0xff] }
 0x33f   : > { %2508 = vmatmul.mubr.f32.gmra.mxu0 %v2114_v55  ;;  %4700 = vmatmul.mubr.msk.f32.gmra.mxu1 %vm452_vm2, %v6223_v43  ;;  %v4913_v43 = vpop.permute.xlu0 %4912  ;;  %v4918_v26 = vpop.permute.xlu1 %4917  ;;  %v3290_v29 = vld [vmem:[%s7036_s7 + $0x30] sm:$0xff] }
 0x340   : > { %2512 = vmatprep.mubr.f32.mxu0 %v2131_v13  ;;  %4702 = vmatprep.mubr.msk.f32.mxu1 %vm452_vm2, %v6230_v37  ;;  %v4914_v37 = vunpack.i.l.bf16 %v4913_v43  ;;  %v4915_v32 = vunpack.i.h.bf16 %v4913_v43  ;;  %v4919_v42 = vunpack.i.l.bf16 %v4918_v26  ;;  %v4920_v56 = vunpack.i.h.bf16 %v4918_v26  ;;  %v6307_v27 = vpop.f32.mrf.mxu1  ;;  %v3295_v43 = vld [vmem:[%s7036_s7 + $0x58] sm:$0xff] }
 0x341   : > { %v3291_v26 = vld [vmem:[%s7036_s7 + $0x38] sm:$0xff] }
 0x342   : > { %v2134_v1 = vsel %vm452_vm2, %v1796_v38, %v4914_v37  ;;  %v2118_v36 = vsel %vm452_vm2, %v1764_v53, %v4915_v32  ;;  %v2135_v33 = vsel %vm452_vm2, %v1797_v28, %v4919_v42  ;;  %v2119_v49 = vsel %vm452_vm2, %v1765_v16, %v4920_v56  ;;  %v6309_v61 = vpop.f32.mrf.mxu1  ;;  %v3292_v37 = vld [vmem:[%s7036_s7 + $0x40] sm:$0xff]  ;;  %v3287_v56 = vld [vmem:[%s7036_s7 + $0x18] sm:$0xff] }
 0x343   : > { %2513 = vmatmul.mubr.f32.gmra.mxu0 %v2115_v57  ;;  %4703 = vmatmul.mubr.msk.f32.gmra.mxu1 %vm452_vm2, %v1817_v18  ;;  %v4923_v46 = vpop.permute.xlu0 %4922  ;;  %v4928_v41 = vpop.permute.xlu1 %4927  ;;  %v3298_v57 = vld [vmem:[%s7036_s7 + $0x70] sm:$0xff] }
 0x344   : > { %2517 = vmatprep.mubr.f32.mxu0 %v2132_v17  ;;  %v4924_v50 = vunpack.i.l.bf16 %v4923_v46  ;;  %v4925_v40 = vunpack.i.h.bf16 %v4923_v46  ;;  %v4929_v45 = vunpack.i.l.bf16 %v4928_v41  ;;  %v4930_v62 = vunpack.i.h.bf16 %v4928_v41  ;;  %v6311_v30 = vpop.f32.mrf.mxu1  ;;  %3363 = vmatpush1.msra.mxu0 %v3298_v57 }
 0x345   : > { %3364 = vmatprep.subr.mxu0 %v5150_v0 }
 0x346   : > { %v2136_v35 = vsel %vm452_vm2, %v1798_v39, %v4924_v50  ;;  %v2120_v59 = vsel %vm452_vm2, %v1766_v2, %v4925_v40  ;;  %v2137_v44 = vsel %vm452_vm2, %v1799_v58, %v4929_v45  ;;  %v2121_v8 = vsel %vm452_vm2, %v1767_v6, %v4930_v62  ;;  %v6313_v63 = vpop.f32.mrf.mxu1  ;;  %3365 = vmatpush1.msra.mxu0 %v3297_v19  ;;  %v3286_v50 = vld [vmem:[%s7036_s7 + $0x10] sm:$0xff]  ;;  %v3285_v40 = vld [vmem:[%s7036_s7 + $0x8] sm:$0xff]  ;;  %v6426_v58 = vld [vmem:[%s7034_s5] ss:$0 sm:$0xff] }
 0x347   : > { %2518 = vmatmul.mubr.f32.gmra.mxu0 %v2116_v23  ;;  %3366 = vmatprep.subr.mxu0 %v5150_v0  ;;  %v3293_v23 = vld [vmem:[%s7036_s7 + $0x48] sm:$0xff]  ;;  %v4456_v39 = vadd.f32 %v6301_v51, %v6299_v47 }
 0x348   : > { %2522 = vmatprep.mubr.f32.mxu0 %v2133_v25  ;;  %v6315_v4 = vpop.f32.mrf.mxu1  ;;  %3367 = vmatpush1.msra.mxu0 %v3296_v14  ;;  %v3311_v14 = vld [vmem:[%s7036_s7 + $0xd8] sm:$0xff] }
 0x349   : > { %3368 = vmatprep.subr.mxu0 %v5150_v0 }
 0x34a   : > { %v6317_v54 = vpop.f32.mrf.mxu1  ;;  %3369 = vmatpush1.msra.mxu0 %v3295_v43 }
 0x34b   : > { %2523 = vmatmul.mubr.f32.gmra.mxu0 %v2117_v34  ;;  %3370 = vmatprep.subr.mxu0 %v5150_v0  ;;  %v3289_v34 = vld [vmem:[%s7036_s7 + $0x28] sm:$0xff] }
 0x34c   : > { %2527 = vmatprep.mubr.f32.mxu0 %v2134_v1  ;;  %v6319_v7 = vpop.f32.mrf.mxu1  ;;  %3371 = vmatpush1.msra.mxu0 %v3294_v22  ;;  %v3288_v1 = vld [vmem:[%s7036_s7 + $0x20] sm:$0xff]  ;;  %v4462_v22 = vadd.f32 %v6309_v61, %v6307_v27  ;;  %v3309_v27 = vld [vmem:[%s7036_s7 + $0xc8] sm:$0xff] }
 0x34d   : > { %3372 = vmatprep.subr.mxu0 %v5150_v0 }
 0x34e   : > { %v6321_v21 = vpop.f32.mrf.mxu1  ;;  %3373 = vmatpush1.msra.mxu0 %v3293_v23 }
 0x34f   : > { %2528 = vmatmul.mubr.f32.gmra.mxu0 %v2118_v36  ;;  %3374 = vmatprep.subr.mxu0 %v5150_v0 }
 0x350   : > { %2532 = vmatprep.mubr.f32.mxu0 %v2135_v33  ;;  %v6323_v10 = vpop.f32.mrf.mxu1  ;;  %3375 = vmatpush1.msra.mxu0 %v3292_v37 }
 0x351   : > { %3376 = vmatprep.subr.mxu0 %v5150_v0 }
 0x352   : > { %v6325_v11 = vpop.f32.mrf.mxu1  ;;  %3377 = vmatpush1.msra.mxu0 %v3291_v26  ;;  %v3310_v26 = vld [vmem:[%s7036_s7 + $0xd0] sm:$0xff] }
 0x353   : > { %2533 = vmatmul.mubr.f32.gmra.mxu0 %v2119_v49  ;;  %3378 = vmatprep.subr.mxu0 %v5150_v0  ;;  %v4453_v49 = vadd.f32 %v6297_v15, %v6295_v52  ;;  %v4459_v52 = vadd.f32 %v6305_v5, %v6303_v3 }
 0x354   : > { %2537 = vmatprep.mubr.f32.mxu0 %v2136_v35  ;;  %3379 = vmatpush1.msra.mxu0 %v3290_v29 }
 0x355   : > { %3380 = vmatprep.subr.mxu0 %v5150_v0 }
 0x356   : > { %3381 = vmatpush1.msra.mxu0 %v3289_v34 }
 0x357   : > { %2538 = vmatmul.mubr.f32.gmra.mxu0 %v2120_v59  ;;  %3382 = vmatprep.subr.mxu0 %v5150_v0 }
 0x358   : > { %2542 = vmatprep.mubr.f32.mxu0 %v2137_v44  ;;  %3383 = vmatpush1.msra.mxu0 %v3288_v1 }
 0x359   : > { %3384 = vmatprep.subr.mxu0 %v5150_v0 }
 0x35a   : > { %3385 = vmatpush1.msra.mxu0 %v3287_v56 }
 0x35b   : > { %2543 = vmatmul.mubr.f32.gmra.mxu0 %v2121_v8  ;;  %3386 = vmatprep.subr.mxu0 %v5150_v0  ;;  %v3284_v8 = vld [vmem:[%s7036_s7] sm:$0xff] }
 0x35c   : > { %3387 = vmatpush1.msra.mxu0 %v3286_v50 }
 0x35d   : > { %3388 = vmatprep.subr.mxu0 %v5150_v0 }
 0x35e   : > { %3389 = vmatpush1.msra.mxu0 %v3285_v40 }
 0x35f   : > { %3390 = vmatprep.subr.mxu0 %v5150_v0 }
 0x360   : > { %3391 = vmatpush1.msra.mxu0 %v3284_v8 }
 0x361   : > { %3400 = vmatprep.subr.mxu0 %v5150_v0 }
 0x362   : > { %3401 = vmatpush2.msra.mxu0 %v3311_v14  ;;  %v4471_v14 = vadd.f32 %v6321_v21, %v6319_v7  ;;  %v4474_v21 = vadd.f32 %v6325_v11, %v6323_v10 }
 0x363   : > { %3402 = vmatprep.subr.mxu0 %v5150_v0 }
 0x364   : > { %3403 = vmatpush2.msra.mxu0 %v3310_v26 }
 0x365   : > { %3404 = vmatprep.subr.mxu0 %v5150_v0 }
 0x366   : > { %3405 = vmatpush2.msra.mxu0 %v3309_v27  ;;  %v3303_v27 = vld [vmem:[%s7036_s7 + $0x98] sm:$0xff] }
 0x367   : > { %3406 = vmatprep.subr.mxu0 %v5150_v0 }
 0x373   : > { %v6327_v55 = vpop.f32.mrf.mxu1 }
 0x375   : > { %v6329_v9 = vpop.f32.mrf.mxu1 }
 0x377   : > { %v6331_v31 = vpop.f32.mrf.mxu1 }
 0x379   : > { %v6333_v13 = vpop.f32.mrf.mxu1 }
 0x39b   : > { %v6335_v48 = vpop.f32.mrf.mxu1 }
 0x39d   : > { %v6340_v12 = vpop.f32.mrf.mxu1 }
 0x39f   : > { %v6346_v18 = vpop.f32.mrf.mxu1 }
 0x3a1   : > { %v6356_v17 = vpop.f32.mrf.mxu1 }
 0x3c4   : > { %v6362_v20 = vpop.f32.mrf.mxu1 }
 0x3c6   : > { %v6372_v24 = vpop.f32.mrf.mxu1 }
 0x3c8   : > { %v6379_v25 = vpop.f32.mrf.mxu1 }
 0x3ca   : > { %v6388_v32 = vpop.f32.mrf.mxu1 }
 0x3df   : > { %v6394_v38 = vpop.f32.mrf.mxu1  ;;  %v4531_v42 = vpop.f32.mrf.mxu0 }
 0x3e1   : > { %v6400_v46 = vpop.f32.mrf.mxu1  ;;  %v4532_v53 = vpop.f32.mrf.mxu0 }
 0x3e2   : > { %v4533_v33 = vadd.f32 %v4532_v53, %v4531_v42 }
 0x3e3   : > { %v6406_v36 = vpop.f32.mrf.mxu1  ;;  %v4534_v28 = vpop.f32.mrf.mxu0 }
 0x3e4   : > { %v2470_v59 = vadd.f32 %v4533_v33, %v4453_v49  ;;  %v3308_v33 = vld [vmem:[%s7036_s7 + $0xc0] sm:$0xff] }
 0x3e5   : > { %v6412_v41 = vpop.f32.mrf.mxu1  ;;  %v4535_v16 = vpop.f32.mrf.mxu0  ;;  %3407 = vmatpush2.msra.mxu0 %v3308_v33 }
 0x3e6   : > { %v4536_v45 = vadd.f32 %v4535_v16, %v4534_v28  ;;  %v4465_v16 = vadd.f32 %v6313_v63, %v6311_v30  ;;  %3408 = vmatprep.subr.mxu0 %v5150_v0  ;;  %v3306_v30 = vld [vmem:[%s7036_s7 + $0xb0] sm:$0xff]  ;;  %v4468_v63 = vadd.f32 %v6317_v54, %v6315_v4 }
 0x3e7   : > { %v4537_v35 = vpop.f32.mrf.mxu0  ;;  %v4683_v2 = vpop.f32.mrf.mxu1 }
 0x3e8   : > { %v2475_v62 = vadd.f32 %v4536_v45, %v4456_v39 }
 0x3e9   : > { %v4538_v44 = vpop.f32.mrf.mxu0  ;;  %v2614_v6 = vpop.f32.mrf.mxu1 }
 0x3ea   : > { %v2620_v15 = vadd.f32 %v4683_v2, %v2475_v62  ;;  %v4539_v47 = vadd.f32 %v4538_v44, %v4537_v35  ;;  %v2615_v51 = vadd.f32 %v2614_v6, %v2470_v59  ;;  %v3307_v35 = vld [vmem:[%s7036_s7 + $0xb8] sm:$0xff] }
 0x3eb   : > { %v4540_v57 = vpop.f32.mrf.mxu0  ;;  %v4686_v19 = vpop.f32.mrf.mxu1  ;;  %3409 = vmatpush2.msra.mxu0 %v3307_v35 }
 0x3ec   : > { %v2701_v43 = vmul.f32 %v6426_v58, %v2620_v15  ;;  %v2700_v3 = vmul.f32 %v6426_v58, %v2615_v51  ;;  %v2480_v5 = vadd.f32 %v4539_v47, %v4459_v52  ;;  %3410 = vmatprep.subr.mxu0 %v5150_v0 }
 0x3ed   : > { %v4541_v23 = vpop.f32.mrf.mxu0  ;;  %v2624_v37 = vpop.f32.mrf.mxu1  ;;  %3411 = vmatpush2.msra.mxu0 %v3306_v30  ;;  %v4480_v30 = vadd.f32 %v6333_v13, %v6331_v31 }
 0x3ee   : > { %v2724_v29 = vadd.f32 %v6436_v60, %v2701_v43  ;;  %v2723_v34 = vadd.f32 %v6436_v60, %v2700_v3  ;;  %v4542_v42 = vadd.f32 %v4541_v23, %v4540_v57  ;;  %v2625_v1 = vadd.f32 %v2624_v37, %v2480_v5  ;;  %3412 = vmatprep.subr.mxu0 %v5150_v0  ;;  %v3305_v3 = vld [vmem:[%s7036_s7 + $0xa8] sm:$0xff] }
 0x3ef   : > { %v4543_v53 = vpop.f32.mrf.mxu0  ;;  %v4689_v28 = vpop.f32.mrf.mxu1  ;;  %3413 = vmatpush2.msra.mxu0 %v3305_v3  ;;  %v4483_v3 = vadd.f32 %v6340_v12, %v6335_v48  ;;  %v4486_v12 = vadd.f32 %v6356_v17, %v6346_v18 }
 0x3f0   : > { %5078 = vtanh.f32 %v2724_v29  ;;  %v2485_v61 = vadd.f32 %v4542_v42, %v4462_v22  ;;  %v2702_v56 = vmul.f32 %v6426_v58, %v2625_v1  ;;  %3414 = vmatprep.subr.mxu0 %v5150_v0 }
 0x3f1   : > { %5080 = vtanh.f32 %v2723_v34  ;;  %v4544_v50 = vpop.f32.mrf.mxu0  ;;  %v2634_v59 = vpop.f32.mrf.mxu1 }
 0x3f2   : > { %v2630_v40 = vadd.f32 %v4686_v19, %v2485_v61  ;;  %v2725_v49 = vadd.f32 %v6436_v60, %v2702_v56  ;;  %v4545_v39 = vadd.f32 %v4544_v50, %v4543_v53  ;;  %v3304_v53 = vld [vmem:[%s7036_s7 + $0xa0] sm:$0xff]  ;;  %v3302_v56 = vld [vmem:[%s7036_s7 + $0x90] sm:$0xff] }
 0x3f3   : > { %v4546_v45 = vpop.f32.mrf.mxu0  ;;  %v4692_v57 = vpop.f32.mrf.mxu1  ;;  %3415 = vmatpush2.msra.mxu0 %v3304_v53 }
 0x3f4   : > { %v2703_v2 = vmul.f32 %v6426_v58, %v2630_v40  ;;  %5082 = vtanh.f32 %v2725_v49  ;;  %v2490_v62 = vadd.f32 %v4545_v39, %v4465_v16  ;;  %3416 = vmatprep.subr.mxu0 %v5150_v0  ;;  %v4477_v16 = vadd.f32 %v6329_v9, %v6327_v55  ;;  %v3300_v55 = vld [vmem:[%s7036_s7 + $0x80] sm:$0xff] }
 0x3f5   : > { %v4547_v44 = vpop.f32.mrf.mxu0  ;;  %v2644_v26 = vpop.f32.mrf.mxu1  ;;  %3417 = vmatpush2.msra.mxu0 %v3303_v27 }
 0x3f6   : > { %v2726_v6 = vadd.f32 %v6436_v60, %v2703_v2  ;;  %v2635_v8 = vadd.f32 %v2634_v59, %v2490_v62  ;;  %v4548_v52 = vadd.f32 %v4547_v44, %v4546_v45  ;;  %3418 = vmatprep.subr.mxu0 %v5150_v0  ;;  %v3301_v45 = vld [vmem:[%s7036_s7 + $0x88] sm:$0xff] }
 0x3f7   : > { %v4549_v15 = vpop.f32.mrf.mxu0  ;;  %v4695_v50 = vpop.f32.mrf.mxu1  ;;  %3419 = vmatpush2.msra.mxu0 %v3302_v56 }
 0x3f8   : > { %5084 = vtanh.f32 %v2726_v6  ;;  %v2704_v47 = vmul.f32 %v6426_v58, %v2635_v8  ;;  %v2495_v51 = vadd.f32 %v4548_v52, %v4468_v63  ;;  %3420 = vmatprep.subr.mxu0 %v5150_v0 }
 0x3f9   : > { %v4550_v19 = vpop.f32.mrf.mxu0  ;;  %v2654_v59 = vpop.f32.mrf.mxu1  ;;  %3421 = vmatpush2.msra.mxu0 %v3301_v45 }
 0x3fa   : > { %v2727_v43 = vadd.f32 %v6436_v60, %v2704_v47  ;;  %v2640_v4 = vadd.f32 %v4689_v28, %v2495_v51  ;;  %v4551_v54 = vadd.f32 %v4550_v19, %v4549_v15  ;;  %3422 = vmatprep.subr.mxu0 %v5150_v0 }
 0x3fb   : > { %v4552_v5 = vpop.f32.mrf.mxu0  ;;  %3423 = vmatpush2.msra.mxu0 %v3300_v55 }
 0x3fc   : > { %5086 = vtanh.f32 %v2727_v43  ;;  %v2705_v22 = vmul.f32 %v6426_v58, %v2640_v4  ;;  %v2500_v23 = vadd.f32 %v4551_v54, %v4471_v14  ;;  %v4698_v4 = vpop.f32.mrf.mxu1 }
 0x3fd   : > { %v5079_v37 = vpop.eup %5078  ;;  %v4553_v29 = vpop.f32.mrf.mxu0 }
 0x3fe   : > { %v5081_v7 = vpop.eup %5080  ;;  %2756 = vst.msk [vmem:[#allocation2 + $0xd] sm:$0xff] %vm1355_vm10, %v5079_v37  ;;  %v2728_v34 = vadd.f32 %v6436_v60, %v2705_v22  ;;  %v2645_v42 = vadd.f32 %v2644_v26, %v2500_v23  ;;  %v4554_v1 = vadd.f32 %v4553_v29, %v4552_v5 }
 0x3ff   : > { %2755 = vst.msk [vmem:[#allocation2 + $0x5] sm:$0xff] %vm1355_vm10, %v5081_v7  ;;  %v4555_v61 = vpop.f32.mrf.mxu0 }
 0x400   : > { %5088 = vtanh.f32 %v2728_v34  ;;  %v2706_v10 = vmul.f32 %v6426_v58, %v2645_v42  ;;  %v2505_v11 = vadd.f32 %v4554_v1, %v4474_v21  ;;  %v2664_v1 = vpop.f32.mrf.mxu1 }
 0x401   : > { %v5083_v28 = vpop.eup %5082  ;;  %v4556_v33 = vpop.f32.mrf.mxu0 }
 0x402   : > { %2757 = vst.msk [vmem:[#allocation2 + $0x15] sm:$0xff] %vm1355_vm10, %v5083_v28  ;;  %v2729_v40 = vadd.f32 %v6436_v60, %v2706_v10  ;;  %v2650_v49 = vadd.f32 %v4692_v57, %v2505_v11  ;;  %v4557_v39 = vadd.f32 %v4556_v33, %v4555_v61 }
 0x403   : > { %v4558_v35 = vpop.f32.mrf.mxu0 }
 0x404   : > { %5090 = vtanh.f32 %v2729_v40  ;;  %v2707_v2 = vmul.f32 %v6426_v58, %v2650_v49  ;;  %v2510_v62 = vadd.f32 %v4557_v39, %v4477_v16  ;;  %v4701_v49 = vpop.f32.mrf.mxu1  ;;  %v4489_v39 = vadd.f32 %v6372_v24, %v6362_v20 }
 0x405   : > { %v5085_v9 = vpop.eup %5084  ;;  %v4559_v44 = vpop.f32.mrf.mxu0  ;;  %v2820_v34 = vld [vmem:[#allocation2 + $0xd] sm:$0xff] }
 0x406   : > { %2758 = vst.msk [vmem:[#allocation2 + $0x1d] sm:$0xff] %vm1355_vm10, %v5085_v9  ;;  %v2730_v63 = vadd.f32 %v6436_v60, %v2707_v2  ;;  %v2655_v6 = vadd.f32 %v2654_v59, %v2510_v62  ;;  %v4560_v8 = vadd.f32 %v4559_v44, %v4558_v35  ;;  %v2851_v52 = vld [vmem:[#allocation2 + $0x7] sm:$0xff] }
 0x407   : > { %v2787_v15 = vld [vmem:[#allocation2 + $0x3] sm:$0xff]  ;;  %v2788_v47 = vld [vmem:[#allocation2 + $0xb] sm:$0xff]  ;;  %3091 = vrot.lane.b32.xlu1 %v2851_v52, %s5158_s21  ;;  %v4561_v51 = vpop.f32.mrf.mxu0 }
 0x408   : > { %v4931_v57 = vpack.i.bf16 %v2788_v47, %v2787_v15  ;;  %5092 = vtanh.f32 %v2730_v63  ;;  %v2708_v19 = vmul.f32 %v6426_v58, %v2655_v6  ;;  %v2515_v31 = vadd.f32 %v4560_v8, %v4480_v30  ;;  %v2803_v13 = vld [vmem:[#allocation2 + $0x4] sm:$0xff]  ;;  %v2804_v14 = vld [vmem:[#allocation2 + $0xc] sm:$0xff]  ;;  %v2674_v6 = vpop.f32.mrf.mxu1 }
 0x409   : > { %v5087_v43 = vpop.eup %5086  ;;  %v4562_v54 = vpop.f32.mrf.mxu0  ;;  %v2867_v23 = vld [vmem:[#allocation2 + $0x8] sm:$0xff]  ;;  %v4936_v26 = vpack.i.bf16 %v2804_v14, %v2803_v13  ;;  %v2789_v16 = vld [vmem:[#allocation2 + $0x13] sm:$0xff]  ;;  %v4492_v8 = vadd.f32 %v6388_v32, %v6379_v25 }
 0x40a   : > { %4932 = vrot.lane.b32.xlu0 %v4931_v57, %s5158_s21  ;;  %2759 = vst.msk [vmem:[#allocation2 + $0x25] sm:$0xff] %vm1355_vm10, %v5087_v43  ;;  %v2731_v0 = vadd.f32 %v6436_v60, %v2708_v19  ;;  %v2660_v5 = vadd.f32 %v4695_v50, %v2515_v31  ;;  %v4563_v22 = vadd.f32 %v4562_v54, %v4561_v51  ;;  %v2819_v21 = vld [vmem:[#allocation2 + $0x5] sm:$0xff]  ;;  %v2852_v10 = vld [vmem:[#allocation2 + $0xf] sm:$0xff] }
 0x40b   : > { %3155 = vrot.lane.b32.xlu1 %v2867_v23, %s5161_s16  ;;  %v4564_v37 = vpop.f32.mrf.mxu0  ;;  %v4941_v28 = vpack.i.bf16 %v2820_v34, %v2819_v21  ;;  %v2868_v44 = vld [vmem:[#allocation2 + $0x10] sm:$0xff]  ;;  %v4495_v54 = vadd.f32 %v6400_v46, %v6394_v38  ;;  %v4498_v38 = vadd.f32 %v6412_v41, %v6406_v36 }
 0x40c   : > { %5094 = vtanh.f32 %v2731_v0  ;;  %v2709_v29 = vmul.f32 %v6426_v58, %v2660_v5  ;;  %v2520_v7 = vadd.f32 %v4563_v22, %v4483_v3  ;;  %v2805_v30 = vld [vmem:[#allocation2 + $0x14] sm:$0xff] }
 0x40d   : > { %v5089_v42 = vpop.eup %5088  ;;  %v4565_v48 = vpop.f32.mrf.mxu0  ;;  %v2790_v11 = vld [vmem:[#allocation2 + $0x1b] sm:$0xff] }
 0x40e   : > { %4937 = vrot.lane.b32.xlu0 %v4936_v26, %s5161_s16  ;;  %2760 = vst.msk [vmem:[#allocation2 + $0x2d] sm:$0xff] %vm1355_vm10, %v5089_v42  ;;  %v2732_v53 = vadd.f32 %v6436_v60, %v2709_v29  ;;  %v2665_v27 = vadd.f32 %v2664_v1, %v2520_v7  ;;  %v4566_v61 = vadd.f32 %v4565_v48, %v4564_v37  ;;  %v2806_v62 = vld [vmem:[#allocation2 + $0x1c] sm:$0xff] }
 0x40f   : > { %3093 = vrot.lane.b32.xlu1 %v2852_v10, %s5158_s21  ;;  %v4567_v56 = vpop.f32.mrf.mxu0  ;;  %v4946_v17 = vpack.i.bf16 %v2790_v11, %v2789_v16  ;;  %v4951_v24 = vpack.i.bf16 %v2806_v62, %v2805_v30  ;;  %v2822_v51 = vld [vmem:[#allocation2 + $0x1d] sm:$0xff]  ;;  %v2821_v14 = vld [vmem:[#allocation2 + $0x15] sm:$0xff] }
 0x410   : > { %5096 = vtanh.f32 %v2732_v53  ;;  %v2710_v50 = vmul.f32 %v6426_v58, %v2665_v27  ;;  %v2525_v33 = vadd.f32 %v4566_v61, %v4486_v12  ;;  %v2853_v13 = vld [vmem:[#allocation2 + $0x17] sm:$0xff]  ;;  %v4956_v32 = vpack.i.bf16 %v2822_v51, %v2821_v14 }
 0x411   : > { %v5091_v40 = vpop.eup %5090  ;;  %v4568_v18 = vpop.f32.mrf.mxu0  ;;  %v2869_v26 = vld [vmem:[#allocation2 + $0x18] sm:$0xff]  ;;  %v2870_v1 = vld [vmem:[#allocation2 + $0x20] sm:$0xff] }
 0x412   : > { %4942 = vrot.lane.b32.xlu0 %v4941_v28, %s5162_s24  ;;  %2761 = vst.msk [vmem:[#allocation2 + $0x35] sm:$0xff] %vm1355_vm10, %v5091_v40  ;;  %v2733_v45 = vadd.f32 %v6436_v60, %v2710_v50  ;;  %v2670_v35 = vadd.f32 %v4698_v4, %v2525_v33  ;;  %v4569_v2 = vadd.f32 %v4568_v18, %v4567_v56  ;;  %v4704_v4 = vpop.f32.mrf.mxu1  ;;  %v2854_v53 = vld [vmem:[#allocation2 + $0x1f] sm:$0xff] }
 0x413   : > { %4947 = vrot.lane.b32.xlu1 %v4946_v17, %s5158_s21  ;;  %v4570_v55 = vpop.f32.mrf.mxu0  ;;  %v2791_v11 = vld [vmem:[#allocation2 + $0x23] sm:$0xff] }
 0x414   : > { %5098 = vtanh.f32 %v2733_v45  ;;  %v2711_v9 = vmul.f32 %v6426_v58, %v2670_v35  ;;  %v2530_v59 = vadd.f32 %v4569_v2, %v4489_v39  ;;  %v2684_v7 = vpop.f32.mrf.mxu1  ;;  %v2823_v45 = vld [vmem:[#allocation2 + $0x25] sm:$0xff] }
 0x415   : > { %v5093_v63 = vpop.eup %5092  ;;  %v4571_v20 = vpop.f32.mrf.mxu0  ;;  %v2792_v27 = vld [vmem:[#allocation2 + $0x2b] sm:$0xff] }
 0x416   : > { %3157 = vrot.lane.b32.xlu0 %v2868_v44, %s5161_s16  ;;  %2762 = vst.msk [vmem:[#allocation2 + $0x3d] sm:$0xff] %vm1355_vm10, %v5093_v63  ;;  %v2734_v52 = vadd.f32 %v6436_v60, %v2711_v9  ;;  %v2675_v15 = vadd.f32 %v2674_v6, %v2530_v59  ;;  %v4572_v47 = vadd.f32 %v4571_v20, %v4570_v55  ;;  %v2855_v10 = vld [vmem:[#allocation2 + $0x27] sm:$0xff] }
 0x417   : > { %4952 = vrot.lane.b32.xlu1 %v4951_v24, %s5161_s16  ;;  %v4573_v57 = vpop.f32.mrf.mxu0  ;;  %v4961_v56 = vpack.i.bf16 %v2792_v27, %v2791_v11  ;;  %v2808_v50 = vld [vmem:[#allocation2 + $0x2c] sm:$0xff] }
 0x418   : > { %5100 = vtanh.f32 %v2734_v52  ;;  %v2712_v19 = vmul.f32 %v6426_v58, %v2675_v15  ;;  %v2535_v31 = vadd.f32 %v4572_v47, %v4492_v8  ;;  %v2871_v40 = vld [vmem:[#allocation2 + $0x28] sm:$0xff] }
 0x419   : > { %v5095_v43 = vpop.eup %5094  ;;  %v4574_v25 = vpop.f32.mrf.mxu0  ;;  %v2824_v17 = vld [vmem:[#allocation2 + $0x2d] sm:$0xff]  ;;  %v2825_v15 = vld [vmem:[#allocation2 + $0x35] sm:$0xff] }
 0x41a   : > { %3095 = vrot.lane.b32.xlu0 %v2853_v13, %s5158_s21  ;;  %2763 = vst.msk [vmem:[#allocation2 + $0x55] sm:$0xff] %vm1355_vm10, %v5095_v43  ;;  %v2735_v3 = vadd.f32 %v6436_v60, %v2712_v19  ;;  %v2680_v0 = vadd.f32 %v4701_v49, %v2535_v31  ;;  %v4575_v5 = vadd.f32 %v4574_v25, %v4573_v57  ;;  %v2807_v49 = vld [vmem:[#allocation2 + $0x24] sm:$0xff]  ;;  %v2793_v9 = vld [vmem:[#allocation2 + $0x33] sm:$0xff] }
 0x41b   : > { %4957 = vrot.lane.b32.xlu1 %v4956_v32, %s5162_s24  ;;  %v4576_v22 = vpop.f32.mrf.mxu0  ;;  %v4966_v18 = vpack.i.bf16 %v2808_v50, %v2807_v49  ;;  %v4971_v35 = vpack.i.bf16 %v2824_v17, %v2823_v45  ;;  %v2872_v63 = vld [vmem:[#allocation2 + $0x30] sm:$0xff] }
 0x41c   : > { %5102 = vtanh.f32 %v2735_v3  ;;  %v2713_v23 = vmul.f32 %v6426_v58, %v2680_v0  ;;  %v2540_v37 = vadd.f32 %v4575_v5, %v4495_v54  ;;  %v2809_v6 = vld [vmem:[#allocation2 + $0x34] sm:$0xff] }
 0x41d   : > { %v5097_v29 = vpop.eup %5096  ;;  %v4577_v21 = vpop.f32.mrf.mxu0  ;;  %v2794_v62 = vld [vmem:[#allocation2 + $0x3b] sm:$0xff] }
 0x41e   : > { %3159 = vrot.lane.b32.xlu0 %v2869_v26, %s5161_s16  ;;  %2764 = vst.msk [vmem:[#allocation2 + $0x5d] sm:$0xff] %vm1355_vm10, %v5097_v29  ;;  %v2736_v46 = vadd.f32 %v6436_v60, %v2713_v23  ;;  %v2685_v34 = vadd.f32 %v2684_v7, %v2540_v37  ;;  %v4578_v42 = vadd.f32 %v4577_v21, %v4576_v22  ;;  %v2858_v55 = vld [vmem:[#allocation2 + $0x3f] sm:$0xff]  ;;  %v2857_v52 = vld [vmem:[#allocation2 + $0x37] sm:$0xff] }
 0x41f   : > { %3161 = vrot.lane.b32.xlu1 %v2870_v1, %s5161_s16  ;;  %v4976_v44 = vpack.i.bf16 %v2794_v62, %v2793_v9  ;;  %v2810_v30 = vld [vmem:[#allocation2 + $0x3c] sm:$0xff] }
 0x420   : > { %5104 = vtanh.f32 %v2736_v46  ;;  %v2714_v48 = vmul.f32 %v6426_v58, %v2685_v34  ;;  %v2545_v12 = vadd.f32 %v4578_v42, %v4498_v38  ;;  %v4981_v24 = vpack.i.bf16 %v2810_v30, %v2809_v6  ;;  %v2826_v8 = vld [vmem:[#allocation2 + $0x3d] sm:$0xff] }
 0x421   : > { %v5099_v61 = vpop.eup %5098  ;;  %v4986_v47 = vpack.i.bf16 %v2826_v8, %v2825_v15  ;;  %v2873_v51 = vld [vmem:[#allocation2 + $0x38] sm:$0xff]  ;;  %v2771_v15 = vld [vmem:[#allocation2 + $0x2] sm:$0xff] }
 0x422   : > { %3097 = vrot.lane.b32.xlu0 %v2854_v53, %s5158_s21  ;;  %2765 = vst.msk [vmem:[#allocation2 + $0x65] sm:$0xff] %vm1355_vm10, %v5099_v61  ;;  %v2737_v36 = vadd.f32 %v6436_v60, %v2714_v48  ;;  %v2690_v41 = vadd.f32 %v4704_v4, %v2545_v12  ;;  %v2795_v31 = vld [vmem:[#allocation2 + $0x53] sm:$0xff] }
 0x423   : > { %3099 = vrot.lane.b32.xlu1 %v2855_v10, %s5158_s21  ;;  %v2811_v4 = vld [vmem:[#allocation2 + $0x54] sm:$0xff] }
 0x424   : > { %5106 = vtanh.f32 %v2737_v36  ;;  %v2715_v28 = vmul.f32 %v6426_v58, %v2690_v41  ;;  %v2874_v58 = vld [vmem:[#allocation2 + $0x40] sm:$0xff]  ;;  %v2827_v3 = vld [vmem:[#allocation2 + $0x55] sm:$0xff] }
 0x425   : > { %v5101_v33 = vpop.eup %5100  ;;  %v2796_v57 = vld [vmem:[#allocation2 + $0x5b] sm:$0xff] }
 0x426   : > { %4962 = vrot.lane.b32.xlu0 %v4961_v56, %s5158_s21  ;;  %2766 = vst.msk [vmem:[#allocation2 + $0x6d] sm:$0xff] %vm1355_vm10, %v5101_v33  ;;  %v2738_v16 = vadd.f32 %v6436_v60, %v2715_v28  ;;  %v2856_v60 = vld [vmem:[#allocation2 + $0x2f] sm:$0xff]  ;;  %v2859_v19 = vld [vmem:[#allocation2 + $0x57] sm:$0xff]  ;;  %v4991_v13 = vpack.i.bf16 %v2796_v57, %v2795_v31 }
 0x427   : > { %3163 = vrot.lane.b32.xlu1 %v2871_v40, %s5161_s16  ;;  %v2812_v14 = vld [vmem:[#allocation2 + $0x5c] sm:$0xff] }
 0x428   : > { %5108 = vtanh.f32 %v2738_v16  ;;  %v2875_v43 = vld [vmem:[#allocation2 + $0x58] sm:$0xff]  ;;  %v4996_v25 = vpack.i.bf16 %v2812_v14, %v2811_v4 }
 0x429   : > { %v5103_v39 = vpop.eup %5102  ;;  %v2828_v32 = vld [vmem:[#allocation2 + $0x5d] sm:$0xff]  ;;  %v2829_v46 = vld [vmem:[#allocation2 + $0x65] sm:$0xff] }
 0x42a   : > { %4967 = vrot.lane.b32.xlu0 %v4966_v18, %s5161_s16  ;;  %2767 = vst.msk [vmem:[#allocation2 + $0x75] sm:$0xff] %vm1355_vm10, %v5103_v39  ;;  %v2860_v54 = vld [vmem:[#allocation2 + $0x5f] sm:$0xff]  ;;  %v5001_v5 = vpack.i.bf16 %v2828_v32, %v2827_v3  ;;  %v2772_v3 = vld [vmem:[#allocation2 + $0xa] sm:$0xff] }
 0x42b   : > { %3169 = vrot.lane.b32.xlu1 %v2874_v58, %s5161_s16  ;;  %v2797_v22 = vld [vmem:[#allocation2 + $0x63] sm:$0xff] }
 0x42c   : > { %v2876_v26 = vld [vmem:[#allocation2 + $0x60] sm:$0xff] }
 0x42d   : > { %v5105_v2 = vpop.eup %5104  ;;  %v2798_v0 = vld [vmem:[#allocation2 + $0x6b] sm:$0xff] }
 0x42e   : > { %4972 = vrot.lane.b32.xlu0 %v4971_v35, %s5162_s24  ;;  %2768 = vst.msk [vmem:[#allocation2 + $0x7d] sm:$0xff] %vm1355_vm10, %v5105_v2  ;;  %v5006_v23 = vpack.i.bf16 %v2798_v0, %v2797_v22  ;;  %v2814_v37 = vld [vmem:[#allocation2 + $0x6c] sm:$0xff]  ;;  %v2813_v29 = vld [vmem:[#allocation2 + $0x64] sm:$0xff] }
 0x42f   : > { %3101 = vrot.lane.b32.xlu1 %v2856_v60, %s5158_s21  ;;  %v5011_v7 = vpack.i.bf16 %v2814_v37, %v2813_v29  ;;  %v2830_v21 = vld [vmem:[#allocation2 + $0x6d] sm:$0xff] }
 0x430   : > { %v2861_v38 = vld [vmem:[#allocation2 + $0x67] sm:$0xff]  ;;  %v5016_v34 = vpack.i.bf16 %v2830_v21, %v2829_v46  ;;  %v2837_v46 = vld [vmem:[#allocation2 + $0x16] sm:$0xff] }
 0x431   : > { %v5107_v59 = vpop.eup %5106  ;;  %v2877_v42 = vld [vmem:[#allocation2 + $0x68] sm:$0xff]  ;;  %v2878_v1 = vld [vmem:[#allocation2 + $0x70] sm:$0xff] }
 0x432   : > { %3105 = vrot.lane.b32.xlu0 %v2858_v55, %s5158_s21  ;;  %2769 = vst.msk [vmem:[#allocation2 + $0x85] sm:$0xff] %vm1355_vm10, %v5107_v59  ;;  %v2862_v48 = vld [vmem:[#allocation2 + $0x6f] sm:$0xff] }
 0x433   : > { %4977 = vrot.lane.b32.xlu1 %v4976_v44, %s5158_s21  ;;  %v2799_v27 = vld [vmem:[#allocation2 + $0x73] sm:$0xff]  ;;  %v2835_v44 = vld [vmem:[#allocation2 + $0x6] sm:$0xff] }
 0x434   : > { %v2815_v10 = vld [vmem:[#allocation2 + $0x74] sm:$0xff] }
 0x435   : > { %v5109_v20 = vpop.eup %5108  ;;  %v2800_v12 = vld [vmem:[#allocation2 + $0x7b] sm:$0xff] }
 0x436   : > { %3165 = vrot.lane.b32.xlu0 %v2872_v63, %s5161_s16  ;;  %2770 = vst.msk [vmem:[#allocation2 + $0x8d] sm:$0xff] %vm1355_vm10, %v5109_v20  ;;  %v2863_v53 = vld [vmem:[#allocation2 + $0x77] sm:$0xff]  ;;  %v5021_v61 = vpack.i.bf16 %v2800_v12, %v2799_v27 }
 0x437   : > { %4982 = vrot.lane.b32.xlu1 %v4981_v24, %s5161_s16  ;;  %v2816_v36 = vld [vmem:[#allocation2 + $0x7c] sm:$0xff] }
 0x438   : > { %v2879_v41 = vld [vmem:[#allocation2 + $0x78] sm:$0xff]  ;;  %v5026_v11 = vpack.i.bf16 %v2816_v36, %v2815_v10 }
 0x439   : > { %v2832_v56 = vld [vmem:[#allocation2 + $0x7d] sm:$0xff]  ;;  %v2831_v50 = vld [vmem:[#allocation2 + $0x75] sm:$0xff]  ;;  %v2833_v35 = vld [vmem:[#allocation2 + $0x85] sm:$0xff] }
 0x43a   : > { %3103 = vrot.lane.b32.xlu0 %v2857_v52, %s5158_s21  ;;  %v2864_v28 = vld [vmem:[#allocation2 + $0x7f] sm:$0xff]  ;;  %v5031_v16 = vpack.i.bf16 %v2832_v56, %v2831_v50 }
 0x43b   : > { %4987 = vrot.lane.b32.xlu1 %v4986_v47, %s5162_s24  ;;  %v2801_v40 = vld [vmem:[#allocation2 + $0x83] sm:$0xff] }
 0x43c   : > { %v2880_v17 = vld [vmem:[#allocation2 + $0x80] sm:$0xff] }
 0x43d   : > { %v2802_v33 = vld [vmem:[#allocation2 + $0x8b] sm:$0xff] }
 0x43e   : > { %3167 = vrot.lane.b32.xlu0 %v2873_v51, %s5161_s16  ;;  %v5036_v49 = vpack.i.bf16 %v2802_v33, %v2801_v40  ;;  %v2818_v18 = vld [vmem:[#allocation2 + $0x8c] sm:$0xff]  ;;  %v2817_v39 = vld [vmem:[#allocation2 + $0x84] sm:$0xff] }
 0x43f   : > { %3107 = vrot.lane.b32.xlu1 %v2859_v19, %s5158_s21  ;;  %v5041_v58 = vpack.i.bf16 %v2818_v18, %v2817_v39  ;;  %v2865_v45 = vld [vmem:[#allocation2 + $0x87] sm:$0xff]  ;;  %v2882_v60 = vld [vmem:[#allocation2 + $0x90] sm:$0xff] }
 0x440   : > { %v2881_v2 = vld [vmem:[#allocation2 + $0x88] sm:$0xff] }
 0x441   : > { %v2866_v62 = vld [vmem:[#allocation2 + $0x8f] sm:$0xff]  ;;  %v2839_v39 = vld [vmem:[#allocation2 + $0x26] sm:$0xff] }
 0x442   : > { %4992 = vrot.lane.b32.xlu0 %v4991_v13, %s5158_s21  ;;  %v2834_v55 = vld [vmem:[#allocation2 + $0x8d] sm:$0xff] }
 0x443   : > { %3171 = vrot.lane.b32.xlu1 %v2875_v43, %s5161_s16  ;;  %v2836_v43 = vld [vmem:[#allocation2 + $0xe] sm:$0xff] }
 0x446   : > { %4997 = vrot.lane.b32.xlu0 %v4996_v25, %s5161_s16 }
 0x447   : > { %3109 = vrot.lane.b32.xlu1 %v2860_v54, %s5158_s21 }
 0x44a   : > { %5002 = vrot.lane.b32.xlu0 %v5001_v5, %s5162_s24 }
 0x44b   : > { %5007 = vrot.lane.b32.xlu1 %v5006_v23, %s5158_s21 }
 0x44e   : > { %3173 = vrot.lane.b32.xlu0 %v2876_v26, %s5161_s16 }
 0x44f   : > { %5012 = vrot.lane.b32.xlu1 %v5011_v7, %s5161_s16 }
 0x452   : > { %3111 = vrot.lane.b32.xlu0 %v2861_v38, %s5158_s21  ;;  %v2773_v38 = vld [vmem:[#allocation2 + $0x12] sm:$0xff] }
 0x453   : > { %5017 = vrot.lane.b32.xlu1 %v5016_v34, %s5162_s24 }
 0x456   : > { %3175 = vrot.lane.b32.xlu0 %v2877_v42, %s5161_s16 }
 0x457   : > { %3177 = vrot.lane.b32.xlu1 %v2878_v1, %s5161_s16 }
 0x45a   : > { %3113 = vrot.lane.b32.xlu0 %v2862_v48, %s5158_s21 }
 0x45b   : > { %3115 = vrot.lane.b32.xlu1 %v2863_v53, %s5158_s21 }
 0x45e   : > { %5022 = vrot.lane.b32.xlu0 %v5021_v61, %s5158_s21 }
 0x45f   : > { %3179 = vrot.lane.b32.xlu1 %v2879_v41, %s5161_s16 }
 0x462   : > { %5027 = vrot.lane.b32.xlu0 %v5026_v11, %s5161_s16  ;;  %v2838_v11 = vld [vmem:[#allocation2 + $0x1e] sm:$0xff] }
 0x463   : > { %3117 = vrot.lane.b32.xlu1 %v2864_v28, %s5158_s21  ;;  %v2774_v28 = vld [vmem:[#allocation2 + $0x1a] sm:$0xff] }
 0x466   : > { %5032 = vrot.lane.b32.xlu0 %v5031_v16, %s5162_s24 }
 0x467   : > { %5037 = vrot.lane.b32.xlu1 %v5036_v49, %s5158_s21 }
 0x46a   : > { %3181 = vrot.lane.b32.xlu0 %v2880_v17, %s5161_s16 }
 0x46b   : > { %5042 = vrot.lane.b32.xlu1 %v5041_v58, %s5161_s16 }
 0x46e   : > { %3119 = vrot.lane.b32.xlu0 %v2865_v45, %s5158_s21 }
 0x46f   : > { %3055 = vrot.lane.b32.xlu1 %v2833_v35, %s5162_s24 }
 0x472   : > { %3183 = vrot.lane.b32.xlu0 %v2881_v2, %s5161_s16 }
 0x473   : > { %3185 = vrot.lane.b32.xlu1 %v2882_v60, %s5161_s16 }
 0x476   : > { %3121 = vrot.lane.b32.xlu0 %v2866_v62, %s5158_s21 }
 0x479   : > { %v3092_v9 = vpop.permute.xlu1 %3091 }
 0x47a   : > { %3057 = vrot.lane.b32.xlu0 %v2834_v55, %s5162_s24  ;;  %v3252_v30 = vsel %vm1355_vm10, %v2835_v44, %v3092_v9 }
 0x47c   : > { %v4933_v59 = vpop.permute.xlu0 %4932 }
 0x47d   : > { %v3156_v63 = vpop.permute.xlu1 %3155  ;;  %v4934_v24 = vunpack.i.l.bf16 %v4933_v59  ;;  %v4935_v51 = vunpack.i.h.bf16 %v4933_v59  ;;  %v2775_v59 = vld [vmem:[#allocation2 + $0x22] sm:$0xff] }
 0x47e   : > { %v3268_v6 = vsel %vm452_vm2, %v3252_v30, %v3156_v63 }
 0x47f   : > { %4357 = vmatprep.mubr.msk.f32.mxu0 %vm3235_vm14, %v3268_v6  ;;  %v3203_v57 = vsel %vm1355_vm10, %v2771_v15, %v4934_v24  ;;  %v3204_v5 = vsel %vm1355_vm10, %v2772_v3, %v4935_v51  ;;  %v2840_v51 = vld [vmem:[#allocation2 + $0x2e] sm:$0xff] }
 0x480   : > { %v4938_v20 = vpop.permute.xlu0 %4937 }
 0x481   : > { %v4939_v8 = vunpack.i.l.bf16 %v4938_v20  ;;  %v3094_v52 = vpop.permute.xlu1 %3093  ;;  %v4940_v31 = vunpack.i.h.bf16 %v4938_v20 }
 0x482   : > { %v3253_v32 = vsel %vm1355_vm10, %v2836_v43, %v3094_v52 }
 0x483   : > { %v3219_v14 = vsel %vm452_vm2, %v3203_v57, %v4939_v8  ;;  %v3220_v23 = vsel %vm452_vm2, %v3204_v5, %v4940_v31  ;;  %v2776_v57 = vld [vmem:[#allocation2 + $0x2a] sm:$0xff]  ;;  %v2777_v5 = vld [vmem:[#allocation2 + $0x32] sm:$0xff] }
 0x484   : > { %v4943_v47 = vpop.permute.xlu0 %4942 }
 0x485   : > { %v4944_v19 = vunpack.i.l.bf16 %v4943_v47  ;;  %v4948_v13 = vpop.permute.xlu1 %4947  ;;  %v4945_v4 = vunpack.i.h.bf16 %v4943_v47 }
 0x486   : > { %v4949_v37 = vunpack.i.l.bf16 %v4948_v13  ;;  %v4950_v53 = vunpack.i.h.bf16 %v4948_v13 }
 0x487   : > { %v3236_v25 = vsel %vm3235_vm14, %v3219_v14, %v4944_v19  ;;  %v3237_v26 = vsel %vm3235_vm14, %v3220_v23, %v4945_v4  ;;  %v2841_v23 = vld [vmem:[#allocation2 + $0x36] sm:$0xff] }
 0x488   : > { %v3158_v54 = vpop.permute.xlu0 %3157  ;;  %3425 = vmatmul.mubr.f32.vlgmr.msra.gmra.mxu0 %v3236_v25  ;;  %v3205_v42 = vsel %vm1355_vm10, %v2773_v38, %v4949_v37  ;;  %v3206_v33 = vsel %vm1355_vm10, %v2774_v28, %v4950_v53 }
 0x489   : > { %v3269_v0 = vsel %vm452_vm2, %v3253_v32, %v3158_v54  ;;  %v4953_v22 = vpop.permute.xlu1 %4952 }
 0x48a   : > { %4358 = vmatprep.mubr.msk.f32.mxu0 %vm3235_vm14, %v3269_v0  ;;  %v4954_v29 = vunpack.i.l.bf16 %v4953_v22  ;;  %v4955_v36 = vunpack.i.h.bf16 %v4953_v22  ;;  %v2842_v22 = vld [vmem:[#allocation2 + $0x3e] sm:$0xff] }
 0x48c   : > { %v3096_v7 = vpop.permute.xlu0 %3095  ;;  %3430 = vmatmul.mubr.f32.gmra.mxu0 %v3237_v26  ;;  %v3221_v12 = vsel %vm452_vm2, %v3205_v42, %v4954_v29  ;;  %v3222_v49 = vsel %vm452_vm2, %v3206_v33, %v4955_v36 }
 0x48d   : > { %v4958_v21 = vpop.permute.xlu1 %4957  ;;  %v3254_v1 = vsel %vm1355_vm10, %v2837_v46, %v3096_v7 }
 0x48e   : > { %v4959_v34 = vunpack.i.l.bf16 %v4958_v21  ;;  %v4960_v10 = vunpack.i.h.bf16 %v4958_v21 }
 0x490   : > { %v3160_v48 = vpop.permute.xlu0 %3159  ;;  %v3238_v61 = vsel %vm3235_vm14, %v3221_v12, %v4959_v34  ;;  %v3239_v18 = vsel %vm3235_vm14, %v3222_v49, %v4960_v10 }
 0x491   : > { %v3270_v27 = vsel %vm452_vm2, %v3254_v1, %v3160_v48  ;;  %v3162_v41 = vpop.permute.xlu1 %3161 }
 0x492   : > { %4359 = vmatprep.mubr.msk.f32.mxu0 %vm3235_vm14, %v3270_v27  ;;  %v2778_v27 = vld [vmem:[#allocation2 + $0x3a] sm:$0xff] }
 0x493   : > { %3435 = vmatmul.mubr.f32.gmra.mxu0 %v3238_v61 }
 0x494   : > { %v3098_v56 = vpop.permute.xlu0 %3097 }
 0x495   : > { %v3255_v50 = vsel %vm1355_vm10, %v2838_v11, %v3098_v56  ;;  %v3100_v16 = vpop.permute.xlu1 %3099 }
 0x496   : > { %v3271_v40 = vsel %vm452_vm2, %v3255_v50, %v3162_v41  ;;  %v3256_v58 = vsel %vm1355_vm10, %v2839_v39, %v3100_v16  ;;  %v2843_v41 = vld [vmem:[#allocation2 + $0x56] sm:$0xff] }
 0x497   : > { %4360 = vmatprep.mubr.msk.f32.mxu0 %vm3235_vm14, %v3271_v40 }
 0x498   : > { %v4963_v17 = vpop.permute.xlu0 %4962  ;;  %3440 = vmatmul.mubr.f32.gmra.mxu0 %v3239_v18 }
 0x499   : > { %v3164_v45 = vpop.permute.xlu1 %3163  ;;  %v4964_v60 = vunpack.i.l.bf16 %v4963_v17  ;;  %v4965_v24 = vunpack.i.h.bf16 %v4963_v17  ;;  %v2779_v17 = vld [vmem:[#allocation2 + $0x52] sm:$0xff] }
 0x49a   : > { %v3272_v35 = vsel %vm452_vm2, %v3256_v58, %v3164_v45 }
 0x49b   : > { %4361 = vmatprep.mubr.msk.f32.mxu0 %vm3235_vm14, %v3272_v35  ;;  %v3207_v30 = vsel %vm1355_vm10, %v2775_v59, %v4964_v60  ;;  %v3208_v13 = vsel %vm1355_vm10, %v2776_v57, %v4965_v24  ;;  %v2781_v57 = vld [vmem:[#allocation2 + $0x62] sm:$0xff] }
 0x49c   : > { %v4968_v2 = vpop.permute.xlu0 %4967 }
 0x49d   : > { %v4969_v62 = vunpack.i.l.bf16 %v4968_v2  ;;  %v3170_v55 = vpop.permute.xlu1 %3169  ;;  %v4970_v52 = vunpack.i.h.bf16 %v4968_v2 }
 0x49f   : > { %v3223_v6 = vsel %vm452_vm2, %v3207_v30, %v4969_v62  ;;  %v3224_v43 = vsel %vm452_vm2, %v3208_v13, %v4970_v52  ;;  %v2844_v62 = vld [vmem:[#allocation2 + $0x5e] sm:$0xff] }
 0x4a0   : > { %v4973_v9 = vpop.permute.xlu0 %4972  ;;  %v2780_v30 = vld [vmem:[#allocation2 + $0x5a] sm:$0xff] }
 0x4a1   : > { %v4974_v44 = vunpack.i.l.bf16 %v4973_v9  ;;  %v3102_v63 = vpop.permute.xlu1 %3101  ;;  %v4975_v15 = vunpack.i.h.bf16 %v4973_v9 }
 0x4a2   : > { %v3257_v19 = vsel %vm1355_vm10, %v2840_v51, %v3102_v63 }
 0x4a3   : > { %v3240_v20 = vsel %vm3235_vm14, %v3223_v6, %v4974_v44  ;;  %v3241_v25 = vsel %vm3235_vm14, %v3224_v43, %v4975_v15 }
 0x4a4   : > { %v3106_v8 = vpop.permute.xlu0 %3105  ;;  %3445 = vmatmul.mubr.f32.gmra.mxu0 %v3240_v20 }
 0x4a5   : > { %v4978_v47 = vpop.permute.xlu1 %4977  ;;  %v3259_v29 = vsel %vm1355_vm10, %v2842_v22, %v3106_v8  ;;  %v2846_v22 = vld [vmem:[#allocation2 + $0x6e] sm:$0xff] }
 0x4a6   : > { %v4979_v32 = vunpack.i.l.bf16 %v4978_v47  ;;  %v4980_v7 = vunpack.i.h.bf16 %v4978_v47  ;;  %v3275_v53 = vsel %vm452_vm2, %v3259_v29, %v3170_v55 }
 0x4a8   : > { %v3166_v31 = vpop.permute.xlu0 %3165  ;;  %v3209_v26 = vsel %vm1355_vm10, %v2777_v5, %v4979_v32  ;;  %v3210_v36 = vsel %vm1355_vm10, %v2778_v27, %v4980_v7 }
 0x4a9   : > { %v3273_v14 = vsel %vm452_vm2, %v3257_v19, %v3166_v31  ;;  %v4983_v4 = vpop.permute.xlu1 %4982  ;;  %v2845_v19 = vld [vmem:[#allocation2 + $0x66] sm:$0xff] }
 0x4aa   : > { %4362 = vmatprep.mubr.msk.f32.mxu0 %vm3235_vm14, %v3273_v14  ;;  %v4984_v54 = vunpack.i.l.bf16 %v4983_v4  ;;  %v4985_v34 = vunpack.i.h.bf16 %v4983_v4 }
 0x4ab   : > { %3450 = vmatmul.mubr.f32.gmra.mxu0 %v3241_v25 }
 0x4ac   : > { %v3104_v3 = vpop.permute.xlu0 %3103  ;;  %v3225_v46 = vsel %vm452_vm2, %v3209_v26, %v4984_v54  ;;  %v3226_v10 = vsel %vm452_vm2, %v3210_v36, %v4985_v34 }
 0x4ad   : > { %v4988_v0 = vpop.permute.xlu1 %4987  ;;  %v3258_v21 = vsel %vm1355_vm10, %v2841_v23, %v3104_v3 }
 0x4ae   : > { %v4989_v37 = vunpack.i.l.bf16 %v4988_v0  ;;  %v4990_v48 = vunpack.i.h.bf16 %v4988_v0 }
 0x4b0   : > { %v3168_v38 = vpop.permute.xlu0 %3167  ;;  %v3242_v1 = vsel %vm3235_vm14, %v3225_v46, %v4989_v37  ;;  %v3243_v28 = vsel %vm3235_vm14, %v3226_v10, %v4990_v48  ;;  %v2782_v37 = vld [vmem:[#allocation2 + $0x6a] sm:$0xff]  ;;  %v2783_v10 = vld [vmem:[#allocation2 + $0x72] sm:$0xff] }
 0x4b1   : > { %v3274_v42 = vsel %vm452_vm2, %v3258_v21, %v3168_v38  ;;  %v3108_v12 = vpop.permute.xlu1 %3107 }
 0x4b2   : > { %4363 = vmatprep.mubr.msk.f32.mxu0 %vm3235_vm14, %v3274_v42  ;;  %v3260_v11 = vsel %vm1355_vm10, %v2843_v41, %v3108_v12  ;;  %v2847_v42 = vld [vmem:[#allocation2 + $0x76] sm:$0xff] }
 0x4b3   : > { %3455 = vmatmul.mubr.f32.gmra.mxu0 %v3242_v1 }
 0x4b4   : > { %v4993_v61 = vpop.permute.xlu0 %4992  ;;  %4364 = vmatprep.mubr.msk.f32.mxu0 %vm3235_vm14, %v3275_v53 }
 0x4b5   : > { %v3172_v56 = vpop.permute.xlu1 %3171  ;;  %v4994_v16 = vunpack.i.l.bf16 %v4993_v61  ;;  %v4995_v39 = vunpack.i.h.bf16 %v4993_v61 }
 0x4b6   : > { %v3276_v50 = vsel %vm452_vm2, %v3260_v11, %v3172_v56 }
 0x4b7   : > { %3460 = vmatmul.mubr.f32.gmra.mxu0 %v3243_v28  ;;  %v3211_v45 = vsel %vm1355_vm10, %v2779_v17, %v4994_v16  ;;  %v3212_v6 = vsel %vm1355_vm10, %v2780_v30, %v4995_v39 }
 0x4b8   : > { %v4998_v33 = vpop.permute.xlu0 %4997  ;;  %4365 = vmatprep.mubr.msk.f32.mxu0 %vm3235_vm14, %v3276_v50 }
 0x4b9   : > { %v4999_v40 = vunpack.i.l.bf16 %v4998_v33  ;;  %v3110_v49 = vpop.permute.xlu1 %3109  ;;  %v5000_v35 = vunpack.i.h.bf16 %v4998_v33 }
 0x4ba   : > { %v3261_v59 = vsel %vm1355_vm10, %v2844_v62, %v3110_v49 }
 0x4bb   : > { %v3227_v60 = vsel %vm452_vm2, %v3211_v45, %v4999_v40  ;;  %v3228_v24 = vsel %vm452_vm2, %v3212_v6, %v5000_v35  ;;  %v2848_v40 = vld [vmem:[#allocation2 + $0x7e] sm:$0xff] }
 0x4bc   : > { %v5003_v18 = vpop.permute.xlu0 %5002 }
 0x4bd   : > { %v5004_v58 = vunpack.i.l.bf16 %v5003_v18  ;;  %v5008_v2 = vpop.permute.xlu1 %5007  ;;  %v5005_v55 = vunpack.i.h.bf16 %v5003_v18 }
 0x4be   : > { %v5009_v8 = vunpack.i.l.bf16 %v5008_v2  ;;  %v5010_v25 = vunpack.i.h.bf16 %v5008_v2 }
 0x4bf   : > { %v3244_v9 = vsel %vm3235_vm14, %v3227_v60, %v5004_v58  ;;  %v3245_v52 = vsel %vm3235_vm14, %v3228_v24, %v5005_v55  ;;  %v2784_v58 = vld [vmem:[#allocation2 + $0x7a] sm:$0xff] }
 0x4c0   : > { %v3174_v44 = vpop.permute.xlu0 %3173  ;;  %3465 = vmatmul.mubr.f32.gmra.mxu0 %v3244_v9  ;;  %v3213_v13 = vsel %vm1355_vm10, %v2781_v57, %v5009_v8  ;;  %v3214_v29 = vsel %vm1355_vm10, %v2782_v37, %v5010_v25  ;;  %v2850_v57 = vld [vmem:[#allocation2 + $0x8e] sm:$0xff] }
 0x4c1   : > { %v3277_v63 = vsel %vm452_vm2, %v3261_v59, %v3174_v44  ;;  %v5013_v20 = vpop.permute.xlu1 %5012  ;;  %v2785_v44 = vld [vmem:[#allocation2 + $0x82] sm:$0xff] }
 0x4c2   : > { %4366 = vmatprep.mubr.msk.f32.mxu0 %vm3235_vm14, %v3277_v63  ;;  %v5014_v15 = vunpack.i.l.bf16 %v5013_v20  ;;  %v5015_v3 = vunpack.i.h.bf16 %v5013_v20  ;;  %v2849_v63 = vld [vmem:[#allocation2 + $0x86] sm:$0xff] }
 0x4c4   : > { %v3112_v47 = vpop.permute.xlu0 %3111  ;;  %3470 = vmatmul.mubr.f32.gmra.mxu0 %v3245_v52  ;;  %v3229_v4 = vsel %vm452_vm2, %v3213_v13, %v5014_v15  ;;  %v3230_v38 = vsel %vm452_vm2, %v3214_v29, %v5015_v3  ;;  %v6716_v3 = vld [vmem:[%s7037_s8] ss:$0 sm:$0xff] }
 0x4c5   : > { %v5018_v51 = vpop.permute.xlu1 %5017  ;;  %v3262_v14 = vsel %vm1355_vm10, %v2845_v19, %v3112_v47 }
 0x4c6   : > { %v5019_v31 = vunpack.i.l.bf16 %v5018_v51  ;;  %v5020_v5 = vunpack.i.h.bf16 %v5018_v51 }
 0x4c8   : > { %v3176_v43 = vpop.permute.xlu0 %3175  ;;  %v3246_v54 = vsel %vm3235_vm14, %v3229_v4, %v5019_v31  ;;  %v3247_v46 = vsel %vm3235_vm14, %v3230_v38, %v5020_v5  ;;  %v6721_v5 = vld [vmem:[%s7038_s9] ss:$0 sm:$0xff]  ;;  %v3993_v38 = vld [vmem:[%s7039_s10 + $0x48] sm:$0xff] }
 0x4c9   : > { %v3278_v32 = vsel %vm452_vm2, %v3262_v14, %v3176_v43  ;;  %v3178_v0 = vpop.permute.xlu1 %3177  ;;  %v2786_v43 = vld [vmem:[#allocation2 + $0x8a] sm:$0xff]  ;;  %4705 = vmatprep.subr.mxu1 %v3993_v38 }
 0x4ca   : > { %4367 = vmatprep.mubr.msk.f32.mxu0 %vm3235_vm14, %v3278_v32  ;;  %4706 = vmatpush3.msra.mxu1 %v3993_v38 }
 0x4cb   : > { %3475 = vmatmul.mubr.f32.gmra.mxu0 %v3246_v54 }
 0x4cc   : > { %v3114_v23 = vpop.permute.xlu0 %3113 }
 0x4cd   : > { %v3263_v26 = vsel %vm1355_vm10, %v2846_v22, %v3114_v23  ;;  %v3116_v7 = vpop.permute.xlu1 %3115 }
 0x4ce   : > { %v3279_v21 = vsel %vm452_vm2, %v3263_v26, %v3178_v0  ;;  %v3264_v1 = vsel %vm1355_vm10, %v2847_v42, %v3116_v7 }
 0x4cf   : > { %4368 = vmatprep.mubr.msk.f32.mxu0 %vm3235_vm14, %v3279_v21 }
 0x4d0   : > { %v5023_v34 = vpop.permute.xlu0 %5022  ;;  %3480 = vmatmul.mubr.f32.gmra.mxu0 %v3247_v46 }
 0x4d1   : > { %v3180_v48 = vpop.permute.xlu1 %3179  ;;  %v5024_v27 = vunpack.i.l.bf16 %v5023_v34  ;;  %v5025_v11 = vunpack.i.h.bf16 %v5023_v34  ;;  %v3992_v34 = vld [vmem:[%s7039_s10 + $0x40] sm:$0xff] }
 0x4d2   : > { %v3280_v12 = vsel %vm452_vm2, %v3264_v1, %v3180_v48  ;;  %4707 = vmatprep.subr.mxu1 %v3992_v34 }
 0x4d3   : > { %4369 = vmatprep.mubr.msk.f32.mxu0 %vm3235_vm14, %v3280_v12  ;;  %v3215_v28 = vsel %vm1355_vm10, %v2783_v10, %v5024_v27  ;;  %v3216_v35 = vsel %vm1355_vm10, %v2784_v58, %v5025_v11  ;;  %4708 = vmatpush3.msra.mxu1 %v3992_v34  ;;  %v3991_v12 = vld [vmem:[%s7039_s10 + $0x38] sm:$0xff]  ;;  %v3989_v10 = vld [vmem:[%s7039_s10 + $0x28] sm:$0xff] }
 0x4d4   : > { %v5028_v53 = vpop.permute.xlu0 %5027  ;;  %4709 = vmatprep.subr.mxu1 %v3991_v12 }
 0x4d5   : > { %v5029_v61 = vunpack.i.l.bf16 %v5028_v53  ;;  %v3118_v36 = vpop.permute.xlu1 %3117  ;;  %v5030_v50 = vunpack.i.h.bf16 %v5028_v53  ;;  %v3990_v53 = vld [vmem:[%s7039_s10 + $0x30] sm:$0xff]  ;;  %4710 = vmatpush3.msra.mxu1 %v3991_v12 }
 0x4d6   : > { %v3265_v17 = vsel %vm1355_vm10, %v2848_v40, %v3118_v36  ;;  %4711 = vmatprep.subr.mxu1 %v3990_v53  ;;  %v3985_v40 = vld [vmem:[%s7039_s10 + $0x8] sm:$0xff] }
 0x4d7   : > { %v3231_v16 = vsel %vm452_vm2, %v3215_v28, %v5029_v61  ;;  %v3232_v62 = vsel %vm452_vm2, %v3216_v35, %v5030_v50  ;;  %4712 = vmatpush3.msra.mxu1 %v3990_v53  ;;  %v3987_v50 = vld [vmem:[%s7039_s10 + $0x18] sm:$0xff] }
 0x4d8   : > { %v5033_v41 = vpop.permute.xlu0 %5032  ;;  %4713 = vmatprep.subr.mxu1 %v3989_v10 }
 0x4d9   : > { %v5034_v56 = vunpack.i.l.bf16 %v5033_v41  ;;  %v5038_v33 = vpop.permute.xlu1 %5037  ;;  %v5035_v49 = vunpack.i.h.bf16 %v5033_v41  ;;  %4714 = vmatpush3.msra.mxu1 %v3989_v10 }
 0x4da   : > { %v5039_v2 = vunpack.i.l.bf16 %v5038_v33  ;;  %v5040_v47 = vunpack.i.h.bf16 %v5038_v33  ;;  %v3986_v33 = vld [vmem:[%s7039_s10 + $0x10] sm:$0xff] }
 0x4db   : > { %v3248_v18 = vsel %vm3235_vm14, %v3231_v16, %v5034_v56  ;;  %v3249_v9 = vsel %vm3235_vm14, %v3232_v62, %v5035_v49  ;;  %v3988_v56 = vld [vmem:[%s7039_s10 + $0x20] sm:$0xff] }
 0x4dc   : > { %3485 = vmatmul.mubr.f32.gmra.mxu0 %v3248_v18  ;;  %v3182_v39 = vpop.permute.xlu0 %3181  ;;  %v3217_v30 = vsel %vm1355_vm10, %v2785_v44, %v5039_v2  ;;  %v3218_v4 = vsel %vm1355_vm10, %v2786_v43, %v5040_v47  ;;  %4715 = vmatprep.subr.mxu1 %v3988_v56  ;;  %v3984_v49 = vld [vmem:[%s7039_s10] sm:$0xff] }
 0x4dd   : > { %v3281_v45 = vsel %vm452_vm2, %v3265_v17, %v3182_v39  ;;  %v5043_v60 = vpop.permute.xlu1 %5042  ;;  %4716 = vmatpush3.msra.mxu1 %v3988_v56 }
 0x4de   : > { %4370 = vmatprep.mubr.msk.f32.mxu0 %vm3235_vm14, %v3281_v45  ;;  %v5044_v55 = vunpack.i.l.bf16 %v5043_v60  ;;  %v5045_v51 = vunpack.i.h.bf16 %v5043_v60  ;;  %4717 = vmatprep.subr.mxu1 %v3987_v50 }
 0x4df   : > { %4718 = vmatpush3.msra.mxu1 %v3987_v50 }
 0x4e0   : > { %v3120_v59 = vpop.permute.xlu0 %3119  ;;  %3490 = vmatmul.mubr.f32.gmra.mxu0 %v3249_v9  ;;  %v3233_v20 = vsel %vm452_vm2, %v3217_v30, %v5044_v55  ;;  %v3234_v32 = vsel %vm452_vm2, %v3218_v4, %v5045_v51  ;;  %4719 = vmatprep.subr.mxu1 %v3986_v33 }
 0x4e1   : > { %v3056_v6 = vpop.permute.xlu1 %3055  ;;  %v3266_v24 = vsel %vm1355_vm10, %v2849_v63, %v3120_v59  ;;  %4720 = vmatpush3.msra.mxu1 %v3986_v33 }
 0x4e2   : > { %v3250_v15 = vsel %vm3235_vm14, %v3233_v20, %v3056_v6  ;;  %4721 = vmatprep.subr.mxu1 %v3985_v40 }
 0x4e3   : > { %4722 = vmatpush3.msra.mxu1 %v3985_v40 }
 0x4e4   : > { %v3184_v8 = vpop.permute.xlu0 %3183  ;;  %4723 = vmatprep.subr.mxu1 %v3984_v49 }
 0x4e5   : > { %v3282_v52 = vsel %vm452_vm2, %v3266_v24, %v3184_v8  ;;  %v3186_v31 = vpop.permute.xlu1 %3185  ;;  %4724 = vmatpush3.msra.mxu1 %v3984_v49 }
 0x4e6   : > { %4371 = vmatprep.mubr.msk.f32.mxu0 %vm3235_vm14, %v3282_v52 }
 0x4e7   : > { %3495 = vmatmul.mubr.f32.gmra.mxu0 %v3250_v15 }
 0x4e8   : > { %v3122_v19 = vpop.permute.xlu0 %3121 }
 0x4e9   : > { %v3267_v13 = vsel %vm1355_vm10, %v2850_v57, %v3122_v19 }
 0x4ea   : > { %v3283_v14 = vsel %vm452_vm2, %v3267_v13, %v3186_v31 }
 0x4eb   : > { %4372 = vmatprep.mubr.msk.f32.mxu0 %vm3235_vm14, %v3283_v14 }
 0x4ec   : > { %v3058_v25 = vpop.permute.xlu0 %3057 }
 0x4ed   : > { %v3251_v54 = vsel %vm3235_vm14, %v3234_v32, %v3058_v25 }
 0x4ee   : > { %3500 = vmatmul.mubr.f32.gmra.mxu0 %v3251_v54 }
 0x548   : > { %v3426_v0 = vpop.f32.mrf.mxu0 }
 0x549   : > { %v3512_v22 = vmul.f32 %v6716_v3, %v3426_v0 }
 0x54a   : > { %v3428_v23 = vpop.f32.mrf.mxu0 }
 0x54b   : > { %v3535_v37 = vadd.f32 %v6721_v5, %v3512_v22 }
 0x54c   : > { %v3431_v26 = vpop.f32.mrf.mxu0 }
 0x54d   : > { %5110 = vtanh.f32 %v3535_v37  ;;  %v3513_v29 = vmul.f32 %v6716_v3, %v3431_v26 }
 0x54e   : > { %v3433_v7 = vpop.f32.mrf.mxu0 }
 0x54f   : > { %v3536_v21 = vadd.f32 %v6721_v5, %v3513_v29 }
 0x551   : > { %5112 = vtanh.f32 %v3536_v21 }
 0x553   : > { %v3436_v46 = vpop.f32.mrf.mxu0 }
 0x554   : > { %v3514_v42 = vmul.f32 %v6716_v3, %v3436_v46 }
 0x555   : > { %v3438_v1 = vpop.f32.mrf.mxu0 }
 0x556   : > { %v3537_v48 = vadd.f32 %v6721_v5, %v3514_v42 }
 0x558   : > { %5114 = vtanh.f32 %v3537_v48  ;;  %v3441_v27 = vpop.f32.mrf.mxu0 }
 0x559   : > { %v3515_v61 = vmul.f32 %v6716_v3, %v3441_v27 }
 0x55a   : > { %v5111_v36 = vpop.eup %5110  ;;  %v3443_v41 = vpop.f32.mrf.mxu0 }
 0x55b   : > { %3567 = vst.msk [vmem:[#allocation2 + $0x5] sm:$0xff] %vm1287_vm6, %v5111_v36  ;;  %v3538_v11 = vadd.f32 %v6721_v5, %v3515_v61 }
 0x55d   : > { %5116 = vtanh.f32 %v3538_v11 }
 0x55e   : > { %v5113_v28 = vpop.eup %5112 }
 0x55f   : > { %3568 = vst.msk [vmem:[#allocation2 + $0xd] sm:$0xff] %vm1287_vm6, %v5113_v28 }
 0x562   : > { %v3599_v16 = vld [vmem:[#allocation2 + $0x4] sm:$0xff] }
 0x563   : > { %3679 = vrot.lane.b32.xlu1 %v3599_v16, %s5154_s18  ;;  %v3615_v35 = vld [vmem:[#allocation2 + $0x5] sm:$0xff] }
 0x564   : > { %v3446_v18 = vpop.f32.mrf.mxu0 }
 0x565   : > { %v5115_v17 = vpop.eup %5114  ;;  %v3516_v39 = vmul.f32 %v6716_v3, %v3446_v18 }
 0x566   : > { %3569 = vst.msk [vmem:[#allocation2 + $0x15] sm:$0xff] %vm1287_vm6, %v5115_v17  ;;  %v3448_v58 = vpop.f32.mrf.mxu0  ;;  %v3600_v45 = vld [vmem:[#allocation2 + $0xc] sm:$0xff] }
 0x567   : > { %v3539_v2 = vadd.f32 %v6721_v5, %v3516_v39  ;;  %3681 = vrot.lane.b32.xlu0 %v3600_v45, %s5154_s18  ;;  %3743 = vrot.lane.b32.xlu1 %v3615_v35, %s5158_s21  ;;  %v3616_v62 = vld [vmem:[#allocation2 + $0xd] sm:$0xff] }
 0x568   : > { %v3631_v55 = vld [vmem:[#allocation2 + $0x6] sm:$0xff] }
 0x569   : > { %5118 = vtanh.f32 %v3539_v2  ;;  %v3647_v6 = vld [vmem:[#allocation2 + $0x7] sm:$0xff] }
 0x56a   : > { %v5117_v60 = vpop.eup %5116 }
 0x56b   : > { %3570 = vst.msk [vmem:[#allocation2 + $0x1d] sm:$0xff] %vm1287_vm6, %v5117_v60  ;;  %v3451_v9 = vpop.f32.mrf.mxu0  ;;  %3745 = vrot.lane.b32.xlu0 %v3616_v62, %s5158_s21  ;;  %3807 = vrot.lane.b32.xlu1 %v3631_v55, %s5163_s28 }
 0x56c   : > { %v3517_v59 = vmul.f32 %v6716_v3, %v3451_v9 }
 0x56d   : > { %v3453_v44 = vpop.f32.mrf.mxu0  ;;  %v3632_v30 = vld [vmem:[#allocation2 + $0xe] sm:$0xff] }
 0x56e   : > { %v3540_v63 = vadd.f32 %v6721_v5, %v3517_v59  ;;  %v3601_v20 = vld [vmem:[#allocation2 + $0x14] sm:$0xff] }
 0x56f   : > { %3809 = vrot.lane.b32.xlu0 %v3632_v30, %s5163_s28  ;;  %3871 = vrot.lane.b32.xlu1 %v3647_v6, %s5161_s16  ;;  %v3648_v24 = vld [vmem:[#allocation2 + $0xf] sm:$0xff] }
 0x570   : > { %5120 = vtanh.f32 %v3540_v63  ;;  %v3617_v19 = vld [vmem:[#allocation2 + $0x15] sm:$0xff] }
 0x572   : > { %v3602_v57 = vld [vmem:[#allocation2 + $0x1c] sm:$0xff] }
 0x573   : > { %v3456_v8 = vpop.f32.mrf.mxu0  ;;  %3683 = vrot.lane.b32.xlu0 %v3601_v20, %s5154_s18  ;;  %3873 = vrot.lane.b32.xlu1 %v3648_v24, %s5161_s16  ;;  %v3618_v4 = vld [vmem:[#allocation2 + $0x1d] sm:$0xff] }
 0x574   : > { %v3518_v52 = vmul.f32 %v6716_v3, %v3456_v8  ;;  %v3633_v25 = vld [vmem:[#allocation2 + $0x16] sm:$0xff] }
 0x575   : > { %v3458_v15 = vpop.f32.mrf.mxu0  ;;  %v3649_v0 = vld [vmem:[#allocation2 + $0x17] sm:$0xff] }
 0x576   : > { %v5119_v47 = vpop.eup %5118  ;;  %v3541_v51 = vadd.f32 %v6721_v5, %v3518_v52 }
 0x577   : > { %3571 = vst.msk [vmem:[#allocation2 + $0x25] sm:$0xff] %vm1287_vm6, %v5119_v47  ;;  %v3461_v31 = vpop.f32.mrf.mxu0  ;;  %3685 = vrot.lane.b32.xlu0 %v3602_v57, %s5154_s18  ;;  %3747 = vrot.lane.b32.xlu1 %v3617_v19, %s5158_s21 }
 0x578   : > { %5122 = vtanh.f32 %v3541_v51  ;;  %v3519_v13 = vmul.f32 %v6716_v3, %v3461_v31 }
 0x579   : > { %v3463_v14 = vpop.f32.mrf.mxu0 }
 0x57a   : > { %v3542_v43 = vadd.f32 %v6721_v5, %v3519_v13 }
 0x57b   : > { %3749 = vrot.lane.b32.xlu0 %v3618_v4, %s5158_s21  ;;  %3811 = vrot.lane.b32.xlu1 %v3633_v25, %s5163_s28 }
 0x57c   : > { %5124 = vtanh.f32 %v3542_v43 }
 0x57d   : > { %v5121_v32 = vpop.eup %5120 }
 0x57e   : > { %3572 = vst.msk [vmem:[#allocation2 + $0x2d] sm:$0xff] %vm1287_vm6, %v5121_v32  ;;  %v3634_v54 = vld [vmem:[#allocation2 + $0x1e] sm:$0xff] }
 0x57f   : > { %3813 = vrot.lane.b32.xlu0 %v3634_v54, %s5163_s28  ;;  %3875 = vrot.lane.b32.xlu1 %v3649_v0, %s5161_s16  ;;  %v3603_v26 = vld [vmem:[#allocation2 + $0x24] sm:$0xff] }
 0x580   : > { %v3466_v22 = vpop.f32.mrf.mxu0  ;;  %v3650_v29 = vld [vmem:[#allocation2 + $0x1f] sm:$0xff] }
 0x581   : > { %v3520_v23 = vmul.f32 %v6716_v3, %v3466_v22  ;;  %v3619_v1 = vld [vmem:[#allocation2 + $0x25] sm:$0xff] }
 0x582   : > { %v3468_v37 = vpop.f32.mrf.mxu0 }
 0x583   : > { %v3543_v7 = vadd.f32 %v6721_v5, %v3520_v23  ;;  %3687 = vrot.lane.b32.xlu0 %v3603_v26, %s5154_s18  ;;  %3877 = vrot.lane.b32.xlu1 %v3650_v29, %s5161_s16 }
 0x584   : > { %v3471_v21 = vpop.f32.mrf.mxu0 }
 0x585   : > { %v5123_v38 = vpop.eup %5122  ;;  %5126 = vtanh.f32 %v3543_v7  ;;  %v3521_v46 = vmul.f32 %v6716_v3, %v3471_v21  ;;  %v3604_v34 = vld [vmem:[#allocation2 + $0x2c] sm:$0xff] }
 0x586   : > { %3573 = vst.msk [vmem:[#allocation2 + $0x35] sm:$0xff] %vm1287_vm6, %v5123_v38  ;;  %v3473_v42 = vpop.f32.mrf.mxu0  ;;  %v3620_v53 = vld [vmem:[#allocation2 + $0x2d] sm:$0xff] }
 0x587   : > { %v3544_v48 = vadd.f32 %v6721_v5, %v3521_v46  ;;  %3689 = vrot.lane.b32.xlu0 %v3604_v34, %s5154_s18  ;;  %3751 = vrot.lane.b32.xlu1 %v3619_v1, %s5158_s21  ;;  %v3635_v27 = vld [vmem:[#allocation2 + $0x26] sm:$0xff] }
 0x588   : > { %v3651_v56 = vld [vmem:[#allocation2 + $0x27] sm:$0xff] }
 0x589   : > { %v5125_v12 = vpop.eup %5124  ;;  %5128 = vtanh.f32 %v3544_v48 }
 0x58a   : > { %3574 = vst.msk [vmem:[#allocation2 + $0x3d] sm:$0xff] %vm1287_vm6, %v5125_v12 }
 0x58b   : > { %v3476_v61 = vpop.f32.mrf.mxu0  ;;  %3753 = vrot.lane.b32.xlu0 %v3620_v53, %s5158_s21  ;;  %3815 = vrot.lane.b32.xlu1 %v3635_v27, %s5163_s28 }
 0x58c   : > { %v3522_v36 = vmul.f32 %v6716_v3, %v3476_v61 }
 0x58d   : > { %v3478_v41 = vpop.f32.mrf.mxu0  ;;  %v3636_v10 = vld [vmem:[#allocation2 + $0x2e] sm:$0xff] }
 0x58e   : > { %v3545_v11 = vadd.f32 %v6721_v5, %v3522_v36  ;;  %v3605_v40 = vld [vmem:[#allocation2 + $0x34] sm:$0xff] }
 0x58f   : > { %3817 = vrot.lane.b32.xlu0 %v3636_v10, %s5163_s28  ;;  %3879 = vrot.lane.b32.xlu1 %v3651_v56, %s5161_s16  ;;  %v3652_v49 = vld [vmem:[#allocation2 + $0x2f] sm:$0xff] }
 0x590   : > { %5130 = vtanh.f32 %v3545_v11  ;;  %v3481_v28 = vpop.f32.mrf.mxu0  ;;  %v3621_v58 = vld [vmem:[#allocation2 + $0x35] sm:$0xff] }
 0x591   : > { %v3523_v50 = vmul.f32 %v6716_v3, %v3481_v28  ;;  %v3606_v39 = vld [vmem:[#allocation2 + $0x3c] sm:$0xff] }
 0x592   : > { %v5127_v33 = vpop.eup %5126  ;;  %v3483_v16 = vpop.f32.mrf.mxu0  ;;  %v3622_v45 = vld [vmem:[#allocation2 + $0x3d] sm:$0xff] }
 0x593   : > { %3575 = vst.msk [vmem:[#allocation2 + $0x55] sm:$0xff] %vm1287_vm6, %v5127_v33  ;;  %v3546_v18 = vadd.f32 %v6721_v5, %v3523_v50  ;;  %3691 = vrot.lane.b32.xlu0 %v3605_v40, %s5154_s18  ;;  %3881 = vrot.lane.b32.xlu1 %v3652_v49, %s5161_s16  ;;  %v3637_v35 = vld [vmem:[#allocation2 + $0x36] sm:$0xff]  ;;  %v3638_v9 = vld [vmem:[#allocation2 + $0x3e] sm:$0xff] }
 0x594   : > { %v3653_v59 = vld [vmem:[#allocation2 + $0x37] sm:$0xff]  ;;  %v3654_v8 = vld [vmem:[#allocation2 + $0x3f] sm:$0xff] }
 0x595   : > { %5132 = vtanh.f32 %v3546_v18 }
 0x596   : > { %v5129_v17 = vpop.eup %5128 }
 0x597   : > { %3576 = vst.msk [vmem:[#allocation2 + $0x5d] sm:$0xff] %vm1287_vm6, %v5129_v17  ;;  %3693 = vrot.lane.b32.xlu0 %v3606_v39, %s5154_s18  ;;  %3755 = vrot.lane.b32.xlu1 %v3621_v58, %s5158_s21  ;;  %v3583_v17 = vld [vmem:[#allocation2 + $0x3] sm:$0xff] }
 0x59a   : > { %v3607_v24 = vld [vmem:[#allocation2 + $0x54] sm:$0xff] }
 0x59b   : > { %3757 = vrot.lane.b32.xlu0 %v3622_v45, %s5158_s21  ;;  %3819 = vrot.lane.b32.xlu1 %v3637_v35, %s5163_s28  ;;  %v3623_v47 = vld [vmem:[#allocation2 + $0x55] sm:$0xff] }
 0x59c   : > { %v3486_v2 = vpop.f32.mrf.mxu0 }
 0x59d   : > { %v5131_v60 = vpop.eup %5130  ;;  %v3524_v62 = vmul.f32 %v6716_v3, %v3486_v2 }
 0x59e   : > { %3577 = vst.msk [vmem:[#allocation2 + $0x65] sm:$0xff] %vm1287_vm6, %v5131_v60  ;;  %v3488_v55 = vpop.f32.mrf.mxu0  ;;  %v3608_v15 = vld [vmem:[#allocation2 + $0x5c] sm:$0xff] }
 0x59f   : > { %v3547_v44 = vadd.f32 %v6721_v5, %v3524_v62  ;;  %3821 = vrot.lane.b32.xlu0 %v3638_v9, %s5163_s28  ;;  %3883 = vrot.lane.b32.xlu1 %v3653_v59, %s5161_s16  ;;  %v3624_v13 = vld [vmem:[#allocation2 + $0x5d] sm:$0xff]  ;;  %v3584_v55 = vld [vmem:[#allocation2 + $0xb] sm:$0xff] }
 0x5a0   : > { %v3491_v30 = vpop.f32.mrf.mxu0  ;;  %v3639_v14 = vld [vmem:[#allocation2 + $0x56] sm:$0xff] }
 0x5a1   : > { %5134 = vtanh.f32 %v3547_v44  ;;  %v3525_v63 = vmul.f32 %v6716_v3, %v3491_v30  ;;  %v3655_v32 = vld [vmem:[#allocation2 + $0x57] sm:$0xff] }
 0x5a2   : > { %v5133_v6 = vpop.eup %5132  ;;  %v3493_v20 = vpop.f32.mrf.mxu0 }
 0x5a3   : > { %3578 = vst.msk [vmem:[#allocation2 + $0x6d] sm:$0xff] %vm1287_vm6, %v5133_v6  ;;  %v3548_v52 = vadd.f32 %v6721_v5, %v3525_v63  ;;  %3695 = vrot.lane.b32.xlu0 %v3607_v24, %s5154_s18  ;;  %3885 = vrot.lane.b32.xlu1 %v3654_v8, %s5161_s16 }
 0x5a5   : > { %5136 = vtanh.f32 %v3548_v52  ;;  %v3640_v25 = vld [vmem:[#allocation2 + $0x5e] sm:$0xff] }
 0x5a6   : > { %v3609_v37 = vld [vmem:[#allocation2 + $0x64] sm:$0xff] }
 0x5a7   : > { %3697 = vrot.lane.b32.xlu0 %v3608_v15, %s5154_s18  ;;  %3759 = vrot.lane.b32.xlu1 %v3623_v47, %s5158_s21  ;;  %v3496_v51 = vpop.f32.mrf.mxu0  ;;  %v3656_v26 = vld [vmem:[#allocation2 + $0x5f] sm:$0xff] }
 0x5a8   : > { %v3526_v57 = vmul.f32 %v6716_v3, %v3496_v51  ;;  %v3625_v7 = vld [vmem:[#allocation2 + $0x65] sm:$0xff]  ;;  %v3585_v51 = vld [vmem:[#allocation2 + $0x13] sm:$0xff] }
 0x5a9   : > { %v3498_v19 = vpop.f32.mrf.mxu0 }
 0x5aa   : > { %v3549_v31 = vadd.f32 %v6721_v5, %v3526_v57  ;;  %v3610_v29 = vld [vmem:[#allocation2 + $0x6c] sm:$0xff] }
 0x5ab   : > { %3761 = vrot.lane.b32.xlu0 %v3624_v13, %s5158_s21  ;;  %3823 = vrot.lane.b32.xlu1 %v3639_v14, %s5163_s28  ;;  %v3641_v21 = vld [vmem:[#allocation2 + $0x66] sm:$0xff] }
 0x5ac   : > { %5138 = vtanh.f32 %v3549_v31  ;;  %v3657_v46 = vld [vmem:[#allocation2 + $0x67] sm:$0xff] }
 0x5ae   : > { %v5135_v43 = vpop.eup %5134  ;;  %v3501_v4 = vpop.f32.mrf.mxu0 }
 0x5af   : > { %3579 = vst.msk [vmem:[#allocation2 + $0x75] sm:$0xff] %vm1287_vm6, %v5135_v43  ;;  %v3527_v54 = vmul.f32 %v6716_v3, %v3501_v4  ;;  %3825 = vrot.lane.b32.xlu0 %v3640_v25, %s5163_s28  ;;  %3887 = vrot.lane.b32.xlu1 %v3655_v32, %s5161_s16  ;;  %v3586_v43 = vld [vmem:[#allocation2 + $0x1b] sm:$0xff] }
 0x5b0   : > { %v3503_v0 = vpop.f32.mrf.mxu0 }
 0x5b1   : > { %v3550_v22 = vadd.f32 %v6721_v5, %v3527_v54  ;;  %v3626_v5 = vld [vmem:[#allocation2 + $0x6d] sm:$0xff] }
 0x5b2   : > { %v5137_v23 = vpop.eup %5136 }
 0x5b3   : > { %3580 = vst.msk [vmem:[#allocation2 + $0x7d] sm:$0xff] %vm1287_vm6, %v5137_v23  ;;  %5140 = vtanh.f32 %v3550_v22  ;;  %3699 = vrot.lane.b32.xlu0 %v3609_v37, %s5154_s18  ;;  %3889 = vrot.lane.b32.xlu1 %v3656_v26, %s5161_s16 }
 0x5b6   : > { %v3642_v38 = vld [vmem:[#allocation2 + $0x6e] sm:$0xff] }
 0x5b7   : > { %3701 = vrot.lane.b32.xlu0 %v3610_v29, %s5154_s18  ;;  %3763 = vrot.lane.b32.xlu1 %v3625_v7, %s5158_s21  ;;  %v3611_v42 = vld [vmem:[#allocation2 + $0x74] sm:$0xff] }
 0x5b8   : > { %v3658_v1 = vld [vmem:[#allocation2 + $0x6f] sm:$0xff] }
 0x5b9   : > { %v5139_v3 = vpop.eup %5138  ;;  %v3627_v48 = vld [vmem:[#allocation2 + $0x75] sm:$0xff] }
 0x5ba   : > { %3581 = vst.msk [vmem:[#allocation2 + $0x85] sm:$0xff] %vm1287_vm6, %v5139_v3  ;;  %v3612_v12 = vld [vmem:[#allocation2 + $0x7c] sm:$0xff] }
 0x5bb   : > { %3765 = vrot.lane.b32.xlu0 %v3626_v5, %s5158_s21  ;;  %3827 = vrot.lane.b32.xlu1 %v3641_v21, %s5163_s28  ;;  %v3643_v53 = vld [vmem:[#allocation2 + $0x76] sm:$0xff]  ;;  %v3587_v3 = vld [vmem:[#allocation2 + $0x23] sm:$0xff] }
 0x5bc   : > { %v3628_v27 = vld [vmem:[#allocation2 + $0x7d] sm:$0xff] }
 0x5bd   : > { %v3659_v61 = vld [vmem:[#allocation2 + $0x77] sm:$0xff] }
 0x5bf   : > { %3829 = vrot.lane.b32.xlu0 %v3642_v38, %s5163_s28  ;;  %3891 = vrot.lane.b32.xlu1 %v3657_v46, %s5161_s16 }
 0x5c0   : > { %v5141_v34 = vpop.eup %5140 }
 0x5c1   : > { %3582 = vst.msk [vmem:[#allocation2 + $0x8d] sm:$0xff] %vm1287_vm6, %v5141_v34  ;;  %v3644_v36 = vld [vmem:[#allocation2 + $0x7e] sm:$0xff] }
 0x5c2   : > { %v3660_v41 = vld [vmem:[#allocation2 + $0x7f] sm:$0xff] }
 0x5c3   : > { %3703 = vrot.lane.b32.xlu0 %v3611_v42, %s5154_s18  ;;  %3893 = vrot.lane.b32.xlu1 %v3658_v1, %s5161_s16  ;;  %v3613_v10 = vld [vmem:[#allocation2 + $0x84] sm:$0xff] }
 0x5c4   : > { %v3629_v56 = vld [vmem:[#allocation2 + $0x85] sm:$0xff] }
 0x5c5   : > { %v3588_v42 = vld [vmem:[#allocation2 + $0x2b] sm:$0xff] }
 0x5c7   : > { %3767 = vrot.lane.b32.xlu1 %v3627_v48, %s5158_s21  ;;  %3705 = vrot.lane.b32.xlu0 %v3612_v12, %s5154_s18 }
 0x5c8   : > { %v3614_v28 = vld [vmem:[#allocation2 + $0x8c] sm:$0xff] }
 0x5c9   : > { %v3645_v16 = vld [vmem:[#allocation2 + $0x86] sm:$0xff]  ;;  %v3646_v58 = vld [vmem:[#allocation2 + $0x8e] sm:$0xff] }
 0x5ca   : > { %v3630_v40 = vld [vmem:[#allocation2 + $0x8d] sm:$0xff] }
 0x5cb   : > { %3831 = vrot.lane.b32.xlu1 %v3643_v53, %s5163_s28  ;;  %3769 = vrot.lane.b32.xlu0 %v3628_v27, %s5158_s21  ;;  %v3661_v39 = vld [vmem:[#allocation2 + $0x87] sm:$0xff]  ;;  %v3662_v59 = vld [vmem:[#allocation2 + $0x8f] sm:$0xff] }
 0x5cf   : > { %3895 = vrot.lane.b32.xlu1 %v3659_v61, %s5161_s16  ;;  %3833 = vrot.lane.b32.xlu0 %v3644_v36, %s5163_s28 }
 0x5d3   : > { %3897 = vrot.lane.b32.xlu1 %v3660_v41, %s5161_s16  ;;  %3707 = vrot.lane.b32.xlu0 %v3613_v10, %s5154_s18 }
 0x5d5   : > { %v3680_v11 = vpop.permute.xlu1 %3679 }
 0x5d6   : > { %v3919_v45 = vsel %vm1287_vm6, %v3583_v17, %v3680_v11 }
 0x5d7   : > { %3771 = vrot.lane.b32.xlu1 %v3629_v56, %s5158_s21  ;;  %3709 = vrot.lane.b32.xlu0 %v3614_v28, %s5154_s18  ;;  %v3589_v28 = vld [vmem:[#allocation2 + $0x33] sm:$0xff] }
 0x5d9   : > { %v3682_v50 = vpop.permute.xlu0 %3681  ;;  %v3744_v33 = vpop.permute.xlu1 %3743 }
 0x5da   : > { %v3935_v35 = vsel %vm1355_vm10, %v3919_v45, %v3744_v33  ;;  %v3920_v44 = vsel %vm1287_vm6, %v3584_v55, %v3682_v50 }
 0x5db   : > { %3835 = vrot.lane.b32.xlu1 %v3645_v16, %s5163_s28  ;;  %3773 = vrot.lane.b32.xlu0 %v3630_v40, %s5158_s21 }
 0x5dd   : > { %v3746_v49 = vpop.permute.xlu0 %3745  ;;  %v3808_v18 = vpop.permute.xlu1 %3807 }
 0x5de   : > { %v3952_v2 = vsel %vm3951_vm15, %v3935_v35, %v3808_v18  ;;  %v3936_v30 = vsel %vm1355_vm10, %v3920_v44, %v3746_v49  ;;  %v3590_v18 = vld [vmem:[#allocation2 + $0x3b] sm:$0xff]  ;;  %v3591_v44 = vld [vmem:[#allocation2 + $0x53] sm:$0xff] }
 0x5df   : > { %3899 = vrot.lane.b32.xlu1 %v3661_v39, %s5161_s16  ;;  %3837 = vrot.lane.b32.xlu0 %v3646_v58, %s5163_s28 }
 0x5e1   : > { %v3810_v60 = vpop.permute.xlu0 %3809  ;;  %v3872_v62 = vpop.permute.xlu1 %3871 }
 0x5e2   : > { %v3968_v9 = vsel %vm452_vm2, %v3952_v2, %v3872_v62  ;;  %v3953_v63 = vsel %vm3951_vm15, %v3936_v30, %v3810_v60 }
 0x5e3   : > { %4725 = vmatprep.mubr.msk.f32.mxu1 %vm3994_vm0, %v3968_v9  ;;  %3901 = vrot.lane.b32.xlu0 %v3662_v59, %s5161_s16 }
 0x5e5   : > { %v3684_v6 = vpop.permute.xlu0 %3683  ;;  %v3874_v20 = vpop.permute.xlu1 %3873 }
 0x5e6   : > { %v3969_v24 = vsel %vm452_vm2, %v3953_v63, %v3874_v20  ;;  %v3921_v57 = vsel %vm1287_vm6, %v3585_v51, %v3684_v6 }
 0x5e7   : > { %4726 = vmatmul.mubr.msk.f32.vlgmr.msra.gmra.mxu1 %vm3994_vm0, %v3969_v24 }
 0x5e9   : > { %v3686_v8 = vpop.permute.xlu0 %3685  ;;  %v3748_v52 = vpop.permute.xlu1 %3747 }
 0x5ea   : > { %v3937_v19 = vsel %vm1355_vm10, %v3921_v57, %v3748_v52  ;;  %v3922_v25 = vsel %vm1287_vm6, %v3586_v43, %v3686_v8  ;;  %v3592_v8 = vld [vmem:[#allocation2 + $0x5b] sm:$0xff] }
 0x5ed   : > { %v3750_v15 = vpop.permute.xlu0 %3749  ;;  %v3812_v47 = vpop.permute.xlu1 %3811 }
 0x5ee   : > { %v3954_v31 = vsel %vm3951_vm15, %v3937_v19, %v3812_v47  ;;  %v3938_v32 = vsel %vm1355_vm10, %v3922_v25, %v3750_v15  ;;  %v3593_v25 = vld [vmem:[#allocation2 + $0x63] sm:$0xff] }
 0x5f1   : > { %v3814_v13 = vpop.permute.xlu0 %3813  ;;  %v3876_v14 = vpop.permute.xlu1 %3875 }
 0x5f2   : > { %v3970_v4 = vsel %vm452_vm2, %v3954_v31, %v3876_v14  ;;  %v3955_v54 = vsel %vm3951_vm15, %v3938_v32, %v3814_v13 }
 0x5f3   : > { %4728 = vmatprep.mubr.msk.f32.mxu1 %vm3994_vm0, %v3970_v4 }
 0x5f5   : > { %v3688_v0 = vpop.permute.xlu0 %3687  ;;  %v3878_v22 = vpop.permute.xlu1 %3877 }
 0x5f6   : > { %v3971_v23 = vsel %vm452_vm2, %v3955_v54, %v3878_v22  ;;  %v3923_v5 = vsel %vm1287_vm6, %v3587_v3, %v3688_v0 }
 0x5f7   : > { %4729 = vmatmul.mubr.msk.f32.gmra.mxu1 %vm3994_vm0, %v3971_v23 }
 0x5f9   : > { %v3690_v37 = vpop.permute.xlu0 %3689  ;;  %v3752_v26 = vpop.permute.xlu1 %3751 }
 0x5fa   : > { %v3939_v21 = vsel %vm1355_vm10, %v3923_v5, %v3752_v26  ;;  %v3924_v48 = vsel %vm1287_vm6, %v3588_v42, %v3690_v37  ;;  %v3594_v37 = vld [vmem:[#allocation2 + $0x6b] sm:$0xff] }
 0x5fd   : > { %v3754_v29 = vpop.permute.xlu0 %3753  ;;  %v3816_v7 = vpop.permute.xlu1 %3815 }
 0x5fe   : > { %v3956_v38 = vsel %vm3951_vm15, %v3939_v21, %v3816_v7  ;;  %v3940_v12 = vsel %vm1355_vm10, %v3924_v48, %v3754_v29  ;;  %v3595_v48 = vld [vmem:[#allocation2 + $0x73] sm:$0xff] }
 0x601   : > { %v3818_v46 = vpop.permute.xlu0 %3817  ;;  %v3880_v34 = vpop.permute.xlu1 %3879 }
 0x602   : > { %v3972_v1 = vsel %vm452_vm2, %v3956_v38, %v3880_v34  ;;  %v3957_v53 = vsel %vm3951_vm15, %v3940_v12, %v3818_v46 }
 0x603   : > { %4731 = vmatprep.mubr.msk.f32.mxu1 %vm3994_vm0, %v3972_v1 }
 0x605   : > { %v3692_v27 = vpop.permute.xlu0 %3691  ;;  %v3882_v61 = vpop.permute.xlu1 %3881 }
 0x606   : > { %v3973_v36 = vsel %vm452_vm2, %v3957_v53, %v3882_v61  ;;  %v3925_v50 = vsel %vm1287_vm6, %v3589_v28, %v3692_v27 }
 0x607   : > { %4732 = vmatmul.mubr.msk.f32.gmra.mxu1 %vm3994_vm0, %v3973_v36 }
 0x609   : > { %v3694_v41 = vpop.permute.xlu0 %3693  ;;  %v3756_v10 = vpop.permute.xlu1 %3755 }
 0x60a   : > { %v3941_v33 = vsel %vm1355_vm10, %v3925_v50, %v3756_v10  ;;  %v3926_v39 = vsel %vm1287_vm6, %v3590_v18, %v3694_v41  ;;  %v3596_v41 = vld [vmem:[#allocation2 + $0x7b] sm:$0xff] }
 0x60d   : > { %v3758_v11 = vpop.permute.xlu0 %3757  ;;  %v3820_v56 = vpop.permute.xlu1 %3819 }
 0x60e   : > { %v3958_v16 = vsel %vm3951_vm15, %v3941_v33, %v3820_v56  ;;  %v3942_v58 = vsel %vm1355_vm10, %v3926_v39, %v3758_v11  ;;  %v3597_v39 = vld [vmem:[#allocation2 + $0x83] sm:$0xff] }
 0x611   : > { %v3822_v40 = vpop.permute.xlu0 %3821  ;;  %v3884_v49 = vpop.permute.xlu1 %3883 }
 0x612   : > { %v3974_v17 = vsel %vm452_vm2, %v3958_v16, %v3884_v49  ;;  %v3959_v45 = vsel %vm3951_vm15, %v3942_v58, %v3822_v40 }
 0x613   : > { %4734 = vmatprep.mubr.msk.f32.mxu1 %vm3994_vm0, %v3974_v17 }
 0x615   : > { %v3696_v35 = vpop.permute.xlu0 %3695  ;;  %v3886_v2 = vpop.permute.xlu1 %3885 }
 0x616   : > { %v3975_v60 = vsel %vm452_vm2, %v3959_v45, %v3886_v2  ;;  %v3927_v30 = vsel %vm1287_vm6, %v3591_v44, %v3696_v35 }
 0x617   : > { %4735 = vmatmul.mubr.msk.f32.gmra.mxu1 %vm3994_vm0, %v3975_v60 }
 0x619   : > { %v3698_v62 = vpop.permute.xlu0 %3697  ;;  %v3760_v55 = vpop.permute.xlu1 %3759 }
 0x61a   : > { %v3943_v63 = vsel %vm1355_vm10, %v3927_v30, %v3760_v55  ;;  %v3928_v15 = vsel %vm1287_vm6, %v3592_v8, %v3698_v62  ;;  %v3598_v62 = vld [vmem:[#allocation2 + $0x8b] sm:$0xff] }
 0x61d   : > { %v3762_v9 = vpop.permute.xlu0 %3761  ;;  %v3824_v59 = vpop.permute.xlu1 %3823 }
 0x61e   : > { %v3960_v6 = vsel %vm3951_vm15, %v3943_v63, %v3824_v59  ;;  %v3944_v47 = vsel %vm1355_vm10, %v3928_v15, %v3762_v9 }
 0x621   : > { %v3826_v20 = vpop.permute.xlu0 %3825  ;;  %v3888_v24 = vpop.permute.xlu1 %3887 }
 0x622   : > { %v3976_v52 = vsel %vm452_vm2, %v3960_v6, %v3888_v24  ;;  %v3961_v51 = vsel %vm3951_vm15, %v3944_v47, %v3826_v20  ;;  %v6948_v6 = vld [vmem:[%s7040_s11] ss:$0 sm:$0xff] }
 0x623   : > { %4737 = vmatprep.mubr.msk.f32.mxu1 %vm3994_vm0, %v3976_v52  ;;  %v6953_v24 = vld [vmem:[%s7041_s12] ss:$0 sm:$0xff] }
 0x625   : > { %v3700_v57 = vpop.permute.xlu0 %3699  ;;  %v3890_v19 = vpop.permute.xlu1 %3889 }
 0x626   : > { %v3977_v31 = vsel %vm452_vm2, %v3961_v51, %v3890_v19  ;;  %v3929_v32 = vsel %vm1287_vm6, %v3593_v25, %v3700_v57 }
 0x627   : > { %4738 = vmatmul.mubr.msk.f32.gmra.mxu1 %vm3994_vm0, %v3977_v31 }
 0x629   : > { %v3702_v13 = vpop.permute.xlu0 %3701  ;;  %v3764_v14 = vpop.permute.xlu1 %3763 }
 0x62a   : > { %v3945_v54 = vsel %vm1355_vm10, %v3929_v32, %v3764_v14  ;;  %v3930_v29 = vsel %vm1287_vm6, %v3594_v37, %v3702_v13 }
 0x62d   : > { %v3766_v43 = vpop.permute.xlu0 %3765  ;;  %v3828_v4 = vpop.permute.xlu1 %3827 }
 0x62e   : > { %v3962_v0 = vsel %vm3951_vm15, %v3945_v54, %v3828_v4  ;;  %v3946_v7 = vsel %vm1355_vm10, %v3930_v29, %v3766_v43 }
 0x631   : > { %v3830_v22 = vpop.permute.xlu0 %3829  ;;  %v3892_v23 = vpop.permute.xlu1 %3891 }
 0x632   : > { %v3978_v26 = vsel %vm452_vm2, %v3962_v0, %v3892_v23  ;;  %v3963_v3 = vsel %vm3951_vm15, %v3946_v7, %v3830_v22 }
 0x633   : > { %4740 = vmatprep.mubr.msk.f32.mxu1 %vm3994_vm0, %v3978_v26 }
 0x635   : > { %v3704_v5 = vpop.permute.xlu0 %3703  ;;  %v3894_v21 = vpop.permute.xlu1 %3893 }
 0x636   : > { %v3979_v38 = vsel %vm452_vm2, %v3963_v3, %v3894_v21  ;;  %v3931_v12 = vsel %vm1287_vm6, %v3595_v48, %v3704_v5 }
 0x637   : > { %4741 = vmatmul.mubr.msk.f32.gmra.mxu1 %vm3994_vm0, %v3979_v38 }
 0x639   : > { %v3768_v46 = vpop.permute.xlu1 %3767  ;;  %v3706_v34 = vpop.permute.xlu0 %3705 }
 0x63a   : > { %v3947_v53 = vsel %vm1355_vm10, %v3931_v12, %v3768_v46  ;;  %v3932_v11 = vsel %vm1287_vm6, %v3596_v41, %v3706_v34 }
 0x63d   : > { %v3832_v42 = vpop.permute.xlu1 %3831  ;;  %v3770_v1 = vpop.permute.xlu0 %3769 }
 0x63e   : > { %v3964_v27 = vsel %vm3951_vm15, %v3947_v53, %v3832_v42  ;;  %v3948_v56 = vsel %vm1355_vm10, %v3932_v11, %v3770_v1 }
 0x641   : > { %v3896_v61 = vpop.permute.xlu1 %3895  ;;  %v3834_v36 = vpop.permute.xlu0 %3833 }
 0x642   : > { %v3980_v10 = vsel %vm452_vm2, %v3964_v27, %v3896_v61  ;;  %v3965_v28 = vsel %vm3951_vm15, %v3948_v56, %v3834_v36 }
 0x643   : > { %4743 = vmatprep.mubr.msk.f32.mxu1 %vm3994_vm0, %v3980_v10 }
 0x645   : > { %v3898_v50 = vpop.permute.xlu1 %3897  ;;  %v3708_v33 = vpop.permute.xlu0 %3707 }
 0x646   : > { %v3981_v16 = vsel %vm452_vm2, %v3965_v28, %v3898_v50  ;;  %v3933_v58 = vsel %vm1287_vm6, %v3597_v39, %v3708_v33 }
 0x647   : > { %4744 = vmatmul.mubr.msk.f32.gmra.mxu1 %vm3994_vm0, %v3981_v16 }
 0x649   : > { %v3772_v40 = vpop.permute.xlu1 %3771  ;;  %v3710_v49 = vpop.permute.xlu0 %3709 }
 0x64a   : > { %v3949_v45 = vsel %vm1355_vm10, %v3933_v58, %v3772_v40  ;;  %v3934_v9 = vsel %vm1287_vm6, %v3598_v62, %v3710_v49 }
 0x64d   : > { %v3836_v18 = vpop.permute.xlu1 %3835  ;;  %v3774_v17 = vpop.permute.xlu0 %3773 }
 0x64e   : > { %v3966_v35 = vsel %vm3951_vm15, %v3949_v45, %v3836_v18  ;;  %v3950_v59 = vsel %vm1355_vm10, %v3934_v9, %v3774_v17 }
 0x651   : > { %v3900_v2 = vpop.permute.xlu1 %3899  ;;  %v3838_v60 = vpop.permute.xlu0 %3837 }
 0x652   : > { %v3982_v55 = vsel %vm452_vm2, %v3966_v35, %v3900_v2  ;;  %v3967_v44 = vsel %vm3951_vm15, %v3950_v59, %v3838_v60 }
 0x653   : > { %4746 = vmatprep.mubr.msk.f32.mxu1 %vm3994_vm0, %v3982_v55 }
 0x655   : > { %v3902_v30 = vpop.permute.xlu0 %3901 }
 0x656   : > { %v3983_v63 = vsel %vm452_vm2, %v3967_v44, %v3902_v30 }
 0x657   : > { %4747 = vmatmul.mubr.msk.f32.gmra.mxu1 %vm3994_vm0, %v3983_v63 }
 0x6a7   : > { %v4727_v20 = vpop.f32.mrf.mxu1 }
 0x6a8   : > { %v4196_v8 = vmul.f32 %v4727_v20, %v6948_v6 }
 0x6a9   : > { %v4109_v52 = vpop.f32.mrf.mxu1 }
 0x6aa   : > { %v4219_v15 = vadd.f32 %v6953_v24, %v4196_v8  ;;  %v4195_v47 = vmul.f32 %v6948_v6, %v4109_v52 }
 0x6ac   : > { %4236 = vst.msk [vmem:[%s6961_s20 + $0x8] sm:$0xff] %vm4234_vm1, %v4219_v15  ;;  %v4218_v51 = vadd.f32 %v6953_v24, %v4195_v47 }
 0x6ae   : > { %4235 = vst.msk [vmem:[%s6961_s20] sm:$0xff] %vm4234_vm1, %v4218_v51 }
 0x6b7   : > { %v4730_v57 = vpop.f32.mrf.mxu1 }
 0x6b8   : > { %v4198_v19 = vmul.f32 %v4730_v57, %v6948_v6 }
 0x6b9   : > { %v4119_v31 = vpop.f32.mrf.mxu1 }
 0x6ba   : > { %v4221_v13 = vadd.f32 %v6953_v24, %v4198_v19  ;;  %v4197_v14 = vmul.f32 %v6948_v6, %v4119_v31 }
 0x6bc   : > { %4238 = vst.msk [vmem:[%s6961_s20 + $0x18] sm:$0xff] %vm4234_vm1, %v4221_v13  ;;  %v4220_v43 = vadd.f32 %v6953_v24, %v4197_v14 }
 0x6be   : > { %4237 = vst.msk [vmem:[%s6961_s20 + $0x10] sm:$0xff] %vm4234_vm1, %v4220_v43 }
 0x6c7   : > { %v4733_v4 = vpop.f32.mrf.mxu1 }
 0x6c8   : > { %v4200_v25 = vmul.f32 %v4733_v4, %v6948_v6 }
 0x6c9   : > { %v4129_v32 = vpop.f32.mrf.mxu1 }
 0x6ca   : > { %v4223_v54 = vadd.f32 %v6953_v24, %v4200_v25  ;;  %v4199_v0 = vmul.f32 %v6948_v6, %v4129_v32 }
 0x6cc   : > { %4240 = vst.msk [vmem:[%s6961_s20 + $0x28] sm:$0xff] %vm4234_vm1, %v4223_v54  ;;  %v4222_v22 = vadd.f32 %v6953_v24, %v4199_v0 }
 0x6ce   : > { %4239 = vst.msk [vmem:[%s6961_s20 + $0x20] sm:$0xff] %vm4234_vm1, %v4222_v22 }
 0x6d7   : > { %v4736_v23 = vpop.f32.mrf.mxu1 }
 0x6d8   : > { %v4202_v37 = vmul.f32 %v4736_v23, %v6948_v6 }
 0x6d9   : > { %v4139_v26 = vpop.f32.mrf.mxu1 }
 0x6da   : > { %v4225_v29 = vadd.f32 %v6953_v24, %v4202_v37  ;;  %v4201_v7 = vmul.f32 %v6948_v6, %v4139_v26 }
 0x6dc   : > { %4242 = vst.msk [vmem:[%s6961_s20 + $0x38] sm:$0xff] %vm4234_vm1, %v4225_v29  ;;  %v4224_v3 = vadd.f32 %v6953_v24, %v4201_v7 }
 0x6de   : > { %4241 = vst.msk [vmem:[%s6961_s20 + $0x30] sm:$0xff] %vm4234_vm1, %v4224_v3 }
 0x6e7   : > { %v4739_v5 = vpop.f32.mrf.mxu1 }
 0x6e8   : > { %v4204_v21 = vmul.f32 %v4739_v5, %v6948_v6 }
 0x6e9   : > { %v4149_v38 = vpop.f32.mrf.mxu1 }
 0x6ea   : > { %v4227_v46 = vadd.f32 %v6953_v24, %v4204_v21  ;;  %v4203_v34 = vmul.f32 %v6948_v6, %v4149_v38 }
 0x6ec   : > { %4244 = vst.msk [vmem:[%s6961_s20 + $0x48] sm:$0xff] %vm4234_vm1, %v4227_v46  ;;  %v4226_v42 = vadd.f32 %v6953_v24, %v4203_v34 }
 0x6ee   : > { %4243 = vst.msk [vmem:[%s6961_s20 + $0x40] sm:$0xff] %vm4234_vm1, %v4226_v42 }
 0x6f7   : > { %v4742_v1 = vpop.f32.mrf.mxu1 }
 0x6f8   : > { %v4206_v48 = vmul.f32 %v4742_v1, %v6948_v6 }
 0x6f9   : > { %v4159_v12 = vpop.f32.mrf.mxu1 }
 0x6fa   : > { %v4229_v53 = vadd.f32 %v6953_v24, %v4206_v48  ;;  %v4205_v27 = vmul.f32 %v6948_v6, %v4159_v12 }
 0x6fc   : > { %4246 = vst.msk [vmem:[%s6961_s20 + $0x58] sm:$0xff] %vm4234_vm1, %v4229_v53  ;;  %v4228_v61 = vadd.f32 %v6953_v24, %v4205_v27 }
 0x6fe   : > { %4245 = vst.msk [vmem:[%s6961_s20 + $0x50] sm:$0xff] %vm4234_vm1, %v4228_v61 }
 0x707   : > { %v4745_v36 = vpop.f32.mrf.mxu1 }
 0x708   : > { %v4208_v41 = vmul.f32 %v4745_v36, %v6948_v6 }
 0x709   : > { %v4169_v10 = vpop.f32.mrf.mxu1 }
 0x70a   : > { %v4231_v11 = vadd.f32 %v6953_v24, %v4208_v41  ;;  %v4207_v56 = vmul.f32 %v6948_v6, %v4169_v10 }
 0x70c   : > { %4248 = vst.msk [vmem:[%s6961_s20 + $0x68] sm:$0xff] %vm4234_vm1, %v4231_v11  ;;  %v4230_v28 = vadd.f32 %v6953_v24, %v4207_v56 }
 0x70e   : > { %4247 = vst.msk [vmem:[%s6961_s20 + $0x60] sm:$0xff] %vm4234_vm1, %v4230_v28 }
 0x717   : > { %v4748_v50 = vpop.f32.mrf.mxu1 }
 0x718   : > { %v4210_v33 = vmul.f32 %v4748_v50, %v6948_v6 }
 0x719   : > { %v4179_v16 = vpop.f32.mrf.mxu1 }
 0x71a   : > { %v4233_v40 = vadd.f32 %v6953_v24, %v4210_v33  ;;  %v4209_v49 = vmul.f32 %v6948_v6, %v4179_v16 }
 0x71c   : > { %4250 = vst.msk [vmem:[%s6961_s20 + $0x78] sm:$0xff] %vm4234_vm1, %v4233_v40  ;;  %v4232_v18 = vadd.f32 %v6953_v24, %v4209_v49 }
 0x71e   : > { %4249 = vst.msk [vmem:[%s6961_s20 + $0x70] sm:$0xff] %vm4234_vm1, %v4232_v18 }
 0x71f PF: > { %s23_s25 = sadd.s32 1, %s5148_s25  }
 0x720   : > { %p20_p4 = scmp.ge.s32.totalorder %s23_s25, 4  }
 0x722   :  { %22 = sbr.rel (!%p20_p4) target bundleno = 1 (0x1), region = 102 }

</bundles_post_ra>
